<compile_context>
chip_gen: v5e
topology: v5e:2x2
jax: 0.10.0
libtpu: 0.0.40
codegen_flags: <defaults>
</compile_context>

<pallas_src>
import jax
import jax.numpy as jnp
from jax.experimental import pallas as pl
from jax.experimental.pallas import tpu as pltpu

KERNEL_SIZE = 7
PAD = KERNEL_SIZE // 2


def _spatial_attention_kernel(x_ref, wb_ref, o_ref):
    """x_ref: (BB, C, H+2P, W+2P) VMEM; wb_ref: (2*K*K+1,) SMEM; o_ref: (BB, H, W) VMEM."""
    BB, C, Hp, Wp = x_ref.shape
    H = Hp - 2 * PAD
    W = Wp - 2 * PAD
    K = KERNEL_SIZE

    xp = x_ref[...]                                   # (BB, C, Hp, Wp) f32
    # Channel reductions over a leading (non-lane) axis -> pure VPU elementwise.
    mx_p = jnp.max(xp, axis=1)                        # padded channel-max map
    av_p = jnp.sum(xp, axis=1) * (1.0 / C)            # padded channel-mean map (1/C folded as const)

    acc = jnp.zeros((BB, H, W), jnp.float32)
    # 7x7 conv over the 2-channel [max, avg] map, fully unrolled: 98 scalar MACs.
    for kh in range(K):
        rm = mx_p[:, kh:kh + H, :]                    # hoist the sublane-offset slice per row tap
        ra = av_p[:, kh:kh + H, :]
        for kw in range(K):
            w_max = wb_ref[kh * K + kw]               # scalar loads from SMEM
            w_avg = wb_ref[K * K + kh * K + kw]
            acc = acc + w_max * rm[:, :, kw:kw + W] + w_avg * ra[:, :, kw:kw + W]

    z = acc + wb_ref[2 * K * K]                       # bias
    o_ref[...] = 1.0 / (1.0 + jnp.exp(-z))            # sigmoid (explicit form; exp -> EUP)


def spatial_attention(x, conv_w, conv_b, *, batch_block=8):
    """Pallas forward of SpatialAttention.

    x:      (B, C, H, W) float32
    conv_w: (1, 2, K, K) float32  (PyTorch Conv2d weight layout [out=1, in=2, kh, kw])
    conv_b: (1,)         float32
    returns (B, 1, H, W) float32
    """
    B, C, H, W = x.shape
    assert conv_w.shape == (1, 2, KERNEL_SIZE, KERNEL_SIZE)

    # Zero-pad spatially once in the wrapper (cheap layout plumbing): channel
    # max/mean of the all-zero halo is 0 == Conv2d's zero padding value.
    xp = jnp.pad(x.astype(jnp.float32),
                 ((0, 0), (0, 0), (PAD, PAD), (PAD, PAD)))

    # Pack all parameters into one SMEM slab: [w_max(49) | w_avg(49) | bias(1)].
    wb = jnp.concatenate([conv_w[0, 0].reshape(-1),
                          conv_w[0, 1].reshape(-1),
                          conv_b.reshape(-1)]).astype(jnp.float32)

    bb = B if B <= batch_block else batch_block       # whole batch per step at small B
    assert B % bb == 0, "batch must be divisible by the batch block"
    grid = (B // bb,)

    out = pl.pallas_call(
        _spatial_attention_kernel,
        out_shape=jax.ShapeDtypeStruct((B, H, W), jnp.float32),
        grid=grid,
        in_specs=[
            pl.BlockSpec((bb, C, H + 2 * PAD, W + 2 * PAD),
                         lambda b: (b, 0, 0, 0)),
            pl.BlockSpec(memory_space=pltpu.MemorySpace.SMEM),   # packed conv params
        ],
        out_specs=pl.BlockSpec((bb, H, W), lambda b: (b, 0, 0)),
        compiler_params=pltpu.CompilerParams(
            dimension_semantics=("parallel",)),
    )(xp, wb)

    return out[:, None, :, :]                         # (B, 1, H, W), matches PyTorch


def _reference(x, conv_w, conv_b):
    """Pure-JAX reference (independent of the kernel) for correctness check."""
    mx = jnp.max(x, axis=1, keepdims=True)
    av = jnp.mean(x, axis=1, keepdims=True)
    feat = jnp.concatenate([mx, av], axis=1)
    y = jax.lax.conv_general_dilated(
        feat, conv_w, window_strides=(1, 1),
        padding=((PAD, PAD), (PAD, PAD)),
        dimension_numbers=("NCHW", "OIHW", "NCHW"))
    return jax.nn.sigmoid(y + conv_b.reshape(1, -1, 1, 1))


if __name__ == "__main__":
    B, C, H, W = 2, 4, 16, 16
    key = jax.random.PRNGKey(0)
    kx, kw, kb = jax.random.split(key, 3)
    x = jax.random.normal(kx, (B, C, H, W), jnp.float32)
    conv_w = 0.1 * jax.random.normal(kw, (1, 2, KERNEL_SIZE, KERNEL_SIZE), jnp.float32)
    conv_b = 0.1 * jax.random.normal(kb, (1,), jnp.float32)

    out = spatial_attention(x, conv_w, conv_b)
    out = jax.block_until_ready(out)

    assert out.shape == (B, 1, H, W)
    assert bool(jnp.all(jnp.isfinite(out)))

    ref = _reference(x, conv_w, conv_b)
    assert bool(jnp.allclose(out, ref, atol=1e-5, rtol=1e-5)), \
        float(jnp.max(jnp.abs(out - ref)))

    print("KERNEL_OK")
</pallas_src>

<mosaic_0001>
module attributes {stable_mosaic.version = 11 : i64} {
  func.func @_spatial_attention_kernel(%arg0: i32, %arg1: memref<2x4x22x22xf32, #tpu.memory_space<vmem>>, %arg2: memref<99xf32, #tpu.memory_space<smem>>, %arg3: memref<2x16x16xf32, #tpu.memory_space<vmem>>) attributes {dimension_semantics = [#tpu.dimension_semantics<parallel>], iteration_bounds = array<i64: 1>, scalar_prefetch = 0 : i64, scratch_operands = 0 : i64, tpu.core_type = #tpu.core_type<tc>, window_params = [{transform_indices = @transform_0, window_bounds = array<i64: 2, 4, 22, 22>}, {transform_indices = @transform_1, window_bounds = array<i64: 99>}, {transform_indices = @transform_2, window_bounds = array<i64: 2, 16, 16>}]} {
    %c0 = arith.constant 0 : index
    %c0_0 = arith.constant 0 : index
    %c0_1 = arith.constant 0 : index
    %c0_2 = arith.constant 0 : index
    %0 = vector.load %arg1[%c0, %c0_0, %c0_1, %c0_2] : memref<2x4x22x22xf32, #tpu.memory_space<vmem>>, vector<2x4x22x22xf32>
    %cst = arith.constant dense<0xFF800000> : vector<2x22x22xf32>
    %1 = vector.multi_reduction <maximumf>, %0, %cst [1] : vector<2x4x22x22xf32> to vector<2x22x22xf32>
    %cst_3 = arith.constant dense<0.000000e+00> : vector<2x22x22xf32>
    %2 = vector.multi_reduction <add>, %0, %cst_3 [1] : vector<2x4x22x22xf32> to vector<2x22x22xf32>
    %cst_4 = arith.constant 2.500000e-01 : f32
    %3 = vector.broadcast %cst_4 : f32 to vector<2x22x22xf32>
    %4 = arith.mulf %2, %3 : vector<2x22x22xf32>
    %cst_5 = arith.constant 0.000000e+00 : f32
    %5 = vector.broadcast %cst_5 : f32 to vector<2x16x16xf32>
    %6 = vector.extract_strided_slice %1 {offsets = [0, 0, 0], sizes = [2, 16, 22], strides = [1, 1, 1]} : vector<2x22x22xf32> to vector<2x16x22xf32>
    %7 = vector.extract_strided_slice %4 {offsets = [0, 0, 0], sizes = [2, 16, 22], strides = [1, 1, 1]} : vector<2x22x22xf32> to vector<2x16x22xf32>
    %c0_6 = arith.constant 0 : index
    %8 = memref.load %arg2[%c0_6] : memref<99xf32, #tpu.memory_space<smem>>
    %c49 = arith.constant 49 : index
    %9 = memref.load %arg2[%c49] : memref<99xf32, #tpu.memory_space<smem>>
    %10 = vector.extract_strided_slice %6 {offsets = [0, 0, 0], sizes = [2, 16, 16], strides = [1, 1, 1]} : vector<2x16x22xf32> to vector<2x16x16xf32>
    %11 = vector.broadcast %8 : f32 to vector<2x16x16xf32>
    %12 = arith.mulf %11, %10 : vector<2x16x16xf32>
    %13 = arith.addf %5, %12 : vector<2x16x16xf32>
    %14 = vector.extract_strided_slice %7 {offsets = [0, 0, 0], sizes = [2, 16, 16], strides = [1, 1, 1]} : vector<2x16x22xf32> to vector<2x16x16xf32>
    %15 = vector.broadcast %9 : f32 to vector<2x16x16xf32>
    %16 = arith.mulf %15, %14 : vector<2x16x16xf32>
    %17 = arith.addf %13, %16 : vector<2x16x16xf32>
    %c1 = arith.constant 1 : index
    %18 = memref.load %arg2[%c1] : memref<99xf32, #tpu.memory_space<smem>>
    %c50 = arith.constant 50 : index
    %19 = memref.load %arg2[%c50] : memref<99xf32, #tpu.memory_space<smem>>
    %20 = vector.extract_strided_slice %6 {offsets = [0, 0, 1], sizes = [2, 16, 16], strides = [1, 1, 1]} : vector<2x16x22xf32> to vector<2x16x16xf32>
    %21 = vector.broadcast %18 : f32 to vector<2x16x16xf32>
    %22 = arith.mulf %21, %20 : vector<2x16x16xf32>
    %23 = arith.addf %17, %22 : vector<2x16x16xf32>
    %24 = vector.extract_strided_slice %7 {offsets = [0, 0, 1], sizes = [2, 16, 16], strides = [1, 1, 1]} : vector<2x16x22xf32> to vector<2x16x16xf32>
    %25 = vector.broadcast %19 : f32 to vector<2x16x16xf32>
    %26 = arith.mulf %25, %24 : vector<2x16x16xf32>
    %27 = arith.addf %23, %26 : vector<2x16x16xf32>
    %c2 = arith.constant 2 : index
    %28 = memref.load %arg2[%c2] : memref<99xf32, #tpu.memory_space<smem>>
    %c51 = arith.constant 51 : index
    %29 = memref.load %arg2[%c51] : memref<99xf32, #tpu.memory_space<smem>>
    %30 = vector.extract_strided_slice %6 {offsets = [0, 0, 2], sizes = [2, 16, 16], strides = [1, 1, 1]} : vector<2x16x22xf32> to vector<2x16x16xf32>
    %31 = vector.broadcast %28 : f32 to vector<2x16x16xf32>
    %32 = arith.mulf %31, %30 : vector<2x16x16xf32>
    %33 = arith.addf %27, %32 : vector<2x16x16xf32>
    %34 = vector.extract_strided_slice %7 {offsets = [0, 0, 2], sizes = [2, 16, 16], strides = [1, 1, 1]} : vector<2x16x22xf32> to vector<2x16x16xf32>
    %35 = vector.broadcast %29 : f32 to vector<2x16x16xf32>
    %36 = arith.mulf %35, %34 : vector<2x16x16xf32>
    %37 = arith.addf %33, %36 : vector<2x16x16xf32>
    %c3 = arith.constant 3 : index
    %38 = memref.load %arg2[%c3] : memref<99xf32, #tpu.memory_space<smem>>
    %c52 = arith.constant 52 : index
    %39 = memref.load %arg2[%c52] : memref<99xf32, #tpu.memory_space<smem>>
    %40 = vector.extract_strided_slice %6 {offsets = [0, 0, 3], sizes = [2, 16, 16], strides = [1, 1, 1]} : vector<2x16x22xf32> to vector<2x16x16xf32>
    %41 = vector.broadcast %38 : f32 to vector<2x16x16xf32>
    %42 = arith.mulf %41, %40 : vector<2x16x16xf32>
    %43 = arith.addf %37, %42 : vector<2x16x16xf32>
    %44 = vector.extract_strided_slice %7 {offsets = [0, 0, 3], sizes = [2, 16, 16], strides = [1, 1, 1]} : vector<2x16x22xf32> to vector<2x16x16xf32>
    %45 = vector.broadcast %39 : f32 to vector<2x16x16xf32>
    %46 = arith.mulf %45, %44 : vector<2x16x16xf32>
    %47 = arith.addf %43, %46 : vector<2x16x16xf32>
    %c4 = arith.constant 4 : index
    %48 = memref.load %arg2[%c4] : memref<99xf32, #tpu.memory_space<smem>>
    %c53 = arith.constant 53 : index
    %49 = memref.load %arg2[%c53] : memref<99xf32, #tpu.memory_space<smem>>
    %50 = vector.extract_strided_slice %6 {offsets = [0, 0, 4], sizes = [2, 16, 16], strides = [1, 1, 1]} : vector<2x16x22xf32> to vector<2x16x16xf32>
    %51 = vector.broadcast %48 : f32 to vector<2x16x16xf32>
    %52 = arith.mulf %51, %50 : vector<2x16x16xf32>
    %53 = arith.addf %47, %52 : vector<2x16x16xf32>
    %54 = vector.extract_strided_slice %7 {offsets = [0, 0, 4], sizes = [2, 16, 16], strides = [1, 1, 1]} : vector<2x16x22xf32> to vector<2x16x16xf32>
    %55 = vector.broadcast %49 : f32 to vector<2x16x16xf32>
    %56 = arith.mulf %55, %54 : vector<2x16x16xf32>
    %57 = arith.addf %53, %56 : vector<2x16x16xf32>
    %c5 = arith.constant 5 : index
    %58 = memref.load %arg2[%c5] : memref<99xf32, #tpu.memory_space<smem>>
    %c54 = arith.constant 54 : index
    %59 = memref.load %arg2[%c54] : memref<99xf32, #tpu.memory_space<smem>>
    %60 = vector.extract_strided_slice %6 {offsets = [0, 0, 5], sizes = [2, 16, 16], strides = [1, 1, 1]} : vector<2x16x22xf32> to vector<2x16x16xf32>
    %61 = vector.broadcast %58 : f32 to vector<2x16x16xf32>
    %62 = arith.mulf %61, %60 : vector<2x16x16xf32>
    %63 = arith.addf %57, %62 : vector<2x16x16xf32>
    %64 = vector.extract_strided_slice %7 {offsets = [0, 0, 5], sizes = [2, 16, 16], strides = [1, 1, 1]} : vector<2x16x22xf32> to vector<2x16x16xf32>
    %65 = vector.broadcast %59 : f32 to vector<2x16x16xf32>
    %66 = arith.mulf %65, %64 : vector<2x16x16xf32>
    %67 = arith.addf %63, %66 : vector<2x16x16xf32>
    %c6 = arith.constant 6 : index
    %68 = memref.load %arg2[%c6] : memref<99xf32, #tpu.memory_space<smem>>
    %c55 = arith.constant 55 : index
    %69 = memref.load %arg2[%c55] : memref<99xf32, #tpu.memory_space<smem>>
    %70 = vector.extract_strided_slice %6 {offsets = [0, 0, 6], sizes = [2, 16, 16], strides = [1, 1, 1]} : vector<2x16x22xf32> to vector<2x16x16xf32>
    %71 = vector.broadcast %68 : f32 to vector<2x16x16xf32>
    %72 = arith.mulf %71, %70 : vector<2x16x16xf32>
    %73 = arith.addf %67, %72 : vector<2x16x16xf32>
    %74 = vector.extract_strided_slice %7 {offsets = [0, 0, 6], sizes = [2, 16, 16], strides = [1, 1, 1]} : vector<2x16x22xf32> to vector<2x16x16xf32>
    %75 = vector.broadcast %69 : f32 to vector<2x16x16xf32>
    %76 = arith.mulf %75, %74 : vector<2x16x16xf32>
    %77 = arith.addf %73, %76 : vector<2x16x16xf32>
    %78 = vector.extract_strided_slice %1 {offsets = [0, 1, 0], sizes = [2, 16, 22], strides = [1, 1, 1]} : vector<2x22x22xf32> to vector<2x16x22xf32>
    %79 = vector.extract_strided_slice %4 {offsets = [0, 1, 0], sizes = [2, 16, 22], strides = [1, 1, 1]} : vector<2x22x22xf32> to vector<2x16x22xf32>
    %c7 = arith.constant 7 : index
    %80 = memref.load %arg2[%c7] : memref<99xf32, #tpu.memory_space<smem>>
    %c56 = arith.constant 56 : index
    %81 = memref.load %arg2[%c56] : memref<99xf32, #tpu.memory_space<smem>>
    %82 = vector.extract_strided_slice %78 {offsets = [0, 0, 0], sizes = [2, 16, 16], strides = [1, 1, 1]} : vector<2x16x22xf32> to vector<2x16x16xf32>
    %83 = vector.broadcast %80 : f32 to vector<2x16x16xf32>
    %84 = arith.mulf %83, %82 : vector<2x16x16xf32>
    %85 = arith.addf %77, %84 : vector<2x16x16xf32>
    %86 = vector.extract_strided_slice %79 {offsets = [0, 0, 0], sizes = [2, 16, 16], strides = [1, 1, 1]} : vector<2x16x22xf32> to vector<2x16x16xf32>
    %87 = vector.broadcast %81 : f32 to vector<2x16x16xf32>
    %88 = arith.mulf %87, %86 : vector<2x16x16xf32>
    %89 = arith.addf %85, %88 : vector<2x16x16xf32>
    %c8 = arith.constant 8 : index
    %90 = memref.load %arg2[%c8] : memref<99xf32, #tpu.memory_space<smem>>
    %c57 = arith.constant 57 : index
    %91 = memref.load %arg2[%c57] : memref<99xf32, #tpu.memory_space<smem>>
    %92 = vector.extract_strided_slice %78 {offsets = [0, 0, 1], sizes = [2, 16, 16], strides = [1, 1, 1]} : vector<2x16x22xf32> to vector<2x16x16xf32>
    %93 = vector.broadcast %90 : f32 to vector<2x16x16xf32>
    %94 = arith.mulf %93, %92 : vector<2x16x16xf32>
    %95 = arith.addf %89, %94 : vector<2x16x16xf32>
    %96 = vector.extract_strided_slice %79 {offsets = [0, 0, 1], sizes = [2, 16, 16], strides = [1, 1, 1]} : vector<2x16x22xf32> to vector<2x16x16xf32>
    %97 = vector.broadcast %91 : f32 to vector<2x16x16xf32>
    %98 = arith.mulf %97, %96 : vector<2x16x16xf32>
    %99 = arith.addf %95, %98 : vector<2x16x16xf32>
    %c9 = arith.constant 9 : index
    %100 = memref.load %arg2[%c9] : memref<99xf32, #tpu.memory_space<smem>>
    %c58 = arith.constant 58 : index
    %101 = memref.load %arg2[%c58] : memref<99xf32, #tpu.memory_space<smem>>
    %102 = vector.extract_strided_slice %78 {offsets = [0, 0, 2], sizes = [2, 16, 16], strides = [1, 1, 1]} : vector<2x16x22xf32> to vector<2x16x16xf32>
    %103 = vector.broadcast %100 : f32 to vector<2x16x16xf32>
    %104 = arith.mulf %103, %102 : vector<2x16x16xf32>
    %105 = arith.addf %99, %104 : vector<2x16x16xf32>
    %106 = vector.extract_strided_slice %79 {offsets = [0, 0, 2], sizes = [2, 16, 16], strides = [1, 1, 1]} : vector<2x16x22xf32> to vector<2x16x16xf32>
    %107 = vector.broadcast %101 : f32 to vector<2x16x16xf32>
    %108 = arith.mulf %107, %106 : vector<2x16x16xf32>
    %109 = arith.addf %105, %108 : vector<2x16x16xf32>
    %c10 = arith.constant 10 : index
    %110 = memref.load %arg2[%c10] : memref<99xf32, #tpu.memory_space<smem>>
    %c59 = arith.constant 59 : index
    %111 = memref.load %arg2[%c59] : memref<99xf32, #tpu.memory_space<smem>>
    %112 = vector.extract_strided_slice %78 {offsets = [0, 0, 3], sizes = [2, 16, 16], strides = [1, 1, 1]} : vector<2x16x22xf32> to vector<2x16x16xf32>
    %113 = vector.broadcast %110 : f32 to vector<2x16x16xf32>
    %114 = arith.mulf %113, %112 : vector<2x16x16xf32>
    %115 = arith.addf %109, %114 : vector<2x16x16xf32>
    %116 = vector.extract_strided_slice %79 {offsets = [0, 0, 3], sizes = [2, 16, 16], strides = [1, 1, 1]} : vector<2x16x22xf32> to vector<2x16x16xf32>
    %117 = vector.broadcast %111 : f32 to vector<2x16x16xf32>
    %118 = arith.mulf %117, %116 : vector<2x16x16xf32>
    %119 = arith.addf %115, %118 : vector<2x16x16xf32>
    %c11 = arith.constant 11 : index
    %120 = memref.load %arg2[%c11] : memref<99xf32, #tpu.memory_space<smem>>
    %c60 = arith.constant 60 : index
    %121 = memref.load %arg2[%c60] : memref<99xf32, #tpu.memory_space<smem>>
    %122 = vector.extract_strided_slice %78 {offsets = [0, 0, 4], sizes = [2, 16, 16], strides = [1, 1, 1]} : vector<2x16x22xf32> to vector<2x16x16xf32>
    %123 = vector.broadcast %120 : f32 to vector<2x16x16xf32>
    %124 = arith.mulf %123, %122 : vector<2x16x16xf32>
    %125 = arith.addf %119, %124 : vector<2x16x16xf32>
    %126 = vector.extract_strided_slice %79 {offsets = [0, 0, 4], sizes = [2, 16, 16], strides = [1, 1, 1]} : vector<2x16x22xf32> to vector<2x16x16xf32>
    %127 = vector.broadcast %121 : f32 to vector<2x16x16xf32>
    %128 = arith.mulf %127, %126 : vector<2x16x16xf32>
    %129 = arith.addf %125, %128 : vector<2x16x16xf32>
    %c12 = arith.constant 12 : index
    %130 = memref.load %arg2[%c12] : memref<99xf32, #tpu.memory_space<smem>>
    %c61 = arith.constant 61 : index
    %131 = memref.load %arg2[%c61] : memref<99xf32, #tpu.memory_space<smem>>
    %132 = vector.extract_strided_slice %78 {offsets = [0, 0, 5], sizes = [2, 16, 16], strides = [1, 1, 1]} : vector<2x16x22xf32> to vector<2x16x16xf32>
    %133 = vector.broadcast %130 : f32 to vector<2x16x16xf32>
    %134 = arith.mulf %133, %132 : vector<2x16x16xf32>
    %135 = arith.addf %129, %134 : vector<2x16x16xf32>
    %136 = vector.extract_strided_slice %79 {offsets = [0, 0, 5], sizes = [2, 16, 16], strides = [1, 1, 1]} : vector<2x16x22xf32> to vector<2x16x16xf32>
    %137 = vector.broadcast %131 : f32 to vector<2x16x16xf32>
    %138 = arith.mulf %137, %136 : vector<2x16x16xf32>
    %139 = arith.addf %135, %138 : vector<2x16x16xf32>
    %c13 = arith.constant 13 : index
    %140 = memref.load %arg2[%c13] : memref<99xf32, #tpu.memory_space<smem>>
    %c62 = arith.constant 62 : index
    %141 = memref.load %arg2[%c62] : memref<99xf32, #tpu.memory_space<smem>>
    %142 = vector.extract_strided_slice %78 {offsets = [0, 0, 6], sizes = [2, 16, 16], strides = [1, 1, 1]} : vector<2x16x22xf32> to vector<2x16x16xf32>
    %143 = vector.broadcast %140 : f32 to vector<2x16x16xf32>
    %144 = arith.mulf %143, %142 : vector<2x16x16xf32>
    %145 = arith.addf %139, %144 : vector<2x16x16xf32>
    %146 = vector.extract_strided_slice %79 {offsets = [0, 0, 6], sizes = [2, 16, 16], strides = [1, 1, 1]} : vector<2x16x22xf32> to vector<2x16x16xf32>
    %147 = vector.broadcast %141 : f32 to vector<2x16x16xf32>
    %148 = arith.mulf %147, %146 : vector<2x16x16xf32>
    %149 = arith.addf %145, %148 : vector<2x16x16xf32>
    %150 = vector.extract_strided_slice %1 {offsets = [0, 2, 0], sizes = [2, 16, 22], strides = [1, 1, 1]} : vector<2x22x22xf32> to vector<2x16x22xf32>
    %151 = vector.extract_strided_slice %4 {offsets = [0, 2, 0], sizes = [2, 16, 22], strides = [1, 1, 1]} : vector<2x22x22xf32> to vector<2x16x22xf32>
    %c14 = arith.constant 14 : index
    %152 = memref.load %arg2[%c14] : memref<99xf32, #tpu.memory_space<smem>>
    %c63 = arith.constant 63 : index
    %153 = memref.load %arg2[%c63] : memref<99xf32, #tpu.memory_space<smem>>
    %154 = vector.extract_strided_slice %150 {offsets = [0, 0, 0], sizes = [2, 16, 16], strides = [1, 1, 1]} : vector<2x16x22xf32> to vector<2x16x16xf32>
    %155 = vector.broadcast %152 : f32 to vector<2x16x16xf32>
    %156 = arith.mulf %155, %154 : vector<2x16x16xf32>
    %157 = arith.addf %149, %156 : vector<2x16x16xf32>
    %158 = vector.extract_strided_slice %151 {offsets = [0, 0, 0], sizes = [2, 16, 16], strides = [1, 1, 1]} : vector<2x16x22xf32> to vector<2x16x16xf32>
    %159 = vector.broadcast %153 : f32 to vector<2x16x16xf32>
    %160 = arith.mulf %159, %158 : vector<2x16x16xf32>
    %161 = arith.addf %157, %160 : vector<2x16x16xf32>
    %c15 = arith.constant 15 : index
    %162 = memref.load %arg2[%c15] : memref<99xf32, #tpu.memory_space<smem>>
    %c64 = arith.constant 64 : index
    %163 = memref.load %arg2[%c64] : memref<99xf32, #tpu.memory_space<smem>>
    %164 = vector.extract_strided_slice %150 {offsets = [0, 0, 1], sizes = [2, 16, 16], strides = [1, 1, 1]} : vector<2x16x22xf32> to vector<2x16x16xf32>
    %165 = vector.broadcast %162 : f32 to vector<2x16x16xf32>
    %166 = arith.mulf %165, %164 : vector<2x16x16xf32>
    %167 = arith.addf %161, %166 : vector<2x16x16xf32>
    %168 = vector.extract_strided_slice %151 {offsets = [0, 0, 1], sizes = [2, 16, 16], strides = [1, 1, 1]} : vector<2x16x22xf32> to vector<2x16x16xf32>
    %169 = vector.broadcast %163 : f32 to vector<2x16x16xf32>
    %170 = arith.mulf %169, %168 : vector<2x16x16xf32>
    %171 = arith.addf %167, %170 : vector<2x16x16xf32>
    %c16 = arith.constant 16 : index
    %172 = memref.load %arg2[%c16] : memref<99xf32, #tpu.memory_space<smem>>
    %c65 = arith.constant 65 : index
    %173 = memref.load %arg2[%c65] : memref<99xf32, #tpu.memory_space<smem>>
    %174 = vector.extract_strided_slice %150 {offsets = [0, 0, 2], sizes = [2, 16, 16], strides = [1, 1, 1]} : vector<2x16x22xf32> to vector<2x16x16xf32>
    %175 = vector.broadcast %172 : f32 to vector<2x16x16xf32>
    %176 = arith.mulf %175, %174 : vector<2x16x16xf32>
    %177 = arith.addf %171, %176 : vector<2x16x16xf32>
    %178 = vector.extract_strided_slice %151 {offsets = [0, 0, 2], sizes = [2, 16, 16], strides = [1, 1, 1]} : vector<2x16x22xf32> to vector<2x16x16xf32>
    %179 = vector.broadcast %173 : f32 to vector<2x16x16xf32>
    %180 = arith.mulf %179, %178 : vector<2x16x16xf32>
    %181 = arith.addf %177, %180 : vector<2x16x16xf32>
    %c17 = arith.constant 17 : index
    %182 = memref.load %arg2[%c17] : memref<99xf32, #tpu.memory_space<smem>>
    %c66 = arith.constant 66 : index
    %183 = memref.load %arg2[%c66] : memref<99xf32, #tpu.memory_space<smem>>
    %184 = vector.extract_strided_slice %150 {offsets = [0, 0, 3], sizes = [2, 16, 16], strides = [1, 1, 1]} : vector<2x16x22xf32> to vector<2x16x16xf32>
    %185 = vector.broadcast %182 : f32 to vector<2x16x16xf32>
    %186 = arith.mulf %185, %184 : vector<2x16x16xf32>
    %187 = arith.addf %181, %186 : vector<2x16x16xf32>
    %188 = vector.extract_strided_slice %151 {offsets = [0, 0, 3], sizes = [2, 16, 16], strides = [1, 1, 1]} : vector<2x16x22xf32> to vector<2x16x16xf32>
    %189 = vector.broadcast %183 : f32 to vector<2x16x16xf32>
    %190 = arith.mulf %189, %188 : vector<2x16x16xf32>
    %191 = arith.addf %187, %190 : vector<2x16x16xf32>
    %c18 = arith.constant 18 : index
    %192 = memref.load %arg2[%c18] : memref<99xf32, #tpu.memory_space<smem>>
    %c67 = arith.constant 67 : index
    %193 = memref.load %arg2[%c67] : memref<99xf32, #tpu.memory_space<smem>>
    %194 = vector.extract_strided_slice %150 {offsets = [0, 0, 4], sizes = [2, 16, 16], strides = [1, 1, 1]} : vector<2x16x22xf32> to vector<2x16x16xf32>
    %195 = vector.broadcast %192 : f32 to vector<2x16x16xf32>
    %196 = arith.mulf %195, %194 : vector<2x16x16xf32>
    %197 = arith.addf %191, %196 : vector<2x16x16xf32>
    %198 = vector.extract_strided_slice %151 {offsets = [0, 0, 4], sizes = [2, 16, 16], strides = [1, 1, 1]} : vector<2x16x22xf32> to vector<2x16x16xf32>
    %199 = vector.broadcast %193 : f32 to vector<2x16x16xf32>
    %200 = arith.mulf %199, %198 : vector<2x16x16xf32>
    %201 = arith.addf %197, %200 : vector<2x16x16xf32>
    %c19 = arith.constant 19 : index
    %202 = memref.load %arg2[%c19] : memref<99xf32, #tpu.memory_space<smem>>
    %c68 = arith.constant 68 : index
    %203 = memref.load %arg2[%c68] : memref<99xf32, #tpu.memory_space<smem>>
    %204 = vector.extract_strided_slice %150 {offsets = [0, 0, 5], sizes = [2, 16, 16], strides = [1, 1, 1]} : vector<2x16x22xf32> to vector<2x16x16xf32>
    %205 = vector.broadcast %202 : f32 to vector<2x16x16xf32>
    %206 = arith.mulf %205, %204 : vector<2x16x16xf32>
    %207 = arith.addf %201, %206 : vector<2x16x16xf32>
    %208 = vector.extract_strided_slice %151 {offsets = [0, 0, 5], sizes = [2, 16, 16], strides = [1, 1, 1]} : vector<2x16x22xf32> to vector<2x16x16xf32>
    %209 = vector.broadcast %203 : f32 to vector<2x16x16xf32>
    %210 = arith.mulf %209, %208 : vector<2x16x16xf32>
    %211 = arith.addf %207, %210 : vector<2x16x16xf32>
    %c20 = arith.constant 20 : index
    %212 = memref.load %arg2[%c20] : memref<99xf32, #tpu.memory_space<smem>>
    %c69 = arith.constant 69 : index
    %213 = memref.load %arg2[%c69] : memref<99xf32, #tpu.memory_space<smem>>
    %214 = vector.extract_strided_slice %150 {offsets = [0, 0, 6], sizes = [2, 16, 16], strides = [1, 1, 1]} : vector<2x16x22xf32> to vector<2x16x16xf32>
    %215 = vector.broadcast %212 : f32 to vector<2x16x16xf32>
    %216 = arith.mulf %215, %214 : vector<2x16x16xf32>
    %217 = arith.addf %211, %216 : vector<2x16x16xf32>
    %218 = vector.extract_strided_slice %151 {offsets = [0, 0, 6], sizes = [2, 16, 16], strides = [1, 1, 1]} : vector<2x16x22xf32> to vector<2x16x16xf32>
    %219 = vector.broadcast %213 : f32 to vector<2x16x16xf32>
    %220 = arith.mulf %219, %218 : vector<2x16x16xf32>
    %221 = arith.addf %217, %220 : vector<2x16x16xf32>
    %222 = vector.extract_strided_slice %1 {offsets = [0, 3, 0], sizes = [2, 16, 22], strides = [1, 1, 1]} : vector<2x22x22xf32> to vector<2x16x22xf32>
    %223 = vector.extract_strided_slice %4 {offsets = [0, 3, 0], sizes = [2, 16, 22], strides = [1, 1, 1]} : vector<2x22x22xf32> to vector<2x16x22xf32>
    %c21 = arith.constant 21 : index
    %224 = memref.load %arg2[%c21] : memref<99xf32, #tpu.memory_space<smem>>
    %c70 = arith.constant 70 : index
    %225 = memref.load %arg2[%c70] : memref<99xf32, #tpu.memory_space<smem>>
    %226 = vector.extract_strided_slice %222 {offsets = [0, 0, 0], sizes = [2, 16, 16], strides = [1, 1, 1]} : vector<2x16x22xf32> to vector<2x16x16xf32>
    %227 = vector.broadcast %224 : f32 to vector<2x16x16xf32>
    %228 = arith.mulf %227, %226 : vector<2x16x16xf32>
    %229 = arith.addf %221, %228 : vector<2x16x16xf32>
    %230 = vector.extract_strided_slice %223 {offsets = [0, 0, 0], sizes = [2, 16, 16], strides = [1, 1, 1]} : vector<2x16x22xf32> to vector<2x16x16xf32>
    %231 = vector.broadcast %225 : f32 to vector<2x16x16xf32>
    %232 = arith.mulf %231, %230 : vector<2x16x16xf32>
    %233 = arith.addf %229, %232 : vector<2x16x16xf32>
    %c22 = arith.constant 22 : index
    %234 = memref.load %arg2[%c22] : memref<99xf32, #tpu.memory_space<smem>>
    %c71 = arith.constant 71 : index
    %235 = memref.load %arg2[%c71] : memref<99xf32, #tpu.memory_space<smem>>
    %236 = vector.extract_strided_slice %222 {offsets = [0, 0, 1], sizes = [2, 16, 16], strides = [1, 1, 1]} : vector<2x16x22xf32> to vector<2x16x16xf32>
    %237 = vector.broadcast %234 : f32 to vector<2x16x16xf32>
    %238 = arith.mulf %237, %236 : vector<2x16x16xf32>
    %239 = arith.addf %233, %238 : vector<2x16x16xf32>
    %240 = vector.extract_strided_slice %223 {offsets = [0, 0, 1], sizes = [2, 16, 16], strides = [1, 1, 1]} : vector<2x16x22xf32> to vector<2x16x16xf32>
    %241 = vector.broadcast %235 : f32 to vector<2x16x16xf32>
    %242 = arith.mulf %241, %240 : vector<2x16x16xf32>
    %243 = arith.addf %239, %242 : vector<2x16x16xf32>
    %c23 = arith.constant 23 : index
    %244 = memref.load %arg2[%c23] : memref<99xf32, #tpu.memory_space<smem>>
    %c72 = arith.constant 72 : index
    %245 = memref.load %arg2[%c72] : memref<99xf32, #tpu.memory_space<smem>>
    %246 = vector.extract_strided_slice %222 {offsets = [0, 0, 2], sizes = [2, 16, 16], strides = [1, 1, 1]} : vector<2x16x22xf32> to vector<2x16x16xf32>
    %247 = vector.broadcast %244 : f32 to vector<2x16x16xf32>
    %248 = arith.mulf %247, %246 : vector<2x16x16xf32>
    %249 = arith.addf %243, %248 : vector<2x16x16xf32>
    %250 = vector.extract_strided_slice %223 {offsets = [0, 0, 2], sizes = [2, 16, 16], strides = [1, 1, 1]} : vector<2x16x22xf32> to vector<2x16x16xf32>
    %251 = vector.broadcast %245 : f32 to vector<2x16x16xf32>
    %252 = arith.mulf %251, %250 : vector<2x16x16xf32>
    %253 = arith.addf %249, %252 : vector<2x16x16xf32>
    %c24 = arith.constant 24 : index
    %254 = memref.load %arg2[%c24] : memref<99xf32, #tpu.memory_space<smem>>
    %c73 = arith.constant 73 : index
    %255 = memref.load %arg2[%c73] : memref<99xf32, #tpu.memory_space<smem>>
    %256 = vector.extract_strided_slice %222 {offsets = [0, 0, 3], sizes = [2, 16, 16], strides = [1, 1, 1]} : vector<2x16x22xf32> to vector<2x16x16xf32>
    %257 = vector.broadcast %254 : f32 to vector<2x16x16xf32>
    %258 = arith.mulf %257, %256 : vector<2x16x16xf32>
    %259 = arith.addf %253, %258 : vector<2x16x16xf32>
    %260 = vector.extract_strided_slice %223 {offsets = [0, 0, 3], sizes = [2, 16, 16], strides = [1, 1, 1]} : vector<2x16x22xf32> to vector<2x16x16xf32>
    %261 = vector.broadcast %255 : f32 to vector<2x16x16xf32>
    %262 = arith.mulf %261, %260 : vector<2x16x16xf32>
    %263 = arith.addf %259, %262 : vector<2x16x16xf32>
    %c25 = arith.constant 25 : index
    %264 = memref.load %arg2[%c25] : memref<99xf32, #tpu.memory_space<smem>>
    %c74 = arith.constant 74 : index
    %265 = memref.load %arg2[%c74] : memref<99xf32, #tpu.memory_space<smem>>
    %266 = vector.extract_strided_slice %222 {offsets = [0, 0, 4], sizes = [2, 16, 16], strides = [1, 1, 1]} : vector<2x16x22xf32> to vector<2x16x16xf32>
    %267 = vector.broadcast %264 : f32 to vector<2x16x16xf32>
    %268 = arith.mulf %267, %266 : vector<2x16x16xf32>
    %269 = arith.addf %263, %268 : vector<2x16x16xf32>
    %270 = vector.extract_strided_slice %223 {offsets = [0, 0, 4], sizes = [2, 16, 16], strides = [1, 1, 1]} : vector<2x16x22xf32> to vector<2x16x16xf32>
    %271 = vector.broadcast %265 : f32 to vector<2x16x16xf32>
    %272 = arith.mulf %271, %270 : vector<2x16x16xf32>
    %273 = arith.addf %269, %272 : vector<2x16x16xf32>
    %c26 = arith.constant 26 : index
    %274 = memref.load %arg2[%c26] : memref<99xf32, #tpu.memory_space<smem>>
    %c75 = arith.constant 75 : index
    %275 = memref.load %arg2[%c75] : memref<99xf32, #tpu.memory_space<smem>>
    %276 = vector.extract_strided_slice %222 {offsets = [0, 0, 5], sizes = [2, 16, 16], strides = [1, 1, 1]} : vector<2x16x22xf32> to vector<2x16x16xf32>
    %277 = vector.broadcast %274 : f32 to vector<2x16x16xf32>
    %278 = arith.mulf %277, %276 : vector<2x16x16xf32>
    %279 = arith.addf %273, %278 : vector<2x16x16xf32>
    %280 = vector.extract_strided_slice %223 {offsets = [0, 0, 5], sizes = [2, 16, 16], strides = [1, 1, 1]} : vector<2x16x22xf32> to vector<2x16x16xf32>
    %281 = vector.broadcast %275 : f32 to vector<2x16x16xf32>
    %282 = arith.mulf %281, %280 : vector<2x16x16xf32>
    %283 = arith.addf %279, %282 : vector<2x16x16xf32>
    %c27 = arith.constant 27 : index
    %284 = memref.load %arg2[%c27] : memref<99xf32, #tpu.memory_space<smem>>
    %c76 = arith.constant 76 : index
    %285 = memref.load %arg2[%c76] : memref<99xf32, #tpu.memory_space<smem>>
    %286 = vector.extract_strided_slice %222 {offsets = [0, 0, 6], sizes = [2, 16, 16], strides = [1, 1, 1]} : vector<2x16x22xf32> to vector<2x16x16xf32>
    %287 = vector.broadcast %284 : f32 to vector<2x16x16xf32>
    %288 = arith.mulf %287, %286 : vector<2x16x16xf32>
    %289 = arith.addf %283, %288 : vector<2x16x16xf32>
    %290 = vector.extract_strided_slice %223 {offsets = [0, 0, 6], sizes = [2, 16, 16], strides = [1, 1, 1]} : vector<2x16x22xf32> to vector<2x16x16xf32>
    %291 = vector.broadcast %285 : f32 to vector<2x16x16xf32>
    %292 = arith.mulf %291, %290 : vector<2x16x16xf32>
    %293 = arith.addf %289, %292 : vector<2x16x16xf32>
    %294 = vector.extract_strided_slice %1 {offsets = [0, 4, 0], sizes = [2, 16, 22], strides = [1, 1, 1]} : vector<2x22x22xf32> to vector<2x16x22xf32>
    %295 = vector.extract_strided_slice %4 {offsets = [0, 4, 0], sizes = [2, 16, 22], strides = [1, 1, 1]} : vector<2x22x22xf32> to vector<2x16x22xf32>
    %c28 = arith.constant 28 : index
    %296 = memref.load %arg2[%c28] : memref<99xf32, #tpu.memory_space<smem>>
    %c77 = arith.constant 77 : index
    %297 = memref.load %arg2[%c77] : memref<99xf32, #tpu.memory_space<smem>>
    %298 = vector.extract_strided_slice %294 {offsets = [0, 0, 0], sizes = [2, 16, 16], strides = [1, 1, 1]} : vector<2x16x22xf32> to vector<2x16x16xf32>
    %299 = vector.broadcast %296 : f32 to vector<2x16x16xf32>
    %300 = arith.mulf %299, %298 : vector<2x16x16xf32>
    %301 = arith.addf %293, %300 : vector<2x16x16xf32>
    %302 = vector.extract_strided_slice %295 {offsets = [0, 0, 0], sizes = [2, 16, 16], strides = [1, 1, 1]} : vector<2x16x22xf32> to vector<2x16x16xf32>
    %303 = vector.broadcast %297 : f32 to vector<2x16x16xf32>
    %304 = arith.mulf %303, %302 : vector<2x16x16xf32>
    %305 = arith.addf %301, %304 : vector<2x16x16xf32>
    %c29 = arith.constant 29 : index
    %306 = memref.load %arg2[%c29] : memref<99xf32, #tpu.memory_space<smem>>
    %c78 = arith.constant 78 : index
    %307 = memref.load %arg2[%c78] : memref<99xf32, #tpu.memory_space<smem>>
    %308 = vector.extract_strided_slice %294 {offsets = [0, 0, 1], sizes = [2, 16, 16], strides = [1, 1, 1]} : vector<2x16x22xf32> to vector<2x16x16xf32>
    %309 = vector.broadcast %306 : f32 to vector<2x16x16xf32>
    %310 = arith.mulf %309, %308 : vector<2x16x16xf32>
    %311 = arith.addf %305, %310 : vector<2x16x16xf32>
    %312 = vector.extract_strided_slice %295 {offsets = [0, 0, 1], sizes = [2, 16, 16], strides = [1, 1, 1]} : vector<2x16x22xf32> to vector<2x16x16xf32>
    %313 = vector.broadcast %307 : f32 to vector<2x16x16xf32>
    %314 = arith.mulf %313, %312 : vector<2x16x16xf32>
    %315 = arith.addf %311, %314 : vector<2x16x16xf32>
    %c30 = arith.constant 30 : index
    %316 = memref.load %arg2[%c30] : memref<99xf32, #tpu.memory_space<smem>>
    %c79 = arith.constant 79 : index
    %317 = memref.load %arg2[%c79] : memref<99xf32, #tpu.memory_space<smem>>
    %318 = vector.extract_strided_slice %294 {offsets = [0, 0, 2], sizes = [2, 16, 16], strides = [1, 1, 1]} : vector<2x16x22xf32> to vector<2x16x16xf32>
    %319 = vector.broadcast %316 : f32 to vector<2x16x16xf32>
    %320 = arith.mulf %319, %318 : vector<2x16x16xf32>
    %321 = arith.addf %315, %320 : vector<2x16x16xf32>
    %322 = vector.extract_strided_slice %295 {offsets = [0, 0, 2], sizes = [2, 16, 16], strides = [1, 1, 1]} : vector<2x16x22xf32> to vector<2x16x16xf32>
    %323 = vector.broadcast %317 : f32 to vector<2x16x16xf32>
    %324 = arith.mulf %323, %322 : vector<2x16x16xf32>
    %325 = arith.addf %321, %324 : vector<2x16x16xf32>
    %c31 = arith.constant 31 : index
    %326 = memref.load %arg2[%c31] : memref<99xf32, #tpu.memory_space<smem>>
    %c80 = arith.constant 80 : index
    %327 = memref.load %arg2[%c80] : memref<99xf32, #tpu.memory_space<smem>>
    %328 = vector.extract_strided_slice %294 {offsets = [0, 0, 3], sizes = [2, 16, 16], strides = [1, 1, 1]} : vector<2x16x22xf32> to vector<2x16x16xf32>
    %329 = vector.broadcast %326 : f32 to vector<2x16x16xf32>
    %330 = arith.mulf %329, %328 : vector<2x16x16xf32>
    %331 = arith.addf %325, %330 : vector<2x16x16xf32>
    %332 = vector.extract_strided_slice %295 {offsets = [0, 0, 3], sizes = [2, 16, 16], strides = [1, 1, 1]} : vector<2x16x22xf32> to vector<2x16x16xf32>
    %333 = vector.broadcast %327 : f32 to vector<2x16x16xf32>
    %334 = arith.mulf %333, %332 : vector<2x16x16xf32>
    %335 = arith.addf %331, %334 : vector<2x16x16xf32>
    %c32 = arith.constant 32 : index
    %336 = memref.load %arg2[%c32] : memref<99xf32, #tpu.memory_space<smem>>
    %c81 = arith.constant 81 : index
    %337 = memref.load %arg2[%c81] : memref<99xf32, #tpu.memory_space<smem>>
    %338 = vector.extract_strided_slice %294 {offsets = [0, 0, 4], sizes = [2, 16, 16], strides = [1, 1, 1]} : vector<2x16x22xf32> to vector<2x16x16xf32>
    %339 = vector.broadcast %336 : f32 to vector<2x16x16xf32>
    %340 = arith.mulf %339, %338 : vector<2x16x16xf32>
    %341 = arith.addf %335, %340 : vector<2x16x16xf32>
    %342 = vector.extract_strided_slice %295 {offsets = [0, 0, 4], sizes = [2, 16, 16], strides = [1, 1, 1]} : vector<2x16x22xf32> to vector<2x16x16xf32>
    %343 = vector.broadcast %337 : f32 to vector<2x16x16xf32>
    %344 = arith.mulf %343, %342 : vector<2x16x16xf32>
    %345 = arith.addf %341, %344 : vector<2x16x16xf32>
    %c33 = arith.constant 33 : index
    %346 = memref.load %arg2[%c33] : memref<99xf32, #tpu.memory_space<smem>>
    %c82 = arith.constant 82 : index
    %347 = memref.load %arg2[%c82] : memref<99xf32, #tpu.memory_space<smem>>
    %348 = vector.extract_strided_slice %294 {offsets = [0, 0, 5], sizes = [2, 16, 16], strides = [1, 1, 1]} : vector<2x16x22xf32> to vector<2x16x16xf32>
    %349 = vector.broadcast %346 : f32 to vector<2x16x16xf32>
    %350 = arith.mulf %349, %348 : vector<2x16x16xf32>
    %351 = arith.addf %345, %350 : vector<2x16x16xf32>
    %352 = vector.extract_strided_slice %295 {offsets = [0, 0, 5], sizes = [2, 16, 16], strides = [1, 1, 1]} : vector<2x16x22xf32> to vector<2x16x16xf32>
    %353 = vector.broadcast %347 : f32 to vector<2x16x16xf32>
    %354 = arith.mulf %353, %352 : vector<2x16x16xf32>
    %355 = arith.addf %351, %354 : vector<2x16x16xf32>
    %c34 = arith.constant 34 : index
    %356 = memref.load %arg2[%c34] : memref<99xf32, #tpu.memory_space<smem>>
    %c83 = arith.constant 83 : index
    %357 = memref.load %arg2[%c83] : memref<99xf32, #tpu.memory_space<smem>>
    %358 = vector.extract_strided_slice %294 {offsets = [0, 0, 6], sizes = [2, 16, 16], strides = [1, 1, 1]} : vector<2x16x22xf32> to vector<2x16x16xf32>
    %359 = vector.broadcast %356 : f32 to vector<2x16x16xf32>
    %360 = arith.mulf %359, %358 : vector<2x16x16xf32>
    %361 = arith.addf %355, %360 : vector<2x16x16xf32>
    %362 = vector.extract_strided_slice %295 {offsets = [0, 0, 6], sizes = [2, 16, 16], strides = [1, 1, 1]} : vector<2x16x22xf32> to vector<2x16x16xf32>
    %363 = vector.broadcast %357 : f32 to vector<2x16x16xf32>
    %364 = arith.mulf %363, %362 : vector<2x16x16xf32>
    %365 = arith.addf %361, %364 : vector<2x16x16xf32>
    %366 = vector.extract_strided_slice %1 {offsets = [0, 5, 0], sizes = [2, 16, 22], strides = [1, 1, 1]} : vector<2x22x22xf32> to vector<2x16x22xf32>
    %367 = vector.extract_strided_slice %4 {offsets = [0, 5, 0], sizes = [2, 16, 22], strides = [1, 1, 1]} : vector<2x22x22xf32> to vector<2x16x22xf32>
    %c35 = arith.constant 35 : index
    %368 = memref.load %arg2[%c35] : memref<99xf32, #tpu.memory_space<smem>>
    %c84 = arith.constant 84 : index
    %369 = memref.load %arg2[%c84] : memref<99xf32, #tpu.memory_space<smem>>
    %370 = vector.extract_strided_slice %366 {offsets = [0, 0, 0], sizes = [2, 16, 16], strides = [1, 1, 1]} : vector<2x16x22xf32> to vector<2x16x16xf32>
    %371 = vector.broadcast %368 : f32 to vector<2x16x16xf32>
    %372 = arith.mulf %371, %370 : vector<2x16x16xf32>
    %373 = arith.addf %365, %372 : vector<2x16x16xf32>
    %374 = vector.extract_strided_slice %367 {offsets = [0, 0, 0], sizes = [2, 16, 16], strides = [1, 1, 1]} : vector<2x16x22xf32> to vector<2x16x16xf32>
    %375 = vector.broadcast %369 : f32 to vector<2x16x16xf32>
    %376 = arith.mulf %375, %374 : vector<2x16x16xf32>
    %377 = arith.addf %373, %376 : vector<2x16x16xf32>
    %c36 = arith.constant 36 : index
    %378 = memref.load %arg2[%c36] : memref<99xf32, #tpu.memory_space<smem>>
    %c85 = arith.constant 85 : index
    %379 = memref.load %arg2[%c85] : memref<99xf32, #tpu.memory_space<smem>>
    %380 = vector.extract_strided_slice %366 {offsets = [0, 0, 1], sizes = [2, 16, 16], strides = [1, 1, 1]} : vector<2x16x22xf32> to vector<2x16x16xf32>
    %381 = vector.broadcast %378 : f32 to vector<2x16x16xf32>
    %382 = arith.mulf %381, %380 : vector<2x16x16xf32>
    %383 = arith.addf %377, %382 : vector<2x16x16xf32>
    %384 = vector.extract_strided_slice %367 {offsets = [0, 0, 1], sizes = [2, 16, 16], strides = [1, 1, 1]} : vector<2x16x22xf32> to vector<2x16x16xf32>
    %385 = vector.broadcast %379 : f32 to vector<2x16x16xf32>
    %386 = arith.mulf %385, %384 : vector<2x16x16xf32>
    %387 = arith.addf %383, %386 : vector<2x16x16xf32>
    %c37 = arith.constant 37 : index
    %388 = memref.load %arg2[%c37] : memref<99xf32, #tpu.memory_space<smem>>
    %c86 = arith.constant 86 : index
    %389 = memref.load %arg2[%c86] : memref<99xf32, #tpu.memory_space<smem>>
    %390 = vector.extract_strided_slice %366 {offsets = [0, 0, 2], sizes = [2, 16, 16], strides = [1, 1, 1]} : vector<2x16x22xf32> to vector<2x16x16xf32>
    %391 = vector.broadcast %388 : f32 to vector<2x16x16xf32>
    %392 = arith.mulf %391, %390 : vector<2x16x16xf32>
    %393 = arith.addf %387, %392 : vector<2x16x16xf32>
    %394 = vector.extract_strided_slice %367 {offsets = [0, 0, 2], sizes = [2, 16, 16], strides = [1, 1, 1]} : vector<2x16x22xf32> to vector<2x16x16xf32>
    %395 = vector.broadcast %389 : f32 to vector<2x16x16xf32>
    %396 = arith.mulf %395, %394 : vector<2x16x16xf32>
    %397 = arith.addf %393, %396 : vector<2x16x16xf32>
    %c38 = arith.constant 38 : index
    %398 = memref.load %arg2[%c38] : memref<99xf32, #tpu.memory_space<smem>>
    %c87 = arith.constant 87 : index
    %399 = memref.load %arg2[%c87] : memref<99xf32, #tpu.memory_space<smem>>
    %400 = vector.extract_strided_slice %366 {offsets = [0, 0, 3], sizes = [2, 16, 16], strides = [1, 1, 1]} : vector<2x16x22xf32> to vector<2x16x16xf32>
    %401 = vector.broadcast %398 : f32 to vector<2x16x16xf32>
    %402 = arith.mulf %401, %400 : vector<2x16x16xf32>
    %403 = arith.addf %397, %402 : vector<2x16x16xf32>
    %404 = vector.extract_strided_slice %367 {offsets = [0, 0, 3], sizes = [2, 16, 16], strides = [1, 1, 1]} : vector<2x16x22xf32> to vector<2x16x16xf32>
    %405 = vector.broadcast %399 : f32 to vector<2x16x16xf32>
    %406 = arith.mulf %405, %404 : vector<2x16x16xf32>
    %407 = arith.addf %403, %406 : vector<2x16x16xf32>
    %c39 = arith.constant 39 : index
    %408 = memref.load %arg2[%c39] : memref<99xf32, #tpu.memory_space<smem>>
    %c88 = arith.constant 88 : index
    %409 = memref.load %arg2[%c88] : memref<99xf32, #tpu.memory_space<smem>>
    %410 = vector.extract_strided_slice %366 {offsets = [0, 0, 4], sizes = [2, 16, 16], strides = [1, 1, 1]} : vector<2x16x22xf32> to vector<2x16x16xf32>
    %411 = vector.broadcast %408 : f32 to vector<2x16x16xf32>
    %412 = arith.mulf %411, %410 : vector<2x16x16xf32>
    %413 = arith.addf %407, %412 : vector<2x16x16xf32>
    %414 = vector.extract_strided_slice %367 {offsets = [0, 0, 4], sizes = [2, 16, 16], strides = [1, 1, 1]} : vector<2x16x22xf32> to vector<2x16x16xf32>
    %415 = vector.broadcast %409 : f32 to vector<2x16x16xf32>
    %416 = arith.mulf %415, %414 : vector<2x16x16xf32>
    %417 = arith.addf %413, %416 : vector<2x16x16xf32>
    %c40 = arith.constant 40 : index
    %418 = memref.load %arg2[%c40] : memref<99xf32, #tpu.memory_space<smem>>
    %c89 = arith.constant 89 : index
    %419 = memref.load %arg2[%c89] : memref<99xf32, #tpu.memory_space<smem>>
    %420 = vector.extract_strided_slice %366 {offsets = [0, 0, 5], sizes = [2, 16, 16], strides = [1, 1, 1]} : vector<2x16x22xf32> to vector<2x16x16xf32>
    %421 = vector.broadcast %418 : f32 to vector<2x16x16xf32>
    %422 = arith.mulf %421, %420 : vector<2x16x16xf32>
    %423 = arith.addf %417, %422 : vector<2x16x16xf32>
    %424 = vector.extract_strided_slice %367 {offsets = [0, 0, 5], sizes = [2, 16, 16], strides = [1, 1, 1]} : vector<2x16x22xf32> to vector<2x16x16xf32>
    %425 = vector.broadcast %419 : f32 to vector<2x16x16xf32>
    %426 = arith.mulf %425, %424 : vector<2x16x16xf32>
    %427 = arith.addf %423, %426 : vector<2x16x16xf32>
    %c41 = arith.constant 41 : index
    %428 = memref.load %arg2[%c41] : memref<99xf32, #tpu.memory_space<smem>>
    %c90 = arith.constant 90 : index
    %429 = memref.load %arg2[%c90] : memref<99xf32, #tpu.memory_space<smem>>
    %430 = vector.extract_strided_slice %366 {offsets = [0, 0, 6], sizes = [2, 16, 16], strides = [1, 1, 1]} : vector<2x16x22xf32> to vector<2x16x16xf32>
    %431 = vector.broadcast %428 : f32 to vector<2x16x16xf32>
    %432 = arith.mulf %431, %430 : vector<2x16x16xf32>
    %433 = arith.addf %427, %432 : vector<2x16x16xf32>
    %434 = vector.extract_strided_slice %367 {offsets = [0, 0, 6], sizes = [2, 16, 16], strides = [1, 1, 1]} : vector<2x16x22xf32> to vector<2x16x16xf32>
    %435 = vector.broadcast %429 : f32 to vector<2x16x16xf32>
    %436 = arith.mulf %435, %434 : vector<2x16x16xf32>
    %437 = arith.addf %433, %436 : vector<2x16x16xf32>
    %438 = vector.extract_strided_slice %1 {offsets = [0, 6, 0], sizes = [2, 16, 22], strides = [1, 1, 1]} : vector<2x22x22xf32> to vector<2x16x22xf32>
    %439 = vector.extract_strided_slice %4 {offsets = [0, 6, 0], sizes = [2, 16, 22], strides = [1, 1, 1]} : vector<2x22x22xf32> to vector<2x16x22xf32>
    %c42 = arith.constant 42 : index
    %440 = memref.load %arg2[%c42] : memref<99xf32, #tpu.memory_space<smem>>
    %c91 = arith.constant 91 : index
    %441 = memref.load %arg2[%c91] : memref<99xf32, #tpu.memory_space<smem>>
    %442 = vector.extract_strided_slice %438 {offsets = [0, 0, 0], sizes = [2, 16, 16], strides = [1, 1, 1]} : vector<2x16x22xf32> to vector<2x16x16xf32>
    %443 = vector.broadcast %440 : f32 to vector<2x16x16xf32>
    %444 = arith.mulf %443, %442 : vector<2x16x16xf32>
    %445 = arith.addf %437, %444 : vector<2x16x16xf32>
    %446 = vector.extract_strided_slice %439 {offsets = [0, 0, 0], sizes = [2, 16, 16], strides = [1, 1, 1]} : vector<2x16x22xf32> to vector<2x16x16xf32>
    %447 = vector.broadcast %441 : f32 to vector<2x16x16xf32>
    %448 = arith.mulf %447, %446 : vector<2x16x16xf32>
    %449 = arith.addf %445, %448 : vector<2x16x16xf32>
    %c43 = arith.constant 43 : index
    %450 = memref.load %arg2[%c43] : memref<99xf32, #tpu.memory_space<smem>>
    %c92 = arith.constant 92 : index
    %451 = memref.load %arg2[%c92] : memref<99xf32, #tpu.memory_space<smem>>
    %452 = vector.extract_strided_slice %438 {offsets = [0, 0, 1], sizes = [2, 16, 16], strides = [1, 1, 1]} : vector<2x16x22xf32> to vector<2x16x16xf32>
    %453 = vector.broadcast %450 : f32 to vector<2x16x16xf32>
    %454 = arith.mulf %453, %452 : vector<2x16x16xf32>
    %455 = arith.addf %449, %454 : vector<2x16x16xf32>
    %456 = vector.extract_strided_slice %439 {offsets = [0, 0, 1], sizes = [2, 16, 16], strides = [1, 1, 1]} : vector<2x16x22xf32> to vector<2x16x16xf32>
    %457 = vector.broadcast %451 : f32 to vector<2x16x16xf32>
    %458 = arith.mulf %457, %456 : vector<2x16x16xf32>
    %459 = arith.addf %455, %458 : vector<2x16x16xf32>
    %c44 = arith.constant 44 : index
    %460 = memref.load %arg2[%c44] : memref<99xf32, #tpu.memory_space<smem>>
    %c93 = arith.constant 93 : index
    %461 = memref.load %arg2[%c93] : memref<99xf32, #tpu.memory_space<smem>>
    %462 = vector.extract_strided_slice %438 {offsets = [0, 0, 2], sizes = [2, 16, 16], strides = [1, 1, 1]} : vector<2x16x22xf32> to vector<2x16x16xf32>
    %463 = vector.broadcast %460 : f32 to vector<2x16x16xf32>
    %464 = arith.mulf %463, %462 : vector<2x16x16xf32>
    %465 = arith.addf %459, %464 : vector<2x16x16xf32>
    %466 = vector.extract_strided_slice %439 {offsets = [0, 0, 2], sizes = [2, 16, 16], strides = [1, 1, 1]} : vector<2x16x22xf32> to vector<2x16x16xf32>
    %467 = vector.broadcast %461 : f32 to vector<2x16x16xf32>
    %468 = arith.mulf %467, %466 : vector<2x16x16xf32>
    %469 = arith.addf %465, %468 : vector<2x16x16xf32>
    %c45 = arith.constant 45 : index
    %470 = memref.load %arg2[%c45] : memref<99xf32, #tpu.memory_space<smem>>
    %c94 = arith.constant 94 : index
    %471 = memref.load %arg2[%c94] : memref<99xf32, #tpu.memory_space<smem>>
    %472 = vector.extract_strided_slice %438 {offsets = [0, 0, 3], sizes = [2, 16, 16], strides = [1, 1, 1]} : vector<2x16x22xf32> to vector<2x16x16xf32>
    %473 = vector.broadcast %470 : f32 to vector<2x16x16xf32>
    %474 = arith.mulf %473, %472 : vector<2x16x16xf32>
    %475 = arith.addf %469, %474 : vector<2x16x16xf32>
    %476 = vector.extract_strided_slice %439 {offsets = [0, 0, 3], sizes = [2, 16, 16], strides = [1, 1, 1]} : vector<2x16x22xf32> to vector<2x16x16xf32>
    %477 = vector.broadcast %471 : f32 to vector<2x16x16xf32>
    %478 = arith.mulf %477, %476 : vector<2x16x16xf32>
    %479 = arith.addf %475, %478 : vector<2x16x16xf32>
    %c46 = arith.constant 46 : index
    %480 = memref.load %arg2[%c46] : memref<99xf32, #tpu.memory_space<smem>>
    %c95 = arith.constant 95 : index
    %481 = memref.load %arg2[%c95] : memref<99xf32, #tpu.memory_space<smem>>
    %482 = vector.extract_strided_slice %438 {offsets = [0, 0, 4], sizes = [2, 16, 16], strides = [1, 1, 1]} : vector<2x16x22xf32> to vector<2x16x16xf32>
    %483 = vector.broadcast %480 : f32 to vector<2x16x16xf32>
    %484 = arith.mulf %483, %482 : vector<2x16x16xf32>
    %485 = arith.addf %479, %484 : vector<2x16x16xf32>
    %486 = vector.extract_strided_slice %439 {offsets = [0, 0, 4], sizes = [2, 16, 16], strides = [1, 1, 1]} : vector<2x16x22xf32> to vector<2x16x16xf32>
    %487 = vector.broadcast %481 : f32 to vector<2x16x16xf32>
    %488 = arith.mulf %487, %486 : vector<2x16x16xf32>
    %489 = arith.addf %485, %488 : vector<2x16x16xf32>
    %c47 = arith.constant 47 : index
    %490 = memref.load %arg2[%c47] : memref<99xf32, #tpu.memory_space<smem>>
    %c96 = arith.constant 96 : index
    %491 = memref.load %arg2[%c96] : memref<99xf32, #tpu.memory_space<smem>>
    %492 = vector.extract_strided_slice %438 {offsets = [0, 0, 5], sizes = [2, 16, 16], strides = [1, 1, 1]} : vector<2x16x22xf32> to vector<2x16x16xf32>
    %493 = vector.broadcast %490 : f32 to vector<2x16x16xf32>
    %494 = arith.mulf %493, %492 : vector<2x16x16xf32>
    %495 = arith.addf %489, %494 : vector<2x16x16xf32>
    %496 = vector.extract_strided_slice %439 {offsets = [0, 0, 5], sizes = [2, 16, 16], strides = [1, 1, 1]} : vector<2x16x22xf32> to vector<2x16x16xf32>
    %497 = vector.broadcast %491 : f32 to vector<2x16x16xf32>
    %498 = arith.mulf %497, %496 : vector<2x16x16xf32>
    %499 = arith.addf %495, %498 : vector<2x16x16xf32>
    %c48 = arith.constant 48 : index
    %500 = memref.load %arg2[%c48] : memref<99xf32, #tpu.memory_space<smem>>
    %c97 = arith.constant 97 : index
    %501 = memref.load %arg2[%c97] : memref<99xf32, #tpu.memory_space<smem>>
    %502 = vector.extract_strided_slice %438 {offsets = [0, 0, 6], sizes = [2, 16, 16], strides = [1, 1, 1]} : vector<2x16x22xf32> to vector<2x16x16xf32>
    %503 = vector.broadcast %500 : f32 to vector<2x16x16xf32>
    %504 = arith.mulf %503, %502 : vector<2x16x16xf32>
    %505 = arith.addf %499, %504 : vector<2x16x16xf32>
    %506 = vector.extract_strided_slice %439 {offsets = [0, 0, 6], sizes = [2, 16, 16], strides = [1, 1, 1]} : vector<2x16x22xf32> to vector<2x16x16xf32>
    %507 = vector.broadcast %501 : f32 to vector<2x16x16xf32>
    %508 = arith.mulf %507, %506 : vector<2x16x16xf32>
    %509 = arith.addf %505, %508 : vector<2x16x16xf32>
    %c98 = arith.constant 98 : index
    %510 = memref.load %arg2[%c98] : memref<99xf32, #tpu.memory_space<smem>>
    %511 = vector.broadcast %510 : f32 to vector<2x16x16xf32>
    %512 = arith.addf %509, %511 : vector<2x16x16xf32>
    %cst_7 = arith.constant 0.000000e+00 : f32
    %513 = vector.broadcast %cst_7 : f32 to vector<2x16x16xf32>
    %514 = arith.subf %513, %512 : vector<2x16x16xf32>
    %515 = math.exp %514 : vector<2x16x16xf32>
    %cst_8 = arith.constant 1.000000e+00 : f32
    %516 = vector.broadcast %cst_8 : f32 to vector<2x16x16xf32>
    %517 = arith.addf %516, %515 : vector<2x16x16xf32>
    %cst_9 = arith.constant 1.000000e+00 : f32
    %518 = vector.broadcast %cst_9 : f32 to vector<2x16x16xf32>
    %519 = arith.divf %518, %517 : vector<2x16x16xf32>
    %c0_10 = arith.constant 0 : index
    %c0_11 = arith.constant 0 : index
    %c0_12 = arith.constant 0 : index
    %520 = vector.load %arg3[%c0_10, %c0_11, %c0_12] : memref<2x16x16xf32, #tpu.memory_space<vmem>>, vector<2x16x16xf32>
    tpu.vector_store %arg3[%c0_10, %c0_11, %c0_12], %519 {strides = array<i32>} : memref<2x16x16xf32, #tpu.memory_space<vmem>>, vector<2x16x16xf32>,
    return
  }
  func.func @transform_0(%arg0: i32) -> (i32, i32, i32, i32) {
    %c0_i32 = arith.constant 0 : i32
    %c0_i32_0 = arith.constant 0 : i32
    %c0_i32_1 = arith.constant 0 : i32
    %c0_i32_2 = arith.constant 0 : i32
    return %arg0, %c0_i32, %c0_i32_0, %c0_i32_1 : i32, i32, i32, i32
  }
  func.func @transform_1(%arg0: i32) -> i32 {
    %c0_i32 = arith.constant 0 : i32
    %c0_i32_0 = arith.constant 0 : i32
    return %c0_i32 : i32
  }
  func.func @transform_2(%arg0: i32) -> (i32, i32, i32) {
    %c0_i32 = arith.constant 0 : i32
    %c0_i32_0 = arith.constant 0 : i32
    %c0_i32_1 = arith.constant 0 : i32
    return %arg0, %c0_i32, %c0_i32_0 : i32, i32, i32
  }
}

</mosaic_0001>

<bundles_post_ra>
// kernel: tpu_custom_call.1
= control target key start
LH: loop header
LB: loop body
LE: loop exit
PB: predicated region body
PF: predicated region fallthrough
CT: control target
= control target key end

     0   :  { %7 = vsyncpa [#allocation4], 0  ;;  %s6523_s0 = inlined_call_operand.vmem [shape: f32[2,4,22,22], index: 0, kind: input, shape index: {}]   ;;  %s6524_s1 = inlined_call_operand.vmem [shape: f32[99], index: 1, kind: input, shape index: {}]   ;;  %s6525_s2 = inlined_call_operand.hbm [shape: f32[2,16,16], index: 2, kind: output, shape index: {}]  }
   0x1   :  { %8 = vsyncpa [#allocation3], 0  ;;  %s16_s11 = sshll.u32 %s6524_s1, 4  ;;  %s4013_s12 = smov [#allocation2]   ;;  %s17_s11 = int_to_ptr.vmem [resolvable:$true] %s16_s11 }
   0x2   :  { %19 = dma.vmem_to_smem %s17_s11, 16, %s4013_s12, [#allocation4]  }
   0x3   :  { %4009 = dma.done.wait [#allocation4], 16  }
   0x4   :  { %4010 = vsyncadd [#allocation4], 4294967280 }
   0x5   :  { %24 = sfence }
   0x6   :  { %v37_v0 = vld [vmem:[%s6523_s0 + $0x60] sm:$0xff]  ;;  %v40_v1 = vld [vmem:[%s6523_s0 + $0x78] sm:$0xff]  ;;  %v43_v2 = vld [vmem:[%s6523_s0 + $0x90] sm:$0xff]  ;;  %vm49_vm0 = vcmask 179200   ;;  %s4050_s1 = sld [smem:[#allocation2 + $0x1]]  ;;  %s4014_s18 = smov 127  }
   0x7   :  { %v46_v3 = vld [vmem:[%s6523_s0 + $0xa8] sm:$0xff]  ;;  %v72_v4 = vsel %vm49_vm0, %v37_v0, -inf  ;;  %v73_v5 = vsel %vm49_vm0, %v40_v1, -inf  ;;  %v75_v6 = vsel %vm49_vm0, %v43_v2, -inf  ;;  %v114_v9 = vsel %vm49_vm0, %v37_v0, 0.0  ;;  %v25_v11 = vld [vmem:[%s6523_s0] sm:$0xff] }
   0x8   :  { %v74_v7 = vmax.f32 %v72_v4, %v73_v5  ;;  %v77_v8 = vsel %vm49_vm0, %v46_v3, -inf  ;;  %v115_v10 = vsel %vm49_vm0, %v40_v1, 0.0  ;;  %v28_v12 = vld [vmem:[%s6523_s0 + $0x18] sm:$0xff]  ;;  %v31_v13 = vld [vmem:[%s6523_s0 + $0x30] sm:$0xff]  ;;  %v117_v14 = vsel %vm49_vm0, %v43_v2, 0.0  ;;  %v34_v15 = vld [vmem:[%s6523_s0 + $0x48] sm:$0xff] }
   0x9   :  { %v50_v16 = vsel %vm49_vm0, %v25_v11, -inf  ;;  %v51_v17 = vsel %vm49_vm0, %v28_v12, -inf  ;;  %v53_v18 = vsel %vm49_vm0, %v31_v13, -inf  ;;  %v38_v19 = vld [vmem:[%s6523_s0 + $0x68] sm:$0xff]  ;;  %v55_v22 = vsel %vm49_vm0, %v34_v15, -inf  ;;  %v41_v23 = vld [vmem:[%s6523_s0 + $0x80] sm:$0xff] }
   0xa   :  { %v76_v20 = vmax.f32 %v74_v7, %v75_v6  ;;  %v52_v21 = vmax.f32 %v50_v16, %v51_v17  ;;  %v44_v24 = vld [vmem:[%s6523_s0 + $0x98] sm:$0xff]  ;;  %v47_v25 = vld [vmem:[%s6523_s0 + $0xb0] sm:$0xff]  ;;  %v79_v26 = vsel %vm49_vm0, %v38_v19, -inf  ;;  %v80_v27 = vsel %vm49_vm0, %v41_v23, -inf  ;;  %v26_v30 = vld [vmem:[%s6523_s0 + $0x8] sm:$0xff]  ;;  %s4112_s17 = sld [smem:[#allocation2 + $0x32]] }
   0xb   :  { %v82_v28 = vsel %vm49_vm0, %v44_v24, -inf  ;;  %v84_v29 = vsel %vm49_vm0, %v47_v25, -inf  ;;  %v29_v31 = vld [vmem:[%s6523_s0 + $0x20] sm:$0xff]  ;;  %v32_v32 = vld [vmem:[%s6523_s0 + $0x38] sm:$0xff]  ;;  %v81_v36 = vmax.f32 %v79_v26, %v80_v27  ;;  %v35_v37 = vld [vmem:[%s6523_s0 + $0x50] sm:$0xff]  ;;  %v57_v38 = vsel %vm49_vm0, %v26_v30, -inf }
   0xc   :  { %v4103_v33 = vmax.f32 %v76_v20, %v77_v8  ;;  %v163_v34 = vstv %s4050_s1  ;;  %v54_v35 = vmax.f32 %v52_v21, %v53_v18  ;;  %v58_v39 = vsel %vm49_vm0, %v29_v31, -inf  ;;  %s3852_s1 = sld [smem:[#allocation2 + $0x2]]  ;;  %s4015_s20 = smov 126  }
   0xd   :  { %v60_v40 = vsel %vm49_vm0, %v32_v32, -inf  ;;  %v116_v41 = vadd.f32 %v115_v10, %v114_v9  ;;  %v83_v44 = vmax.f32 %v81_v36, %v82_v28  ;;  %v59_v45 = vmax.f32 %v57_v38, %v58_v39  ;;  %s3853_s19 = sld [smem:[#allocation2 + $0x33]]  ;;  %s4016_s22 = smov 125  }
   0xe   :  { %v166_v42 = vmul.f32 %v163_v34, %v4103_v33  ;;  %v4115_v43 = vmax.f32 %v54_v35, %v55_v22  ;;  %v62_v46 = vsel %vm49_vm0, %v35_v37, -inf  ;;  %v93_v47 = vsel %vm49_vm0, %v25_v11, 0.0  ;;  %s3854_s21 = sld [smem:[#allocation2 + $0x3]]  ;;  %s4017_s26 = smov 124  }
   0xf   :  { %v94_v48 = vsel %vm49_vm0, %v28_v12, 0.0  ;;  %v96_v49 = vsel %vm49_vm0, %v31_v13, 0.0  ;;  %v4123_v51 = vmax.f32 %v83_v44, %v84_v29  ;;  %v61_v52 = vmax.f32 %v59_v45, %v60_v40  ;;  %s3855_s23 = sld [smem:[#allocation2 + $0x34]]  ;;  %s4018_s29 = smov 123  }
  0x10   :  { %176 = vrot.lane.b32.xlu1 %v166_v42, %s4014_s18  ;;  %v164_v50 = vmul.f32 %v163_v34, %v4115_v43  ;;  %v95_v53 = vadd.f32 %v94_v48, %v93_v47  ;;  %v119_v54 = vsel %vm49_vm0, %v46_v3, 0.0  ;;  %v98_v55 = vsel %vm49_vm0, %v34_v15, 0.0  ;;  %s3856_s24 = sld [smem:[#allocation2 + $0x4]]  ;;  %s4019_s9 = smov 122  }
  0x11   :  { %v121_v56 = vsel %vm49_vm0, %v38_v19, 0.0  ;;  %v122_v57 = vsel %vm49_vm0, %v41_v23, 0.0  ;;  %v4130_v58 = vmax.f32 %v61_v52, %v62_v46  ;;  %v124_v60 = vsel %vm49_vm0, %v44_v24, 0.0  ;;  %s3857_s25 = sld [smem:[#allocation2 + $0x35]] }
  0x12   :  { %172 = vrot.lane.b32.xlu0 %v164_v50, %s4014_s18  ;;  %v97_v59 = vadd.f32 %v96_v49, %v95_v53  ;;  %v126_v61 = vsel %vm49_vm0, %v47_v25, 0.0  ;;  %v123_v62 = vadd.f32 %v122_v57, %v121_v56  ;;  %v118_v63 = vadd.f32 %v117_v14, %v116_v41  ;;  %s3858_s27 = sld [smem:[#allocation2 + $0x5]] }
  0x13   :  { %v100_v0 = vsel %vm49_vm0, %v26_v30, 0.0  ;;  %v101_v1 = vsel %vm49_vm0, %v29_v31, 0.0  ;;  %v167_v2 = vmul.f32 %v163_v34, %v4123_v51  ;;  %v103_v5 = vsel %vm49_vm0, %v32_v32, 0.0  ;;  %s3859_s28 = sld [smem:[#allocation2 + $0x36]] }
  0x14   :  { %v99_v3 = vadd.f32 %v98_v55, %v97_v59  ;;  %v102_v4 = vadd.f32 %v101_v1, %v100_v0  ;;  %v188_v6 = vstv %s4112_s17  ;;  %v125_v7 = vadd.f32 %v124_v60, %v123_v62  ;;  %s3860_s30 = sld [smem:[#allocation2 + $0x6]]  ;;  %v27_v1 = vld [vmem:[%s6523_s0 + $0x10] sm:$0x3f] }
  0x15   :  { %v105_v8 = vsel %vm49_vm0, %v35_v37, 0.0  ;;  %v165_v9 = vmul.f32 %v163_v34, %v4130_v58  ;;  %v120_v11 = vadd.f32 %v119_v54, %v118_v63  ;;  %v215_v22 = vstv %s3852_s1  ;;  %s3861_s10 = sld [smem:[#allocation2 + $0x37]] }
  0x16   :  { %v4141_v10 = vmul.f32 0.25, %v99_v3  ;;  %v104_v12 = vadd.f32 %v103_v5, %v102_v4  ;;  %v127_v13 = vadd.f32 %v126_v61, %v125_v7  ;;  %v218_v23 = vmul.f32 %v215_v22, %v4103_v33  ;;  %s3864_s11 = sld [smem:[#allocation2 + $0x8]] }
  0x17   :  { %v4149_v17 = vmul.f32 0.25, %v120_v11  ;;  %v217_v24 = vmul.f32 %v215_v22, %v4130_v58  ;;  %v216_v25 = vmul.f32 %v215_v22, %v4115_v43  ;;  %v240_v26 = vstv %s3853_s19  ;;  %s3871_s3 = sld [smem:[#allocation2 + $0x3c]] }
  0x18   :  { %178 = vrot.lane.b32.xlu1 %v167_v2, %s4014_s18  ;;  %v189_v14 = vmul.f32 %v188_v6, %v4141_v10  ;;  %v106_v15 = vadd.f32 %v105_v8, %v104_v12  ;;  %v4145_v16 = vmul.f32 0.25, %v127_v13  ;;  %v241_v28 = vmul.f32 %v240_v26, %v4141_v10  ;;  %v30_v2 = vld [vmem:[%s6523_s0 + $0x28] sm:$0x3f]  ;;  %v36_v13 = vld [vmem:[%s6523_s0 + $0x58] sm:$0x3f]  ;;  %s3872_s4 = sld [smem:[#allocation2 + $0xc]] }
  0x19   :  { %v191_v20 = vmul.f32 %v188_v6, %v4149_v17  ;;  %v219_v29 = vmul.f32 %v215_v22, %v4123_v51  ;;  %v267_v30 = vstv %s3854_s21  ;;  %v243_v34 = vmul.f32 %v240_v26, %v4149_v17  ;;  %s4266_s21 = sld [smem:[#allocation2 + $0x39]] }
  0x1a   :  { %174 = vrot.lane.b32.xlu0 %v165_v9, %s4014_s18  ;;  %197 = vrot.lane.b32.xlu2 %v189_v14, %s4014_s18  ;;  %v4151_v18 = vmul.f32 0.25, %v106_v15  ;;  %v192_v19 = vmul.f32 %v188_v6, %v4145_v16  ;;  %v268_v31 = vmul.f32 %v267_v30, %v4115_v43  ;;  %v244_v32 = vmul.f32 %v240_v26, %v4145_v16  ;;  %v33_v9 = vld [vmem:[%s6523_s0 + $0x40] sm:$0x3f]  ;;  %s3873_s5 = sld [smem:[#allocation2 + $0x3d]] }
  0x1b   :  { %v271_v35 = vmul.f32 %v267_v30, %v4123_v51  ;;  %v270_v36 = vmul.f32 %v267_v30, %v4103_v33  ;;  %v269_v37 = vmul.f32 %v267_v30, %v4130_v58  ;;  %v292_v38 = vstv %s3855_s23  ;;  %s3874_s6 = sld [smem:[#allocation2 + $0xd]] }
  0x1c   :  { %v190_v21 = vmul.f32 %v188_v6, %v4151_v18  ;;  %v242_v27 = vmul.f32 %v240_v26, %v4151_v18  ;;  %v295_v39 = vmul.f32 %v292_v38, %v4149_v17  ;;  %v294_v40 = vmul.f32 %v292_v38, %v4151_v18  ;;  %s3875_s7 = sld [smem:[#allocation2 + $0x3e]] }
  0x1d   :  { %v293_v41 = vmul.f32 %v292_v38, %v4141_v10  ;;  %v319_v42 = vstv %s3856_s24  ;;  %v296_v46 = vmul.f32 %v292_v38, %v4145_v16  ;;  %v344_v47 = vstv %s3857_s25  ;;  %s3867_s25 = sld [smem:[#allocation2 + $0x3a]] }
  0x1e   :  { %v321_v44 = vmul.f32 %v319_v42, %v4130_v58  ;;  %v320_v45 = vmul.f32 %v319_v42, %v4115_v43  ;;  %v345_v48 = vmul.f32 %v344_v47, %v4141_v10  ;;  %v323_v49 = vmul.f32 %v319_v42, %v4123_v51  ;;  %s3878_s8 = sld [smem:[#allocation2 + $0xf]] }
  0x1f   :  { %v322_v50 = vmul.f32 %v319_v42, %v4103_v33  ;;  %v348_v52 = vmul.f32 %v344_v47, %v4145_v16  ;;  %v347_v53 = vmul.f32 %v344_v47, %v4149_v17  ;;  %v346_v54 = vmul.f32 %v344_v47, %v4151_v18  ;;  %s3881_s12 = sld [smem:[#allocation2 + $0x41]] }
  0x20   :  { %203 = vrot.lane.b32.xlu1 %v192_v19, %s4014_s18  ;;  %v371_v55 = vstv %s3858_s27  ;;  %v396_v60 = vstv %s3859_s28  ;;  %v423_v0 = vstv %s3860_s30  ;;  %vm64_vm1 = vcmask 177152   ;;  %s3868_s27 = sld [smem:[#allocation2 + $0xa]] }
  0x21   :  { %v374_v56 = vmul.f32 %v371_v55, %v4103_v33  ;;  %v373_v57 = vmul.f32 %v371_v55, %v4130_v58  ;;  %v372_v59 = vmul.f32 %v371_v55, %v4115_v43  ;;  %v398_v61 = vmul.f32 %v396_v60, %v4151_v18  ;;  %s3869_s28 = sld [smem:[#allocation2 + $0x3b]] }
  0x22   :  { %201 = vrot.lane.b32.xlu0 %v191_v20, %s4014_s18  ;;  %199 = vrot.lane.b32.xlu2 %v190_v21, %s4014_s18  ;;  %v397_v62 = vmul.f32 %v396_v60, %v4141_v10  ;;  %v375_v63 = vmul.f32 %v371_v55, %v4123_v51  ;;  %v424_v4 = vmul.f32 %v423_v0, %v4115_v43  ;;  %v65_v7 = vsel %vm64_vm1, %v27_v1, -inf  ;;  %v39_v20 = vld [vmem:[%s6523_s0 + $0x70] sm:$0x3f]  ;;  %v42_v21 = vld [vmem:[%s6523_s0 + $0x88] sm:$0x3f]  ;;  %s3870_s30 = sld [smem:[#allocation2 + $0xb]] }
  0x23   :  { %v400_v5 = vmul.f32 %v396_v60, %v4145_v16  ;;  %v399_v6 = vmul.f32 %v396_v60, %v4149_v17  ;;  %v66_v8 = vsel %vm64_vm1, %v30_v2, -inf  ;;  %v68_v12 = vsel %vm64_vm1, %v33_v9, -inf  ;;  %s3882_s13 = sld [smem:[#allocation2 + $0x11]] }
  0x24   :  { %v67_v11 = vmax.f32 %v65_v7, %v66_v8  ;;  %v427_v15 = vmul.f32 %v423_v0, %v4123_v51  ;;  %v426_v22 = vmul.f32 %v423_v0, %v4103_v33  ;;  %v87_v26 = vsel %vm64_vm1, %v42_v21, -inf  ;;  %s3883_s14 = sld [smem:[#allocation2 + $0x42]] }
  0x25   :  { %v110_v55 = vsel %vm64_vm1, %v33_v9, 0.0  ;;  %vm488_vm2 = vcmask 1046528   ;;  %vm1033_vm3 = vcmask 1045504   ;;  %s3884_s15 = sld [smem:[#allocation2 + $0x12]]  ;;  %vm1578_vm4 = vcmask 1044480  }
  0x26   :  { %v69_v19 = vmax.f32 %v67_v11, %v68_v12  ;;  %s3885_s16 = sld [smem:[#allocation2 + $0x43]]  ;;  %vm2123_vm5 = vcmask 1043456   ;;  %vm2668_vm6 = vcmask 1042432   ;;  %vm3213_vm7 = vcmask 1041408  }
  0x27   :  { %s3886_s17 = sld [smem:[#allocation2 + $0x13]]  ;;  %vm3825_vm11 = vcmask 130048  }
  0x28   :  { %228 = vrot.lane.b32.xlu1 %v218_v23, %s4015_s20  ;;  %v425_v23 = vmul.f32 %v423_v0, %v4130_v58  ;;  %s3887_s1 = sld [smem:[#allocation2 + $0x44]] }
  0x29   :  { %s3888_s19 = sld [smem:[#allocation2 + $0x14]] }
  0x2a   :  { %226 = vrot.lane.b32.xlu0 %v217_v24, %s4015_s20  ;;  %224 = vrot.lane.b32.xlu2 %v216_v25, %s4015_s20  ;;  %v70_v24 = vsel %vm64_vm1, %v36_v13, -inf  ;;  %v86_v25 = vsel %vm64_vm1, %v39_v20, -inf  ;;  %s3892_s23 = sld [smem:[#allocation2 + $0x16]] }
  0x2b   :  { %s3893_s24 = sld [smem:[#allocation2 + $0x47]] }
  0x30   :  { %251 = vrot.lane.b32.xlu1 %v242_v27, %s4015_s20  ;;  %v448_v27 = vstv %s3861_s10  ;;  %s3879_s10 = sld [smem:[#allocation2 + $0x40]] }
  0x31   :  { %v451_v38 = vmul.f32 %v448_v27, %v4149_v17  ;;  %v450_v47 = vmul.f32 %v448_v27, %v4151_v18  ;;  %v452_v12 = vmul.f32 %v448_v27, %v4145_v16 }
  0x32   :  { %249 = vrot.lane.b32.xlu0 %v241_v28, %s4015_s20  ;;  %230 = vrot.lane.b32.xlu2 %v219_v29, %s4015_s20  ;;  %v4257_v28 = vmax.f32 %v69_v19, %v70_v24  ;;  %v45_v29 = vld [vmem:[%s6523_s0 + $0xa0] sm:$0x3f] }
  0x38   :  { %276 = vrot.lane.b32.xlu1 %v268_v31, %s4016_s22  ;;  %v540_v31 = vstv %s3864_s11  ;;  %s3880_s11 = sld [smem:[#allocation2 + $0x10]] }
  0x39   :  { %v542_v42 = vmul.f32 %v540_v31, %v4130_v58 }
  0x3a   :  { %255 = vrot.lane.b32.xlu0 %v244_v32, %s4015_s20  ;;  %253 = vrot.lane.b32.xlu2 %v243_v34, %s4015_s20  ;;  %v128_v32 = vsel %vm64_vm1, %v39_v20, 0.0  ;;  %v129_v34 = vsel %vm64_vm1, %v42_v21, 0.0  ;;  %v544_v20 = vmul.f32 %v540_v31, %v4103_v33 }
  0x40   :  { %282 = vrot.lane.b32.xlu1 %v271_v35, %s4016_s22  ;;  %v88_v35 = vmax.f32 %v86_v25, %v87_v26 }
  0x42   :  { %280 = vrot.lane.b32.xlu0 %v270_v36, %s4016_s22  ;;  %278 = vrot.lane.b32.xlu2 %v269_v37, %s4016_s22 }
  0x48   :  { %305 = vrot.lane.b32.xlu1 %v295_v39, %s4016_s22  ;;  %v89_v39 = vsel %vm64_vm1, %v45_v29, -inf }
  0x4a   :  { %303 = vrot.lane.b32.xlu0 %v294_v40, %s4016_s22  ;;  %301 = vrot.lane.b32.xlu2 %v293_v41, %s4016_s22  ;;  %v107_v40 = vsel %vm64_vm1, %v27_v1, 0.0  ;;  %v108_v41 = vsel %vm64_vm1, %v30_v2, 0.0 }
  0x50   :  { %330 = vrot.lane.b32.xlu1 %v321_v44, %s4017_s26  ;;  %v543_v44 = vmul.f32 %v540_v31, %v4257_v28 }
  0x52   :  { %328 = vrot.lane.b32.xlu0 %v320_v45, %s4017_s26  ;;  %307 = vrot.lane.b32.xlu2 %v296_v46, %s4016_s22  ;;  %v48_v45 = vld [vmem:[%s6523_s0 + $0xb8] sm:$0x3f]  ;;  %v130_v46 = vadd.f32 %v129_v34, %v128_v32  ;;  %s3866_s0 = sld [smem:[#allocation2 + $0x9]] }
  0x58   :  { %353 = vrot.lane.b32.xlu1 %v345_v48, %s4017_s26  ;;  %v541_v48 = vmul.f32 %v540_v31, %v4115_v43 }
  0x5a   :  { %334 = vrot.lane.b32.xlu0 %v323_v49, %s4017_s26  ;;  %332 = vrot.lane.b32.xlu2 %v322_v50, %s4017_s26  ;;  %v449_v49 = vmul.f32 %v448_v27, %v4141_v10  ;;  %v131_v50 = vsel %vm64_vm1, %v45_v29, 0.0  ;;  %v558_v27 = vrot.slane %v544_v20, 1 }
  0x60   :  { %359 = vrot.lane.b32.xlu1 %v348_v52, %s4017_s26  ;;  %v90_v52 = vmax.f32 %v88_v35, %v89_v39 }
  0x62   :  { %357 = vrot.lane.b32.xlu0 %v347_v53, %s4017_s26  ;;  %355 = vrot.lane.b32.xlu2 %v346_v54, %s4017_s26  ;;  %v109_v53 = vadd.f32 %v108_v41, %v107_v40  ;;  %v91_v54 = vsel %vm64_vm1, %v48_v45, -inf }
  0x63   :  { %v4296_v0 = vmax.f32 %v90_v52, %v91_v54 }
  0x64   :  { %v111_v1 = vadd.f32 %v110_v55, %v109_v53 }
  0x65   :  { %v546_v19 = vmul.f32 %v540_v31, %v4296_v0 }
  0x67   :  { %v561_v26 = vrot.slane %v546_v19, 1 }
  0x68   :  { %384 = vrot.lane.b32.xlu1 %v374_v56, %s4018_s29  ;;  %v554_v56 = vrot.slane %v542_v42, 1 }
  0x6a   :  { %382 = vrot.lane.b32.xlu0 %v373_v57, %s4018_s29  ;;  %380 = vrot.lane.b32.xlu2 %v372_v59, %s4018_s29  ;;  %v556_v57 = vrot.slane %v543_v44, 1  ;;  %v132_v59 = vadd.f32 %v131_v50, %v130_v46 }
  0x70   :  { %407 = vrot.lane.b32.xlu1 %v398_v61, %s4018_s29  ;;  %v553_v61 = vrot.slane %v541_v48, 1  ;;  %v620_v48 = vstv %s3866_s0  ;;  %s3894_s0 = sld [smem:[#allocation2 + $0x17]] }
  0x71   :  { %v624_v54 = vmul.f32 %v620_v48, %v4103_v33  ;;  %v625_v55 = vmul.f32 %v620_v48, %v4123_v51 }
  0x72   :  { %405 = vrot.lane.b32.xlu0 %v397_v62, %s4018_s29  ;;  %386 = vrot.lane.b32.xlu2 %v375_v63, %s4018_s29  ;;  %v579_v62 = vstv %s4266_s21  ;;  %v133_v63 = vsel %vm64_vm1, %v48_v45, 0.0  ;;  %v555_v11 = vsel %vm488_vm2, %v553_v61, %v554_v56  ;;  %s3889_s21 = sld [smem:[#allocation2 + $0x45]] }
  0x73   :  { %v580_v7 = vmul.f32 %v579_v62, %v4141_v10  ;;  %v581_v8 = vmul.f32 %v579_v62, %v4151_v18  ;;  %v134_v9 = vadd.f32 %v133_v63, %v132_v59  ;;  %v584_v35 = vmul.f32 %v579_v62, %v4145_v16 }
  0x74   :  { %v4225_v3 = vpop.permute.xlu2 %197  ;;  %v583_v39 = vmul.f32 %v579_v62, %v4149_v17  ;;  %v623_v59 = vmul.f32 %v620_v48, %v4257_v28  ;;  %v638_v63 = vrot.slane %v624_v54, 1 }
  0x75   :  { %v598_v44 = vrot.slane %v584_v35, 1 }
  0x78   :  { %432 = vrot.lane.b32.xlu1 %v424_v4, %s4019_s9 }
  0x7a   :  { %411 = vrot.lane.b32.xlu0 %v400_v5, %s4018_s29  ;;  %409 = vrot.lane.b32.xlu2 %v399_v6, %s4018_s29  ;;  %v112_v5 = vsel %vm64_vm1, %v36_v13, 0.0  ;;  %v557_v6 = vsel %vm488_vm2, %v554_v56, %v556_v57  ;;  %v592_v13 = vrot.slane %v580_v7, 1  ;;  %v622_v57 = vmul.f32 %v620_v48, %v4130_v58 }
  0x7b   :  { %v113_v21 = vadd.f32 %v112_v5, %v111_v1  ;;  %v639_v1 = vrot.slane %v625_v55, 1 }
  0x7c   :  { %v4242_v14 = vpop.permute.xlu2 %199  ;;  %v634_v7 = vrot.slane %v622_v57, 1 }
  0x7d   :  { %v4318_v29 = vmul.f32 0.25, %v113_v21 }
  0x7f   :  { %v582_v42 = vmul.f32 %v579_v62, %v4318_v29 }
  0x80   :  { %438 = vrot.lane.b32.xlu1 %v427_v15, %s4019_s9  ;;  %v545_v15 = vmul.f32 %v540_v31, %v4123_v51 }
  0x82   :  { %436 = vrot.lane.b32.xlu0 %v426_v22, %s4019_s9  ;;  %v4263_v30 = vpop.permute.xlu1 %176  ;;  %434 = vrot.lane.b32.xlu2 %v425_v23, %s4019_s9  ;;  %v593_v22 = vrot.slane %v581_v8, 1  ;;  %v4312_v23 = vmul.f32 0.25, %v134_v9  ;;  %v559_v25 = vrot.slane %v545_v15, 1  ;;  %v636_v8 = vrot.slane %v623_v59, 1 }
  0x83   :  { %v640_v15 = vsel %vm488_vm2, %v638_v63, %v639_v1 }
  0x84   :  { %v4270_v36 = vpop.permute.xlu0 %172  ;;  %v4272_v37 = vpop.permute.xlu2 %224  ;;  %v594_v34 = vsel %vm488_vm2, %v592_v13, %v593_v22  ;;  %v562_v40 = vsel %vm488_vm2, %v559_v25, %v561_v26  ;;  %v560_v41 = vsel %vm488_vm2, %v558_v27, %v559_v25  ;;  %v637_v13 = vsel %vm488_vm2, %v634_v7, %v636_v8 }
  0x85   :  { %v626_v25 = vmul.f32 %v620_v48, %v4296_v0 }
  0x88   :  { %461 = vrot.lane.b32.xlu1 %v451_v38, %s4019_s9  ;;  %v585_v38 = vmul.f32 %v579_v62, %v4312_v23  ;;  %v621_v62 = vmul.f32 %v620_v48, %v4115_v43 }
  0x8a   :  { %459 = vrot.lane.b32.xlu0 %v450_v47, %s4019_s9  ;;  %v4291_v60 = vpop.permute.xlu1 %178  ;;  %457 = vrot.lane.b32.xlu2 %v449_v49, %s4019_s9  ;;  %v600_v45 = vrot.slane %v585_v38, 1  ;;  %v597_v47 = vrot.slane %v583_v39, 1  ;;  %v595_v49 = vrot.slane %v582_v42, 1  ;;  %v633_v9 = vrot.slane %v621_v62, 1 }
  0x8b   :  { %v700_v38 = vstv %s3868_s27  ;;  %v641_v39 = vrot.slane %v626_v25, 1  ;;  %s3896_s27 = sld [smem:[#allocation2 + $0x18]] }
  0x8c   :  { %v4298_v2 = vpop.permute.xlu0 %174  ;;  %v4300_v4 = vpop.permute.xlu2 %230  ;;  %v601_v53 = vsel %vm488_vm2, %v598_v44, %v600_v45  ;;  %v599_v56 = vsel %vm488_vm2, %v597_v47, %v598_v44  ;;  %v596_v61 = vsel %vm488_vm2, %v593_v22, %v595_v49  ;;  %v635_v22 = vsel %vm488_vm2, %v633_v9, %v634_v7 }
  0x8d   :  { %v701_v44 = vmul.f32 %v700_v38, %v4115_v43  ;;  %v702_v45 = vmul.f32 %v700_v38, %v4130_v58  ;;  %v706_v8 = vmul.f32 %v700_v38, %v4296_v0  ;;  %v704_v9 = vmul.f32 %v700_v38, %v4103_v33 }
  0x8f   :  { %v713_v55 = vrot.slane %v701_v44, 1  ;;  %v718_v25 = vrot.slane %v704_v9, 1 }
  0x90   :  { %565 = vrot.lane.b32.xlu1 %v557_v6, %s4014_s18  ;;  %v659_v6 = vstv %s3867_s25  ;;  %s3895_s25 = sld [smem:[#allocation2 + $0x48]] }
  0x91   :  { %v661_v19 = vmul.f32 %v659_v6, %v4151_v18  ;;  %v662_v20 = vmul.f32 %v659_v6, %v4318_v29  ;;  %v660_v21 = vmul.f32 %v659_v6, %v4141_v10  ;;  %v664_v48 = vmul.f32 %v659_v6, %v4145_v16 }
  0x92   :  { %563 = vrot.lane.b32.xlu0 %v555_v11, %s4014_s18  ;;  %v4315_v24 = vpop.permute.xlu1 %203  ;;  %463 = vrot.lane.b32.xlu2 %v452_v12, %s4019_s9  ;;  %v665_v49 = vmul.f32 %v659_v6, %v4312_v23  ;;  %v663_v54 = vmul.f32 %v659_v6, %v4149_v17  ;;  %v705_v6 = vmul.f32 %v700_v38, %v4123_v51 }
  0x93   :  { %v673_v26 = vrot.slane %v661_v19, 1  ;;  %v675_v27 = vrot.slane %v662_v20, 1  ;;  %v672_v35 = vrot.slane %v660_v21, 1  ;;  %v678_v59 = vrot.slane %v664_v48, 1 }
  0x94   :  { %v4320_v31 = vpop.permute.xlu0 %201  ;;  %v4322_v32 = vpop.permute.xlu2 %253  ;;  %v677_v62 = vrot.slane %v663_v54, 1  ;;  %v703_v20 = vmul.f32 %v700_v38, %v4257_v28  ;;  %v719_v21 = vrot.slane %v705_v6, 1 }
  0x95   :  { %v676_v42 = vsel %vm488_vm2, %v673_v26, %v675_v27  ;;  %v674_v47 = vsel %vm488_vm2, %v672_v35, %v673_v26  ;;  %v739_v26 = vstv %s3869_s28  ;;  %s3897_s28 = sld [smem:[#allocation2 + $0x49]] }
  0x96   :  { %v679_v19 = vsel %vm488_vm2, %v677_v62, %v678_v59  ;;  %v716_v27 = vrot.slane %v703_v20, 1  ;;  %v744_v44 = vmul.f32 %v739_v26, %v4145_v16  ;;  %v742_v48 = vmul.f32 %v739_v26, %v4318_v29 }
  0x98   :  { %602 = vrot.lane.b32.xlu1 %v594_v34, %s4014_s18 }
  0x9a   :  { %569 = vrot.lane.b32.xlu0 %v562_v40, %s4014_s18  ;;  %v4333_v46 = vpop.permute.xlu1 %228  ;;  %567 = vrot.lane.b32.xlu2 %v560_v41, %s4014_s18 }
  0x9c   :  { %v4336_v50 = vpop.permute.xlu0 %226  ;;  %v4338_v52 = vpop.permute.xlu2 %278 }
  0xa0   :  { %608 = vrot.lane.b32.xlu1 %v601_v53, %s4014_s18  ;;  %v642_v53 = vsel %vm488_vm2, %v639_v1, %v641_v39 }
  0xa2   :  { %606 = vrot.lane.b32.xlu0 %v599_v56, %s4014_s18  ;;  %v4350_v5 = vpop.permute.xlu1 %251  ;;  %604 = vrot.lane.b32.xlu2 %v596_v61, %s4014_s18  ;;  %v714_v56 = vrot.slane %v702_v45, 1  ;;  %v680_v61 = vrot.slane %v665_v49, 1  ;;  %v720_v45 = vsel %vm488_vm2, %v718_v25, %v719_v21  ;;  %v745_v25 = vmul.f32 %v739_v26, %v4312_v23 }
  0xa4   :  { %v4353_v11 = vpop.permute.xlu0 %249  ;;  %v4355_v12 = vpop.permute.xlu2 %301  ;;  %v715_v1 = vsel %vm488_vm2, %v713_v55, %v714_v56  ;;  %v717_v49 = vsel %vm488_vm2, %v714_v56, %v716_v27  ;;  %v758_v55 = vrot.slane %v744_v44, 1 }
  0xa8   :  { %647 = vrot.lane.b32.xlu1 %v640_v15, %s4015_s20  ;;  %v681_v15 = vsel %vm488_vm2, %v678_v59, %v680_v61  ;;  %v780_v61 = vstv %s3870_s30  ;;  %s141_s30 = sld [smem:[#allocation2]] }
  0xa9   :  { %v781_v20 = vmul.f32 %v780_v61, %v4115_v43 }
  0xaa   :  { %645 = vrot.lane.b32.xlu0 %v637_v13, %s4015_s20  ;;  %v4366_v34 = vpop.permute.xlu1 %276  ;;  %643 = vrot.lane.b32.xlu2 %v635_v22, %s4015_s20  ;;  %v721_v13 = vrot.slane %v706_v8, 1 }
  0xab   :  { %v793_v44 = vrot.slane %v781_v20, 1 }
  0xac   :  { %v4369_v40 = vpop.permute.xlu0 %255  ;;  %v4371_v41 = vpop.permute.xlu2 %307  ;;  %v722_v38 = vsel %vm488_vm2, %v719_v21, %v721_v13 }
  0xb0   :  { %684 = vrot.lane.b32.xlu1 %v676_v42, %s4015_s20  ;;  %v743_v42 = vmul.f32 %v739_v26, %v4149_v17 }
  0xb2   :  { %682 = vrot.lane.b32.xlu0 %v674_v47, %s4015_s20  ;;  %v4383_v57 = vpop.permute.xlu1 %282  ;;  %649 = vrot.lane.b32.xlu2 %v642_v53, %s4015_s20  ;;  %v741_v47 = vmul.f32 %v739_v26, %v4151_v18  ;;  %v740_v53 = vmul.f32 %v739_v26, %v4141_v10  ;;  %v757_v54 = vrot.slane %v743_v42, 1 }
  0xb4   :  { %v4386_v63 = vpop.permute.xlu0 %280  ;;  %v4388_v7 = vpop.permute.xlu2 %332  ;;  %v753_v62 = vrot.slane %v741_v47, 1  ;;  %v752_v6 = vrot.slane %v740_v53, 1  ;;  %v759_v9 = vsel %vm488_vm2, %v757_v54, %v758_v55  ;;  %v760_v47 = vrot.slane %v745_v25, 1 }
  0xb5   :  { %6530 = vst [vmem:[#allocation8_spill] sm:$0xff] %v4388_v7 }
  0xb6   :  { %v754_v13 = vsel %vm488_vm2, %v752_v6, %v753_v62  ;;  %v786_v6 = vmul.f32 %v780_v61, %v4296_v0 }
  0xb8   :  { %723 = vrot.lane.b32.xlu1 %v715_v1, %s4016_s22  ;;  %v755_v1 = vrot.slane %v742_v48, 1  ;;  %v801_v25 = vrot.slane %v786_v6, 1 }
  0xba   :  { %688 = vrot.lane.b32.xlu0 %v681_v15, %s4015_s20  ;;  %v4399_v22 = vpop.permute.xlu1 %305  ;;  %686 = vrot.lane.b32.xlu2 %v679_v19, %s4015_s20  ;;  %v782_v15 = vmul.f32 %v780_v61, %v4130_v58  ;;  %v783_v19 = vmul.f32 %v780_v61, %v4257_v28  ;;  %v756_v21 = vsel %vm488_vm2, %v753_v62, %v755_v1 }
  0xbb   :  { %6531 = vst [vmem:[#allocation9_spill] sm:$0xff] %v4399_v22  ;;  %v785_v1 = vmul.f32 %v780_v61, %v4123_v51 }
  0xbc   :  { %v4402_v35 = vpop.permute.xlu0 %303  ;;  %v4404_v39 = vpop.permute.xlu2 %355  ;;  %v794_v27 = vrot.slane %v782_v15, 1  ;;  %v784_v15 = vmul.f32 %v780_v61, %v4103_v33 }
  0xbd   :  { %6532 = vst [vmem:[#allocation10_spill] sm:$0xff] %v4404_v39 }
  0xbe   :  { %v795_v62 = vsel %vm488_vm2, %v793_v44, %v794_v27 }
  0xc0   :  { %729 = vrot.lane.b32.xlu1 %v722_v38, %s4016_s22  ;;  %v796_v38 = vrot.slane %v783_v19, 1 }
  0xc2   :  { %727 = vrot.lane.b32.xlu0 %v720_v45, %s4016_s22  ;;  %v4416_v59 = vpop.permute.xlu1 %330  ;;  %725 = vrot.lane.b32.xlu2 %v717_v49, %s4016_s22  ;;  %v819_v45 = vstv %s3871_s3  ;;  %v797_v53 = vsel %vm488_vm2, %v794_v27, %v796_v38  ;;  %v798_v27 = vrot.slane %v784_v15, 1  ;;  %s3849_s3 = sld [smem:[#allocation2 + $0x31]] }
  0xc3   :  { %6533 = vst [vmem:[#allocation11_spill] sm:$0xff] %v4416_v59  ;;  %v820_v26 = vmul.f32 %v819_v45, %v4141_v10  ;;  %v821_v54 = vmul.f32 %v819_v45, %v4151_v18  ;;  %v824_v61 = vmul.f32 %v819_v45, %v4145_v16 }
  0xc4   :  { %v4419_v8 = vpop.permute.xlu0 %328  ;;  %v4421_v56 = vpop.permute.xlu2 %380 }
  0xc5   :  { %6534 = vst [vmem:[#allocation12_spill] sm:$0xff] %v4421_v56  ;;  %v832_v19 = vrot.slane %v820_v26, 1  ;;  %v833_v20 = vrot.slane %v821_v54, 1 }
  0xc8   :  { %766 = vrot.lane.b32.xlu1 %v759_v9, %s4016_s22  ;;  %v761_v9 = vsel %vm488_vm2, %v758_v55, %v760_v47  ;;  %v834_v55 = vsel %vm488_vm2, %v832_v19, %v833_v20  ;;  %v825_v47 = vmul.f32 %v819_v45, %v4312_v23  ;;  %v860_v19 = vstv %s3872_s4  ;;  %s3898_s4 = sld [smem:[#allocation2 + $0x19]] }
  0xca   :  { %764 = vrot.lane.b32.xlu0 %v756_v21, %s4016_s22  ;;  %v4432_v42 = vpop.permute.xlu1 %353  ;;  %762 = vrot.lane.b32.xlu2 %v754_v13, %s4016_s22  ;;  %v799_v13 = vrot.slane %v785_v1, 1  ;;  %v838_v1 = vrot.slane %v824_v61, 1  ;;  %v840_v6 = vrot.slane %v825_v47, 1  ;;  %v862_v61 = vmul.f32 %v860_v19, %v4130_v58 }
  0xcb   :  { %6535 = vst [vmem:[#allocation13_spill] sm:$0xff] %v4432_v42  ;;  %v863_v47 = vmul.f32 %v860_v19, %v4257_v28 }
  0xcc   :  { %v4435_v48 = vpop.permute.xlu0 %334  ;;  %v4437_v49 = vpop.permute.xlu2 %386  ;;  %v802_v26 = vsel %vm488_vm2, %v799_v13, %v801_v25  ;;  %v800_v54 = vsel %vm488_vm2, %v798_v27, %v799_v13  ;;  %v864_v13 = vmul.f32 %v860_v19, %v4103_v33  ;;  %v865_v27 = vmul.f32 %v860_v19, %v4123_v51 }
  0xcd   :  { %6536 = vst [vmem:[#allocation14_spill] sm:$0xff] %v4435_v48 }
  0xce   :  { %6537 = vst [vmem:[#allocation15_spill] sm:$0xff] %v4437_v49 }
  0xd0   :  { %805 = vrot.lane.b32.xlu1 %v797_v53, %s4017_s26  ;;  %v823_v53 = vmul.f32 %v819_v45, %v4149_v17 }
  0xd2   :  { %803 = vrot.lane.b32.xlu0 %v795_v62, %s4017_s26  ;;  %v4449_v21 = vpop.permute.xlu1 %359  ;;  %768 = vrot.lane.b32.xlu2 %v761_v9, %s4016_s22  ;;  %v822_v62 = vmul.f32 %v819_v45, %v4318_v29  ;;  %v837_v15 = vrot.slane %v823_v53, 1  ;;  %v841_v45 = vsel %vm488_vm2, %v838_v1, %v840_v6 }
  0xd3   :  { %6538 = vst [vmem:[#allocation16_spill] sm:$0xff] %v4449_v21 }
  0xd4   :  { %v4452_v38 = vpop.permute.xlu0 %357  ;;  %v4454_v44 = vpop.permute.xlu2 %409 }
  0xd5   :  { %6539 = vst [vmem:[#allocation17_spill] sm:$0xff] %v4452_v38 }
  0xd6   :  { %6540 = vst [vmem:[#allocation18_spill] sm:$0xff] %v4454_v44  ;;  %v835_v44 = vrot.slane %v822_v62, 1  ;;  %v879_v62 = vrot.slane %v865_v27, 1 }
  0xd8   :  { %842 = vrot.lane.b32.xlu1 %v834_v55, %s4017_s26  ;;  %v839_v55 = vsel %vm488_vm2, %v837_v15, %v838_v1  ;;  %v836_v53 = vsel %vm488_vm2, %v833_v20, %v835_v44  ;;  %v874_v1 = vrot.slane %v862_v61, 1  ;;  %v876_v15 = vrot.slane %v863_v47, 1 }
  0xd9   :  { %v866_v61 = vmul.f32 %v860_v19, %v4296_v0 }
  0xda   :  { %809 = vrot.lane.b32.xlu0 %v802_v26, %s4017_s26  ;;  %v4465_v9 = vpop.permute.xlu1 %384  ;;  %807 = vrot.lane.b32.xlu2 %v800_v54, %s4017_s26  ;;  %v861_v26 = vmul.f32 %v860_v19, %v4115_v43  ;;  %v878_v54 = vrot.slane %v864_v13, 1 }
  0xdb   :  { %6541 = vst [vmem:[#allocation19_spill] sm:$0xff] %v4465_v9 }
  0xdc   :  { %v4468_v49 = vpop.permute.xlu0 %382  ;;  %v4470_v25 = vpop.permute.xlu2 %434  ;;  %v880_v44 = vsel %vm488_vm2, %v878_v54, %v879_v62 }
  0xdd   :  { %6542 = vst [vmem:[#allocation20_spill] sm:$0xff] %v4468_v49  ;;  %v873_v49 = vrot.slane %v861_v26, 1 }
  0xde   :  { %6543 = vst [vmem:[#allocation21_spill] sm:$0xff] %v4470_v25  ;;  %v899_v25 = vstv %s3873_s5  ;;  %s4952_s5 = sld [smem:[#allocation2 + $0x4a]] }
  0xdf   :  { %v902_v13 = vmul.f32 %v899_v25, %v4318_v29  ;;  %v900_v27 = vmul.f32 %v899_v25, %v4141_v10 }
  0xe0   :  { %848 = vrot.lane.b32.xlu1 %v841_v45, %s4017_s26  ;;  %v901_v45 = vmul.f32 %v899_v25, %v4151_v18 }
  0xe1   :  { %v915_v26 = vrot.slane %v902_v13, 1  ;;  %v912_v54 = vrot.slane %v900_v27, 1  ;;  %v905_v13 = vmul.f32 %v899_v25, %v4312_v23 }
  0xe2   :  { %846 = vrot.lane.b32.xlu0 %v839_v55, %s4017_s26  ;;  %v4482_v6 = vpop.permute.xlu1 %407  ;;  %844 = vrot.lane.b32.xlu2 %v836_v53, %s4017_s26  ;;  %v877_v55 = vsel %vm488_vm2, %v874_v1, %v876_v15  ;;  %v875_v53 = vsel %vm488_vm2, %v873_v49, %v874_v1  ;;  %v913_v47 = vrot.slane %v901_v45, 1  ;;  %v904_v45 = vmul.f32 %v899_v25, %v4145_v16 }
  0xe3   :  { %6544 = vst [vmem:[#allocation22_spill] sm:$0xff] %v4482_v6  ;;  %v940_v6 = vstv %s3874_s6  ;;  %s4999_s6 = sld [smem:[#allocation2 + $0x7]] }
  0xe4   :  { %v4485_v9 = vpop.permute.xlu0 %405  ;;  %v4487_v20 = vpop.permute.xlu2 %457  ;;  %v916_v49 = vsel %vm488_vm2, %v913_v47, %v915_v26  ;;  %v941_v19 = vmul.f32 %v940_v6, %v4115_v43  ;;  %v942_v1 = vmul.f32 %v940_v6, %v4130_v58 }
  0xe5   :  { %6545 = vst [vmem:[#allocation23_spill] sm:$0xff] %v4485_v9  ;;  %v881_v9 = vrot.slane %v866_v61, 1 }
  0xe6   :  { %6546 = vst [vmem:[#allocation24_spill] sm:$0xff] %v4487_v20  ;;  %v954_v61 = vrot.slane %v942_v1, 1 }
  0xe7   :  { %v882_v27 = vsel %vm488_vm2, %v879_v62, %v881_v9  ;;  %v946_v62 = vmul.f32 %v940_v6, %v4296_v0 }
  0xe8   :  { %887 = vrot.lane.b32.xlu1 %v880_v44, %s4018_s29  ;;  %v914_v44 = vsel %vm488_vm2, %v912_v54, %v913_v47  ;;  %v918_v47 = vrot.slane %v904_v45, 1  ;;  %v920_v54 = vrot.slane %v905_v13, 1 }
  0xe9   :  { %v961_v13 = vrot.slane %v946_v62, 1 }
  0xea   :  { %885 = vrot.lane.b32.xlu0 %v877_v55, %s4018_s29  ;;  %v4498_v20 = vpop.permute.xlu1 %432  ;;  %883 = vrot.lane.b32.xlu2 %v875_v53, %s4018_s29  ;;  %v903_v55 = vmul.f32 %v899_v25, %v4149_v17  ;;  %v953_v53 = vrot.slane %v941_v19, 1  ;;  %v945_v25 = vmul.f32 %v940_v6, %v4123_v51  ;;  %v921_v19 = vsel %vm488_vm2, %v918_v47, %v920_v54 }
  0xeb   :  { %6547 = vst [vmem:[#allocation25_spill] sm:$0xff] %v4498_v20 }
  0xec   :  { %v4501_v38 = vpop.permute.xlu0 %411  ;;  %v4503_v15 = vpop.permute.xlu2 %463  ;;  %v955_v9 = vsel %vm488_vm2, %v953_v53, %v954_v61  ;;  %v959_v45 = vrot.slane %v945_v25, 1  ;;  %v979_v53 = vstv %s3875_s7  ;;  %s5008_s7 = sld [smem:[#allocation2 + $0x1a]] }
  0xed   :  { %6548 = vst [vmem:[#allocation26_spill] sm:$0xff] %v4501_v38  ;;  %v981_v25 = vmul.f32 %v979_v53, %v4151_v18  ;;  %v982_v62 = vmul.f32 %v979_v53, %v4318_v29 }
  0xee   :  { %6549 = vst [vmem:[#allocation27_spill] sm:$0xff] %v4503_v15  ;;  %v917_v15 = vrot.slane %v903_v55, 1 }
  0xf0   :  { %924 = vrot.lane.b32.xlu1 %v916_v49, %s4018_s29  ;;  %v944_v49 = vmul.f32 %v940_v6, %v4103_v33  ;;  %v919_v1 = vsel %vm488_vm2, %v917_v15, %v918_v47  ;;  %v983_v15 = vmul.f32 %v979_v53, %v4149_v17  ;;  %v984_v47 = vmul.f32 %v979_v53, %v4145_v16 }
  0xf2   :  { %922 = vrot.lane.b32.xlu0 %v914_v44, %s4018_s29  ;;  %v4515_v26 = vpop.permute.xlu1 %438  ;;  %889 = vrot.lane.b32.xlu2 %v882_v27, %s4018_s29  ;;  %v943_v44 = vmul.f32 %v940_v6, %v4257_v28  ;;  %v958_v55 = vrot.slane %v944_v49, 1  ;;  %v962_v6 = vsel %vm488_vm2, %v959_v45, %v961_v13 }
  0xf3   :  { %6550 = vst [vmem:[#allocation28_spill] sm:$0xff] %v4515_v26 }
  0xf4   :  { %v4518_v38 = vpop.permute.xlu0 %436  ;;  %v4520_v20 = vpop.permute.xlu2 %567 }
  0xf5   :  { %6551 = vst [vmem:[#allocation29_spill] sm:$0xff] %v4518_v38 }
  0xf6   :  { %6552 = vst [vmem:[#allocation30_spill] sm:$0xff] %v4520_v20  ;;  %v956_v20 = vrot.slane %v943_v44, 1  ;;  %v998_v44 = vrot.slane %v984_v47, 1 }
  0xf8   :  { %963 = vrot.lane.b32.xlu1 %v955_v9, %s4019_s9  ;;  %v960_v9 = vsel %vm488_vm2, %v958_v55, %v959_v45  ;;  %v957_v49 = vsel %vm488_vm2, %v954_v61, %v956_v20  ;;  %v993_v45 = vrot.slane %v981_v25, 1  ;;  %v995_v55 = vrot.slane %v982_v62, 1 }
  0xf9   :  { %v985_v25 = vmul.f32 %v979_v53, %v4312_v23 }
  0xfa   :  { %928 = vrot.lane.b32.xlu0 %v921_v19, %s4018_s29  ;;  %v4531_v27 = vpop.permute.xlu1 %461  ;;  %926 = vrot.lane.b32.xlu2 %v919_v1, %s4018_s29  ;;  %v980_v19 = vmul.f32 %v979_v53, %v4141_v10  ;;  %v997_v1 = vrot.slane %v983_v15, 1 }
  0xfb   :  { %6553 = vst [vmem:[#allocation31_spill] sm:$0xff] %v4531_v27 }
  0xfc   :  { %v4534_v26 = vpop.permute.xlu0 %459  ;;  %v4536_v54 = vpop.permute.xlu2 %604  ;;  %v999_v61 = vsel %vm488_vm2, %v997_v1, %v998_v44 }
  0xfd   :  { %6554 = vst [vmem:[#allocation32_spill] sm:$0xff] %v4534_v26  ;;  %v992_v26 = vrot.slane %v980_v19, 1 }
  0xfe   :  { %6555 = vst [vmem:[#allocation33_spill] sm:$0xff] %v4536_v54  ;;  %v1085_v54 = vstv %s3878_s8  ;;  %s5011_s8 = sld [smem:[#allocation2 + $0x38]] }
  0xff   :  { %v1088_v15 = vmul.f32 %v1085_v54, %v4257_v28  ;;  %v1086_v47 = vmul.f32 %v1085_v54, %v4115_v43 }
 0x100   :  { %969 = vrot.lane.b32.xlu1 %v962_v6, %s4019_s9  ;;  %v1087_v6 = vmul.f32 %v1085_v54, %v4130_v58 }
 0x101   :  { %v1101_v19 = vrot.slane %v1088_v15, 2  ;;  %v1098_v1 = vrot.slane %v1086_v47, 2  ;;  %v1091_v15 = vmul.f32 %v1085_v54, %v4296_v0 }
 0x102   :  { %967 = vrot.lane.b32.xlu0 %v960_v9, %s4019_s9  ;;  %v4548_v13 = vpop.permute.xlu1 %565  ;;  %965 = vrot.lane.b32.xlu2 %v957_v49, %s4019_s9  ;;  %v996_v9 = vsel %vm488_vm2, %v993_v45, %v995_v55  ;;  %v994_v49 = vsel %vm488_vm2, %v992_v26, %v993_v45  ;;  %v1099_v62 = vrot.slane %v1087_v6, 2  ;;  %v1090_v6 = vmul.f32 %v1085_v54, %v4123_v51 }
 0x103   :  { %6556 = vst [vmem:[#allocation34_spill] sm:$0xff] %v4548_v13  ;;  %v1124_v13 = vstv %s3879_s10  ;;  %s5043_s10 = sld [smem:[#allocation2 + $0x4b]] }
 0x104   :  { %v4551_v27 = vpop.permute.xlu0 %563  ;;  %v4553_v20 = vpop.permute.xlu2 %643  ;;  %v1102_v26 = vsel %vm1033_vm3, %v1099_v62, %v1101_v19  ;;  %v1125_v53 = vmul.f32 %v1124_v13, %v4141_v10  ;;  %v1126_v45 = vmul.f32 %v1124_v13, %v4151_v18 }
 0x105   :  { %6557 = vst [vmem:[#allocation35_spill] sm:$0xff] %v4551_v27  ;;  %v1000_v27 = vrot.slane %v985_v25, 1 }
 0x106   :  { %6558 = vst [vmem:[#allocation36_spill] sm:$0xff] %v4553_v20  ;;  %v1138_v25 = vrot.slane %v1126_v45, 2 }
 0x107   :  { %v1001_v47 = vsel %vm488_vm2, %v998_v44, %v1000_v27  ;;  %v1130_v44 = vmul.f32 %v1124_v13, %v4312_v23 }
 0x108   :  { %1006 = vrot.lane.b32.xlu1 %v999_v61, %s4019_s9  ;;  %v1100_v61 = vsel %vm1033_vm3, %v1098_v1, %v1099_v62  ;;  %v1104_v62 = vrot.slane %v1090_v6, 2  ;;  %v1106_v1 = vrot.slane %v1091_v15, 2 }
 0x109   :  { %v1145_v15 = vrot.slane %v1130_v44, 2 }
 0x10a   :  { %1004 = vrot.lane.b32.xlu0 %v996_v9, %s4019_s9  ;;  %v4564_v20 = vpop.permute.xlu1 %602  ;;  %1002 = vrot.lane.b32.xlu2 %v994_v49, %s4019_s9  ;;  %v1089_v9 = vmul.f32 %v1085_v54, %v4103_v33  ;;  %v1137_v49 = vrot.slane %v1125_v53, 2  ;;  %v1129_v54 = vmul.f32 %v1124_v13, %v4145_v16  ;;  %v1107_v53 = vsel %vm1033_vm3, %v1104_v62, %v1106_v1 }
 0x10b   :  { %6559 = vst [vmem:[#allocation37_spill] sm:$0xff] %v4564_v20 }
 0x10c   :  { %v4567_v38 = vpop.permute.xlu0 %569  ;;  %v4569_v55 = vpop.permute.xlu2 %649  ;;  %v1139_v27 = vsel %vm1033_vm3, %v1137_v49, %v1138_v25  ;;  %v1143_v6 = vrot.slane %v1129_v54, 2  ;;  %v1165_v49 = vstv %s3880_s11  ;;  %s5091_s11 = sld [smem:[#allocation2 + $0x1b]] }
 0x10d   :  { %6560 = vst [vmem:[#allocation38_spill] sm:$0xff] %v4567_v38  ;;  %v1167_v54 = vmul.f32 %v1165_v49, %v4130_v58  ;;  %v1168_v44 = vmul.f32 %v1165_v49, %v4257_v28 }
 0x10e   :  { %6561 = vst [vmem:[#allocation39_spill] sm:$0xff] %v4569_v55  ;;  %v1103_v55 = vrot.slane %v1089_v9, 2 }
 0x110   :  { %1110 = vrot.lane.b32.xlu1 %v1102_v26, %s4014_s18  ;;  %v1128_v26 = vmul.f32 %v1124_v13, %v4149_v17  ;;  %v1105_v45 = vsel %vm1033_vm3, %v1103_v55, %v1104_v62  ;;  %v1169_v55 = vmul.f32 %v1165_v49, %v4103_v33  ;;  %v1170_v62 = vmul.f32 %v1165_v49, %v4123_v51 }
 0x112   :  { %1108 = vrot.lane.b32.xlu0 %v1100_v61, %s4014_s18  ;;  %v4581_v19 = vpop.permute.xlu1 %608  ;;  %1008 = vrot.lane.b32.xlu2 %v1001_v47, %s4019_s9  ;;  %v1127_v61 = vmul.f32 %v1124_v13, %v4318_v29  ;;  %v1142_v9 = vrot.slane %v1128_v26, 2  ;;  %v1146_v13 = vsel %vm1033_vm3, %v1143_v6, %v1145_v15 }
 0x113   :  { %6562 = vst [vmem:[#allocation40_spill] sm:$0xff] %v4581_v19 }
 0x114   :  { %v4584_v38 = vpop.permute.xlu0 %606  ;;  %v4586_v20 = vpop.permute.xlu2 %686 }
 0x115   :  { %6563 = vst [vmem:[#allocation41_spill] sm:$0xff] %v4584_v38 }
 0x116   :  { %6564 = vst [vmem:[#allocation42_spill] sm:$0xff] %v4586_v20  ;;  %v1140_v20 = vrot.slane %v1127_v61, 2  ;;  %v1184_v61 = vrot.slane %v1170_v62, 2 }
 0x118   :  { %1147 = vrot.lane.b32.xlu1 %v1139_v27, %s4014_s18  ;;  %v1144_v27 = vsel %vm1033_vm3, %v1142_v9, %v1143_v6  ;;  %v1141_v26 = vsel %vm1033_vm3, %v1138_v25, %v1140_v20  ;;  %v1179_v6 = vrot.slane %v1167_v54, 2  ;;  %v1181_v9 = vrot.slane %v1168_v44, 2 }
 0x119   :  { %v1171_v54 = vmul.f32 %v1165_v49, %v4296_v0 }
 0x11a   :  { %1114 = vrot.lane.b32.xlu0 %v1107_v53, %s4014_s18  ;;  %v4597_v47 = vpop.permute.xlu1 %647  ;;  %1112 = vrot.lane.b32.xlu2 %v1105_v45, %s4014_s18  ;;  %v1166_v53 = vmul.f32 %v1165_v49, %v4115_v43  ;;  %v1183_v45 = vrot.slane %v1169_v55, 2 }
 0x11b   :  { %6565 = vst [vmem:[#allocation43_spill] sm:$0xff] %v4597_v47 }
 0x11c   :  { %v4600_v38 = vpop.permute.xlu0 %645  ;;  %v4602_v1 = vpop.permute.xlu2 %725  ;;  %v1178_v47 = vrot.slane %v1166_v53, 2  ;;  %v1185_v25 = vsel %vm1033_vm3, %v1183_v45, %v1184_v61 }
 0x11d   :  { %6566 = vst [vmem:[#allocation44_spill] sm:$0xff] %v4600_v38 }
 0x11e   :  { %6567 = vst [vmem:[#allocation45_spill] sm:$0xff] %v4602_v1  ;;  %v1204_v1 = vstv %s3881_s12  ;;  %s5188_s12 = sld [smem:[#allocation2 + $0x4c]] }
 0x11f   :  { %v1207_v55 = vmul.f32 %v1204_v1, %v4318_v29  ;;  %v1205_v62 = vmul.f32 %v1204_v1, %v4141_v10 }
 0x120   :  { %1153 = vrot.lane.b32.xlu1 %v1146_v13, %s4014_s18  ;;  %v1206_v13 = vmul.f32 %v1204_v1, %v4151_v18 }
 0x121   :  { %v1220_v53 = vrot.slane %v1207_v55, 2  ;;  %v1217_v45 = vrot.slane %v1205_v62, 2  ;;  %v1210_v55 = vmul.f32 %v1204_v1, %v4312_v23 }
 0x122   :  { %1151 = vrot.lane.b32.xlu0 %v1144_v27, %s4014_s18  ;;  %v4614_v15 = vpop.permute.xlu1 %684  ;;  %1149 = vrot.lane.b32.xlu2 %v1141_v26, %s4014_s18  ;;  %v1182_v27 = vsel %vm1033_vm3, %v1179_v6, %v1181_v9  ;;  %v1180_v26 = vsel %vm1033_vm3, %v1178_v47, %v1179_v6  ;;  %v1218_v44 = vrot.slane %v1206_v13, 2  ;;  %v1209_v13 = vmul.f32 %v1204_v1, %v4145_v16 }
 0x123   :  { %6568 = vst [vmem:[#allocation46_spill] sm:$0xff] %v4614_v15  ;;  %v1245_v15 = vstv %s3882_s13  ;;  %s5221_s13 = sld [smem:[#allocation2 + $0x1d]] }
 0x124   :  { %v4617_v38 = vpop.permute.xlu0 %682  ;;  %v4619_v20 = vpop.permute.xlu2 %762  ;;  %v1221_v47 = vsel %vm1033_vm3, %v1218_v44, %v1220_v53  ;;  %v1246_v49 = vmul.f32 %v1245_v15, %v4115_v43  ;;  %v1247_v6 = vmul.f32 %v1245_v15, %v4130_v58 }
 0x125   :  { %6569 = vst [vmem:[#allocation47_spill] sm:$0xff] %v4617_v38  ;;  %v1186_v38 = vrot.slane %v1171_v54, 2 }
 0x126   :  { %6570 = vst [vmem:[#allocation48_spill] sm:$0xff] %v4619_v20  ;;  %v1259_v54 = vrot.slane %v1247_v6, 2 }
 0x127   :  { %v1187_v62 = vsel %vm1033_vm3, %v1184_v61, %v1186_v38  ;;  %v1251_v61 = vmul.f32 %v1245_v15, %v4296_v0 }
 0x128   :  { %1192 = vrot.lane.b32.xlu1 %v1185_v25, %s4015_s20  ;;  %v1219_v25 = vsel %vm1033_vm3, %v1217_v45, %v1218_v44  ;;  %v1223_v44 = vrot.slane %v1209_v13, 2  ;;  %v1225_v45 = vrot.slane %v1210_v55, 2 }
 0x129   :  { %v1266_v55 = vrot.slane %v1251_v61, 2 }
 0x12a   :  { %1190 = vrot.lane.b32.xlu0 %v1182_v27, %s4015_s20  ;;  %v4630_v20 = vpop.permute.xlu1 %723  ;;  %1188 = vrot.lane.b32.xlu2 %v1180_v26, %s4015_s20  ;;  %v1208_v27 = vmul.f32 %v1204_v1, %v4149_v17  ;;  %v1258_v26 = vrot.slane %v1246_v49, 2  ;;  %v1250_v1 = vmul.f32 %v1245_v15, %v4123_v51  ;;  %v1226_v49 = vsel %vm1033_vm3, %v1223_v44, %v1225_v45 }
 0x12b   :  { %6571 = vst [vmem:[#allocation49_spill] sm:$0xff] %v4630_v20 }
 0x12c   :  { %v4633_v19 = vpop.permute.xlu0 %688  ;;  %v4635_v9 = vpop.permute.xlu2 %768  ;;  %v1260_v38 = vsel %vm1033_vm3, %v1258_v26, %v1259_v54  ;;  %v1264_v13 = vrot.slane %v1250_v1, 2  ;;  %v1284_v26 = vstv %s3883_s14  ;;  %s5246_s14 = sld [smem:[#allocation2 + $0xe]] }
 0x12d   :  { %6572 = vst [vmem:[#allocation50_spill] sm:$0xff] %v4633_v19  ;;  %v1286_v1 = vmul.f32 %v1284_v26, %v4151_v18  ;;  %v1287_v61 = vmul.f32 %v1284_v26, %v4318_v29 }
 0x12e   :  { %6573 = vst [vmem:[#allocation51_spill] sm:$0xff] %v4635_v9  ;;  %v1222_v9 = vrot.slane %v1208_v27, 2 }
 0x130   :  { %1229 = vrot.lane.b32.xlu1 %v1221_v47, %s4015_s20  ;;  %v1249_v47 = vmul.f32 %v1245_v15, %v4103_v33  ;;  %v1224_v6 = vsel %vm1033_vm3, %v1222_v9, %v1223_v44  ;;  %v1288_v9 = vmul.f32 %v1284_v26, %v4149_v17  ;;  %v1289_v44 = vmul.f32 %v1284_v26, %v4145_v16 }
 0x132   :  { %1227 = vrot.lane.b32.xlu0 %v1219_v25, %s4015_s20  ;;  %v4647_v53 = vpop.permute.xlu1 %729  ;;  %1194 = vrot.lane.b32.xlu2 %v1187_v62, %s4015_s20  ;;  %v1248_v25 = vmul.f32 %v1245_v15, %v4257_v28  ;;  %v1263_v27 = vrot.slane %v1249_v47, 2  ;;  %v1267_v15 = vsel %vm1033_vm3, %v1264_v13, %v1266_v55 }
 0x133   :  { %6574 = vst [vmem:[#allocation52_spill] sm:$0xff] %v4647_v53 }
 0x134   :  { %v4650_v19 = vpop.permute.xlu0 %727  ;;  %v4652_v20 = vpop.permute.xlu2 %807 }
 0x135   :  { %6575 = vst [vmem:[#allocation53_spill] sm:$0xff] %v4650_v19 }
 0x136   :  { %6576 = vst [vmem:[#allocation54_spill] sm:$0xff] %v4652_v20  ;;  %v1261_v20 = vrot.slane %v1248_v25, 2  ;;  %v1303_v25 = vrot.slane %v1289_v44, 2 }
 0x138   :  { %1268 = vrot.lane.b32.xlu1 %v1260_v38, %s4016_s22  ;;  %v1265_v38 = vsel %vm1033_vm3, %v1263_v27, %v1264_v13  ;;  %v1262_v47 = vsel %vm1033_vm3, %v1259_v54, %v1261_v20  ;;  %v1298_v13 = vrot.slane %v1286_v1, 2  ;;  %v1300_v27 = vrot.slane %v1287_v61, 2 }
 0x139   :  { %v1290_v1 = vmul.f32 %v1284_v26, %v4312_v23 }
 0x13a   :  { %1233 = vrot.lane.b32.xlu0 %v1226_v49, %s4015_s20  ;;  %v4663_v62 = vpop.permute.xlu1 %766  ;;  %1231 = vrot.lane.b32.xlu2 %v1224_v6, %s4015_s20  ;;  %v1285_v49 = vmul.f32 %v1284_v26, %v4141_v10  ;;  %v1302_v6 = vrot.slane %v1288_v9, 2 }
 0x13b   :  { %6577 = vst [vmem:[#allocation55_spill] sm:$0xff] %v4663_v62 }
 0x13c   :  { %v4666_v19 = vpop.permute.xlu0 %764  ;;  %v4668_v45 = vpop.permute.xlu2 %844  ;;  %v1297_v62 = vrot.slane %v1285_v49, 2  ;;  %v1304_v54 = vsel %vm1033_vm3, %v1302_v6, %v1303_v25 }
 0x13d   :  { %6578 = vst [vmem:[#allocation56_spill] sm:$0xff] %v4666_v19 }
 0x13e   :  { %6579 = vst [vmem:[#allocation57_spill] sm:$0xff] %v4668_v45  ;;  %v1325_v45 = vstv %s3884_s15  ;;  %s5256_s15 = sld [smem:[#allocation2 + $0x4e]] }
 0x13f   :  { %v1328_v9 = vmul.f32 %v1325_v45, %v4257_v28  ;;  %v1326_v44 = vmul.f32 %v1325_v45, %v4115_v43 }
 0x140   :  { %1274 = vrot.lane.b32.xlu1 %v1267_v15, %s4016_s22  ;;  %v1327_v15 = vmul.f32 %v1325_v45, %v4130_v58 }
 0x141   :  { %v1341_v49 = vrot.slane %v1328_v9, 2  ;;  %v1338_v6 = vrot.slane %v1326_v44, 2  ;;  %v1331_v9 = vmul.f32 %v1325_v45, %v4296_v0 }
 0x142   :  { %1272 = vrot.lane.b32.xlu0 %v1265_v38, %s4016_s22  ;;  %v4680_v55 = vpop.permute.xlu1 %805  ;;  %1270 = vrot.lane.b32.xlu2 %v1262_v47, %s4016_s22  ;;  %v1301_v38 = vsel %vm1033_vm3, %v1298_v13, %v1300_v27  ;;  %v1299_v47 = vsel %vm1033_vm3, %v1297_v62, %v1298_v13  ;;  %v1339_v61 = vrot.slane %v1327_v15, 2  ;;  %v1330_v15 = vmul.f32 %v1325_v45, %v4123_v51 }
 0x143   :  { %6580 = vst [vmem:[#allocation58_spill] sm:$0xff] %v4680_v55  ;;  %v1305_v55 = vrot.slane %v1290_v1, 2 }
 0x144   :  { %v4683_v19 = vpop.permute.xlu0 %803  ;;  %v4685_v20 = vpop.permute.xlu2 %883  ;;  %v1342_v62 = vsel %vm1033_vm3, %v1339_v61, %v1341_v49 }
 0x145   :  { %6581 = vst [vmem:[#allocation59_spill] sm:$0xff] %v4683_v19  ;;  %v1364_v19 = vstv %s3885_s16  ;;  %v1306_v44 = vsel %vm1033_vm3, %v1303_v25, %v1305_v55  ;;  %s5266_s16 = sld [smem:[#allocation2 + $0x3f]] }
 0x146   :  { %6582 = vst [vmem:[#allocation60_spill] sm:$0xff] %v4685_v20  ;;  %v1365_v26 = vmul.f32 %v1364_v19, %v4141_v10  ;;  %v1366_v13 = vmul.f32 %v1364_v19, %v4151_v18  ;;  %v1369_v25 = vmul.f32 %v1364_v19, %v4145_v16  ;;  %v1370_v55 = vmul.f32 %v1364_v19, %v4312_v23 }
 0x148   :  { %1311 = vrot.lane.b32.xlu1 %v1304_v54, %s4016_s22  ;;  %v1340_v54 = vsel %vm1033_vm3, %v1338_v6, %v1339_v61  ;;  %v1378_v1 = vrot.slane %v1366_v13, 2  ;;  %v1344_v61 = vrot.slane %v1330_v15, 2  ;;  %v1346_v6 = vrot.slane %v1331_v9, 2 }
 0x149   :  { %v1383_v15 = vrot.slane %v1369_v25, 2  ;;  %v1385_v9 = vrot.slane %v1370_v55, 2 }
 0x14a   :  { %1309 = vrot.lane.b32.xlu0 %v1301_v38, %s4016_s22  ;;  %v4696_v20 = vpop.permute.xlu1 %842  ;;  %1307 = vrot.lane.b32.xlu2 %v1299_v47, %s4016_s22  ;;  %v1329_v38 = vmul.f32 %v1325_v45, %v4103_v33  ;;  %v1377_v47 = vrot.slane %v1365_v26, 2  ;;  %v1347_v26 = vsel %vm1033_vm3, %v1344_v61, %v1346_v6 }
 0x14b   :  { %6583 = vst [vmem:[#allocation61_spill] sm:$0xff] %v4696_v20 }
 0x14c   :  { %v4699_v53 = vpop.permute.xlu0 %809  ;;  %v4701_v27 = vpop.permute.xlu2 %889  ;;  %v1379_v45 = vsel %vm1033_vm3, %v1377_v47, %v1378_v1  ;;  %v1405_v47 = vstv %s3886_s17  ;;  %s5343_s17 = sld [smem:[#allocation2 + $0x1e]] }
 0x14d   :  { %6584 = vst [vmem:[#allocation62_spill] sm:$0xff] %v4699_v53  ;;  %v1407_v25 = vmul.f32 %v1405_v47, %v4130_v58  ;;  %v1408_v55 = vmul.f32 %v1405_v47, %v4257_v28 }
 0x14e   :  { %6585 = vst [vmem:[#allocation63_spill] sm:$0xff] %v4701_v27  ;;  %v1343_v27 = vrot.slane %v1329_v38, 2 }
 0x150   :  { %1350 = vrot.lane.b32.xlu1 %v1342_v62, %s4017_s26  ;;  %v1368_v62 = vmul.f32 %v1364_v19, %v4149_v17  ;;  %v1345_v13 = vsel %vm1033_vm3, %v1343_v27, %v1344_v61  ;;  %v1409_v27 = vmul.f32 %v1405_v47, %v4103_v33  ;;  %v1410_v61 = vmul.f32 %v1405_v47, %v4123_v51 }
 0x152   :  { %1348 = vrot.lane.b32.xlu0 %v1340_v54, %s4017_s26  ;;  %v4713_v49 = vpop.permute.xlu1 %848  ;;  %1313 = vrot.lane.b32.xlu2 %v1306_v44, %s4016_s22  ;;  %v1367_v54 = vmul.f32 %v1364_v19, %v4318_v29  ;;  %v1382_v38 = vrot.slane %v1368_v62, 2  ;;  %v1386_v19 = vsel %vm1033_vm3, %v1383_v15, %v1385_v9 }
 0x153   :  { %6586 = vst [vmem:[#allocation64_spill] sm:$0xff] %v4713_v49 }
 0x154   :  { %v4716_v53 = vpop.permute.xlu0 %846  ;;  %v4718_v20 = vpop.permute.xlu2 %926 }
 0x155   :  { %6587 = vst [vmem:[#allocation65_spill] sm:$0xff] %v4716_v53 }
 0x156   :  { %6588 = vst [vmem:[#allocation66_spill] sm:$0xff] %v4718_v20  ;;  %v1380_v20 = vrot.slane %v1367_v54, 2  ;;  %v1424_v54 = vrot.slane %v1410_v61, 2 }
 0x158   :  { %1387 = vrot.lane.b32.xlu1 %v1379_v45, %s4017_s26  ;;  %v1384_v45 = vsel %vm1033_vm3, %v1382_v38, %v1383_v15  ;;  %v1381_v62 = vsel %vm1033_vm3, %v1378_v1, %v1380_v20  ;;  %v1419_v15 = vrot.slane %v1407_v25, 2  ;;  %v1421_v38 = vrot.slane %v1408_v55, 2 }
 0x159   :  { %v1411_v25 = vmul.f32 %v1405_v47, %v4296_v0 }
 0x15a   :  { %1354 = vrot.lane.b32.xlu0 %v1347_v26, %s4017_s26  ;;  %v4729_v44 = vpop.permute.xlu1 %887  ;;  %1352 = vrot.lane.b32.xlu2 %v1345_v13, %s4017_s26  ;;  %v1406_v26 = vmul.f32 %v1405_v47, %v4115_v43  ;;  %v1423_v13 = vrot.slane %v1409_v27, 2 }
 0x15b   :  { %6589 = vst [vmem:[#allocation67_spill] sm:$0xff] %v4729_v44 }
 0x15c   :  { %v4732_v53 = vpop.permute.xlu0 %885  ;;  %v4734_v6 = vpop.permute.xlu2 %965  ;;  %v1418_v44 = vrot.slane %v1406_v26, 2  ;;  %v1425_v1 = vsel %vm1033_vm3, %v1423_v13, %v1424_v54 }
 0x15d   :  { %6590 = vst [vmem:[#allocation68_spill] sm:$0xff] %v4732_v53 }
 0x15e   :  { %6591 = vst [vmem:[#allocation69_spill] sm:$0xff] %v4734_v6  ;;  %v1444_v6 = vstv %s3887_s1  ;;  %s5393_s1 = sld [smem:[#allocation2 + $0x4f]] }
 0x15f   :  { %v1447_v27 = vmul.f32 %v1444_v6, %v4318_v29  ;;  %v1445_v61 = vmul.f32 %v1444_v6, %v4141_v10 }
 0x160   :  { %1393 = vrot.lane.b32.xlu1 %v1386_v19, %s4017_s26  ;;  %v1446_v19 = vmul.f32 %v1444_v6, %v4151_v18 }
 0x161   :  { %v1460_v26 = vrot.slane %v1447_v27, 2  ;;  %v1457_v13 = vrot.slane %v1445_v61, 2  ;;  %v1450_v27 = vmul.f32 %v1444_v6, %v4312_v23 }
 0x162   :  { %1391 = vrot.lane.b32.xlu0 %v1384_v45, %s4017_s26  ;;  %v4746_v9 = vpop.permute.xlu1 %924  ;;  %1389 = vrot.lane.b32.xlu2 %v1381_v62, %s4017_s26  ;;  %v1422_v45 = vsel %vm1033_vm3, %v1419_v15, %v1421_v38  ;;  %v1420_v62 = vsel %vm1033_vm3, %v1418_v44, %v1419_v15  ;;  %v1458_v55 = vrot.slane %v1446_v19, 2  ;;  %v1449_v19 = vmul.f32 %v1444_v6, %v4145_v16 }
 0x163   :  { %6592 = vst [vmem:[#allocation70_spill] sm:$0xff] %v4746_v9  ;;  %v1426_v9 = vrot.slane %v1411_v25, 2 }
 0x164   :  { %v4749_v53 = vpop.permute.xlu0 %922  ;;  %v4751_v20 = vpop.permute.xlu2 %1002  ;;  %v1461_v44 = vsel %vm1033_vm3, %v1458_v55, %v1460_v26 }
 0x165   :  { %6593 = vst [vmem:[#allocation71_spill] sm:$0xff] %v4749_v53  ;;  %v1485_v53 = vstv %s3888_s19  ;;  %v1427_v61 = vsel %vm1033_vm3, %v1424_v54, %v1426_v9  ;;  %s5438_s19 = sld [smem:[#allocation2 + $0x1f]] }
 0x166   :  { %6594 = vst [vmem:[#allocation72_spill] sm:$0xff] %v4751_v20  ;;  %v1486_v47 = vmul.f32 %v1485_v53, %v4115_v43  ;;  %v1487_v15 = vmul.f32 %v1485_v53, %v4130_v58  ;;  %v1490_v54 = vmul.f32 %v1485_v53, %v4123_v51  ;;  %v1491_v9 = vmul.f32 %v1485_v53, %v4296_v0 }
 0x168   :  { %1432 = vrot.lane.b32.xlu1 %v1425_v1, %s4018_s29  ;;  %v1459_v1 = vsel %vm1033_vm3, %v1457_v13, %v1458_v55  ;;  %v1499_v25 = vrot.slane %v1487_v15, 2  ;;  %v1463_v55 = vrot.slane %v1449_v19, 2  ;;  %v1465_v13 = vrot.slane %v1450_v27, 2 }
 0x169   :  { %v1504_v19 = vrot.slane %v1490_v54, 2  ;;  %v1506_v27 = vrot.slane %v1491_v9, 2 }
 0x16a   :  { %1430 = vrot.lane.b32.xlu0 %v1422_v45, %s4018_s29  ;;  %v4762_v20 = vpop.permute.xlu1 %963  ;;  %1428 = vrot.lane.b32.xlu2 %v1420_v62, %s4018_s29  ;;  %v1448_v45 = vmul.f32 %v1444_v6, %v4149_v17  ;;  %v1498_v62 = vrot.slane %v1486_v47, 2  ;;  %v1466_v47 = vsel %vm1033_vm3, %v1463_v55, %v1465_v13 }
 0x16b   :  { %6595 = vst [vmem:[#allocation73_spill] sm:$0xff] %v4762_v20 }
 0x16c   :  { %v4765_v49 = vpop.permute.xlu0 %928  ;;  %v4767_v38 = vpop.permute.xlu2 %1008  ;;  %v1500_v6 = vsel %vm1033_vm3, %v1498_v62, %v1499_v25  ;;  %v1524_v62 = vstv %s3889_s21  ;;  %s5477_s21 = sld [smem:[#allocation2 + $0x15]] }
 0x16d   :  { %6596 = vst [vmem:[#allocation74_spill] sm:$0xff] %v4765_v49  ;;  %v1526_v54 = vmul.f32 %v1524_v62, %v4151_v18  ;;  %v1527_v9 = vmul.f32 %v1524_v62, %v4318_v29 }
 0x16e   :  { %6597 = vst [vmem:[#allocation75_spill] sm:$0xff] %v4767_v38  ;;  %v1462_v38 = vrot.slane %v1448_v45, 2 }
 0x170   :  { %1469 = vrot.lane.b32.xlu1 %v1461_v44, %s4018_s29  ;;  %v1489_v44 = vmul.f32 %v1485_v53, %v4103_v33  ;;  %v1464_v15 = vsel %vm1033_vm3, %v1462_v38, %v1463_v55  ;;  %v1528_v38 = vmul.f32 %v1524_v62, %v4149_v17  ;;  %v1529_v55 = vmul.f32 %v1524_v62, %v4145_v16 }
 0x172   :  { %1467 = vrot.lane.b32.xlu0 %v1459_v1, %s4018_s29  ;;  %v4779_v26 = vpop.permute.xlu1 %969  ;;  %1434 = vrot.lane.b32.xlu2 %v1427_v61, %s4018_s29  ;;  %v1488_v1 = vmul.f32 %v1485_v53, %v4257_v28  ;;  %v1503_v45 = vrot.slane %v1489_v44, 2  ;;  %v1507_v53 = vsel %vm1033_vm3, %v1504_v19, %v1506_v27 }
 0x173   :  { %6598 = vst [vmem:[#allocation76_spill] sm:$0xff] %v4779_v26 }
 0x174   :  { %v4782_v20 = vpop.permute.xlu0 %967  ;;  %v4784_v49 = vpop.permute.xlu2 %1112 }
 0x175   :  { %6599 = vst [vmem:[#allocation77_spill] sm:$0xff] %v4782_v20 }
 0x176   :  { %6600 = vst [vmem:[#allocation78_spill] sm:$0xff] %v4784_v49  ;;  %v1501_v49 = vrot.slane %v1488_v1, 2  ;;  %v1543_v1 = vrot.slane %v1529_v55, 2 }
 0x178   :  { %1508 = vrot.lane.b32.xlu1 %v1500_v6, %s4019_s9  ;;  %v1505_v6 = vsel %vm1033_vm3, %v1503_v45, %v1504_v19  ;;  %v1502_v44 = vsel %vm1033_vm3, %v1499_v25, %v1501_v49  ;;  %v1538_v19 = vrot.slane %v1526_v54, 2  ;;  %v1540_v45 = vrot.slane %v1527_v9, 2 }
 0x179   :  { %v1530_v54 = vmul.f32 %v1524_v62, %v4312_v23 }
 0x17a   :  { %1473 = vrot.lane.b32.xlu0 %v1466_v47, %s4018_s29  ;;  %v4795_v61 = vpop.permute.xlu1 %1006  ;;  %1471 = vrot.lane.b32.xlu2 %v1464_v15, %s4018_s29  ;;  %v1525_v47 = vmul.f32 %v1524_v62, %v4141_v10  ;;  %v1542_v15 = vrot.slane %v1528_v38, 2 }
 0x17b   :  { %6601 = vst [vmem:[#allocation79_spill] sm:$0xff] %v4795_v61 }
 0x17c   :  { %v4798_v20 = vpop.permute.xlu0 %1004  ;;  %v4800_v13 = vpop.permute.xlu2 %1149  ;;  %v1537_v61 = vrot.slane %v1525_v47, 2  ;;  %v1544_v25 = vsel %vm1033_vm3, %v1542_v15, %v1543_v1 }
 0x17d   :  { %6602 = vst [vmem:[#allocation80_spill] sm:$0xff] %v4798_v20 }
 0x17e   :  { %6603 = vst [vmem:[#allocation81_spill] sm:$0xff] %v4800_v13  ;;  %v1630_v13 = vstv %s3892_s23  ;;  %s5496_s23 = sld [smem:[#allocation2 + $0x46]] }
 0x17f   :  { %v1633_v38 = vmul.f32 %v1630_v13, %v4257_v28  ;;  %v1631_v55 = vmul.f32 %v1630_v13, %v4115_v43 }
 0x180   :  { %1514 = vrot.lane.b32.xlu1 %v1507_v53, %s4019_s9  ;;  %v1632_v53 = vmul.f32 %v1630_v13, %v4130_v58 }
 0x181   :  { %v1646_v47 = vrot.slane %v1633_v38, 3  ;;  %v1643_v15 = vrot.slane %v1631_v55, 3  ;;  %v1636_v38 = vmul.f32 %v1630_v13, %v4296_v0 }
 0x182   :  { %1512 = vrot.lane.b32.xlu0 %v1505_v6, %s4019_s9  ;;  %v4812_v27 = vpop.permute.xlu1 %1110  ;;  %1510 = vrot.lane.b32.xlu2 %v1502_v44, %s4019_s9  ;;  %v1541_v6 = vsel %vm1033_vm3, %v1538_v19, %v1540_v45  ;;  %v1539_v44 = vsel %vm1033_vm3, %v1537_v61, %v1538_v19  ;;  %v1644_v9 = vrot.slane %v1632_v53, 3  ;;  %v1635_v53 = vmul.f32 %v1630_v13, %v4123_v51 }
 0x183   :  { %6604 = vst [vmem:[#allocation82_spill] sm:$0xff] %v4812_v27  ;;  %v1545_v27 = vrot.slane %v1530_v54, 2 }
 0x184   :  { %v4815_v20 = vpop.permute.xlu0 %1108  ;;  %v4817_v49 = vpop.permute.xlu2 %1188  ;;  %v1647_v61 = vsel %vm1578_vm4, %v1644_v9, %v1646_v47 }
 0x185   :  { %6605 = vst [vmem:[#allocation83_spill] sm:$0xff] %v4815_v20  ;;  %v1669_v20 = vstv %s3893_s24  ;;  %v1546_v55 = vsel %vm1033_vm3, %v1543_v1, %v1545_v27  ;;  %s5506_s24 = sld [smem:[#allocation2 + $0x50]] }
 0x186   :  { %6606 = vst [vmem:[#allocation84_spill] sm:$0xff] %v4817_v49  ;;  %v1670_v62 = vmul.f32 %v1669_v20, %v4141_v10  ;;  %v1671_v19 = vmul.f32 %v1669_v20, %v4151_v18  ;;  %v1674_v1 = vmul.f32 %v1669_v20, %v4145_v16  ;;  %v1675_v27 = vmul.f32 %v1669_v20, %v4312_v23 }
 0x188   :  { %1551 = vrot.lane.b32.xlu1 %v1544_v25, %s4019_s9  ;;  %v1645_v25 = vsel %vm1578_vm4, %v1643_v15, %v1644_v9  ;;  %v1683_v54 = vrot.slane %v1671_v19, 3  ;;  %v1649_v9 = vrot.slane %v1635_v53, 3  ;;  %v1651_v15 = vrot.slane %v1636_v38, 3 }
 0x189   :  { %v1688_v53 = vrot.slane %v1674_v1, 3  ;;  %v1690_v38 = vrot.slane %v1675_v27, 3 }
 0x18a   :  { %1549 = vrot.lane.b32.xlu0 %v1541_v6, %s4019_s9  ;;  %v4828_v49 = vpop.permute.xlu1 %1147  ;;  %1547 = vrot.lane.b32.xlu2 %v1539_v44, %s4019_s9  ;;  %v1634_v6 = vmul.f32 %v1630_v13, %v4103_v33  ;;  %v1682_v44 = vrot.slane %v1670_v62, 3  ;;  %v1652_v62 = vsel %vm1578_vm4, %v1649_v9, %v1651_v15 }
 0x18b   :  { %6607 = vst [vmem:[#allocation85_spill] sm:$0xff] %v4828_v49 }
 0x18c   :  { %v4831_v26 = vpop.permute.xlu0 %1114  ;;  %v4833_v45 = vpop.permute.xlu2 %1194  ;;  %v1684_v13 = vsel %vm1578_vm4, %v1682_v44, %v1683_v54  ;;  %v1710_v44 = vstv %s3894_s0  ;;  %s5546_s0 = sld [smem:[#allocation2 + $0x20]] }
 0x18d   :  { %6608 = vst [vmem:[#allocation86_spill] sm:$0xff] %v4831_v26  ;;  %v1712_v1 = vmul.f32 %v1710_v44, %v4130_v58  ;;  %v1713_v27 = vmul.f32 %v1710_v44, %v4257_v28 }
 0x18e   :  { %6609 = vst [vmem:[#allocation87_spill] sm:$0xff] %v4833_v45  ;;  %v1648_v45 = vrot.slane %v1634_v6, 3 }
 0x190   :  { %1655 = vrot.lane.b32.xlu1 %v1647_v61, %s4014_s18  ;;  %v1673_v61 = vmul.f32 %v1669_v20, %v4149_v17  ;;  %v1650_v19 = vsel %vm1578_vm4, %v1648_v45, %v1649_v9  ;;  %v1714_v45 = vmul.f32 %v1710_v44, %v4103_v33  ;;  %v1715_v9 = vmul.f32 %v1710_v44, %v4123_v51 }
 0x192   :  { %1653 = vrot.lane.b32.xlu0 %v1645_v25, %s4014_s18  ;;  %v4845_v47 = vpop.permute.xlu1 %1153  ;;  %1553 = vrot.lane.b32.xlu2 %v1546_v55, %s4019_s9  ;;  %v1672_v25 = vmul.f32 %v1669_v20, %v4318_v29  ;;  %v1687_v6 = vrot.slane %v1673_v61, 3  ;;  %v1691_v20 = vsel %vm1578_vm4, %v1688_v53, %v1690_v38 }
 0x193   :  { %6610 = vst [vmem:[#allocation88_spill] sm:$0xff] %v4845_v47 }
 0x194   :  { %v4848_v49 = vpop.permute.xlu0 %1151  ;;  %v4850_v26 = vpop.permute.xlu2 %1231 }
 0x195   :  { %6611 = vst [vmem:[#allocation89_spill] sm:$0xff] %v4848_v49 }
 0x196   :  { %6612 = vst [vmem:[#allocation90_spill] sm:$0xff] %v4850_v26  ;;  %v1685_v26 = vrot.slane %v1672_v25, 3  ;;  %v1729_v25 = vrot.slane %v1715_v9, 3 }
 0x198   :  { %1692 = vrot.lane.b32.xlu1 %v1684_v13, %s4014_s18  ;;  %v1689_v13 = vsel %vm1578_vm4, %v1687_v6, %v1688_v53  ;;  %v1686_v61 = vsel %vm1578_vm4, %v1683_v54, %v1685_v26  ;;  %v1724_v53 = vrot.slane %v1712_v1, 3  ;;  %v1726_v6 = vrot.slane %v1713_v27, 3 }
 0x199   :  { %v1716_v1 = vmul.f32 %v1710_v44, %v4296_v0 }
 0x19a   :  { %1659 = vrot.lane.b32.xlu0 %v1652_v62, %s4014_s18  ;;  %v4861_v55 = vpop.permute.xlu1 %1192  ;;  %1657 = vrot.lane.b32.xlu2 %v1650_v19, %s4014_s18  ;;  %v1711_v62 = vmul.f32 %v1710_v44, %v4115_v43  ;;  %v1728_v19 = vrot.slane %v1714_v45, 3 }
 0x19b   :  { %6613 = vst [vmem:[#allocation91_spill] sm:$0xff] %v4861_v55 }
 0x19c   :  { %v4864_v49 = vpop.permute.xlu0 %1190  ;;  %v4866_v15 = vpop.permute.xlu2 %1270  ;;  %v1723_v55 = vrot.slane %v1711_v62, 3  ;;  %v1730_v54 = vsel %vm1578_vm4, %v1728_v19, %v1729_v25 }
 0x19d   :  { %6614 = vst [vmem:[#allocation92_spill] sm:$0xff] %v4864_v49 }
 0x19e   :  { %6615 = vst [vmem:[#allocation93_spill] sm:$0xff] %v4866_v15  ;;  %v1749_v15 = vstv %s3895_s25  ;;  %s5602_s25 = sld [smem:[#allocation2 + $0x51]] }
 0x19f   :  { %v1752_v45 = vmul.f32 %v1749_v15, %v4318_v29  ;;  %v1750_v9 = vmul.f32 %v1749_v15, %v4141_v10 }
 0x1a0   :  { %1698 = vrot.lane.b32.xlu1 %v1691_v20, %s4014_s18  ;;  %v1751_v20 = vmul.f32 %v1749_v15, %v4151_v18 }
 0x1a1   :  { %v1765_v62 = vrot.slane %v1752_v45, 3  ;;  %v1762_v19 = vrot.slane %v1750_v9, 3  ;;  %v1755_v45 = vmul.f32 %v1749_v15, %v4312_v23 }
 0x1a2   :  { %1696 = vrot.lane.b32.xlu0 %v1689_v13, %s4014_s18  ;;  %v4878_v38 = vpop.permute.xlu1 %1229  ;;  %1694 = vrot.lane.b32.xlu2 %v1686_v61, %s4014_s18  ;;  %v1727_v13 = vsel %vm1578_vm4, %v1724_v53, %v1726_v6  ;;  %v1725_v61 = vsel %vm1578_vm4, %v1723_v55, %v1724_v53  ;;  %v1763_v27 = vrot.slane %v1751_v20, 3  ;;  %v1754_v20 = vmul.f32 %v1749_v15, %v4145_v16 }
 0x1a3   :  { %6616 = vst [vmem:[#allocation94_spill] sm:$0xff] %v4878_v38  ;;  %v1731_v38 = vrot.slane %v1716_v1, 3 }
 0x1a4   :  { %v4881_v49 = vpop.permute.xlu0 %1227  ;;  %v4883_v26 = vpop.permute.xlu2 %1307  ;;  %v1766_v55 = vsel %vm1578_vm4, %v1763_v27, %v1765_v62 }
 0x1a5   :  { %6617 = vst [vmem:[#allocation95_spill] sm:$0xff] %v4881_v49  ;;  %v1790_v49 = vstv %s3896_s27  ;;  %v1732_v9 = vsel %vm1578_vm4, %v1729_v25, %v1731_v38  ;;  %s5695_s27 = sld [smem:[#allocation2 + $0x21]] }
 0x1a6   :  { %6618 = vst [vmem:[#allocation96_spill] sm:$0xff] %v4883_v26  ;;  %v1791_v44 = vmul.f32 %v1790_v49, %v4115_v43  ;;  %v1792_v53 = vmul.f32 %v1790_v49, %v4130_v58  ;;  %v1795_v25 = vmul.f32 %v1790_v49, %v4123_v51  ;;  %v1796_v38 = vmul.f32 %v1790_v49, %v4296_v0 }
 0x1a8   :  { %1737 = vrot.lane.b32.xlu1 %v1730_v54, %s4015_s20  ;;  %v1764_v54 = vsel %vm1578_vm4, %v1762_v19, %v1763_v27  ;;  %v1804_v1 = vrot.slane %v1792_v53, 3  ;;  %v1768_v27 = vrot.slane %v1754_v20, 3  ;;  %v1770_v19 = vrot.slane %v1755_v45, 3 }
 0x1a9   :  { %v1809_v20 = vrot.slane %v1795_v25, 3  ;;  %v1811_v45 = vrot.slane %v1796_v38, 3  ;;  %v152_v25 = vstv %s3849_s3  ;;  %s5749_s3 = sld [smem:[#allocation2 + $0x4d]] }
 0x1aa   :  { %1735 = vrot.lane.b32.xlu0 %v1727_v13, %s4015_s20  ;;  %v4894_v26 = vpop.permute.xlu1 %1268  ;;  %1733 = vrot.lane.b32.xlu2 %v1725_v61, %s4015_s20  ;;  %v1753_v13 = vmul.f32 %v1749_v15, %v4149_v17  ;;  %v1803_v61 = vrot.slane %v1791_v44, 3  ;;  %v1771_v44 = vsel %vm1578_vm4, %v1768_v27, %v1770_v19  ;;  %v154_v56 = vmul.f32 %v152_v25, %v4151_v18 }
 0x1ab   :  { %6619 = vst [vmem:[#allocation97_spill] sm:$0xff] %v4894_v26 }
 0x1ac   :  { %v4897_v47 = vpop.permute.xlu0 %1233  ;;  %v4899_v6 = vpop.permute.xlu2 %1313  ;;  %v1805_v15 = vsel %vm1578_vm4, %v1803_v61, %v1804_v1  ;;  %v1829_v61 = vstv %s3897_s28  ;;  %s5714_s28 = sld [smem:[#allocation2 + $0x52]] }
 0x1ad   :  { %6620 = vst [vmem:[#allocation98_spill] sm:$0xff] %v4897_v47 }
 0x1ae   :  { %6621 = vst [vmem:[#allocation99_spill] sm:$0xff] %v4899_v6  ;;  %v1767_v6 = vrot.slane %v1753_v13, 3 }
 0x1b0   :  { %1774 = vrot.lane.b32.xlu1 %v1766_v55, %s4015_s20  ;;  %v1794_v55 = vmul.f32 %v1790_v49, %v4103_v33  ;;  %v1769_v53 = vsel %vm1578_vm4, %v1767_v6, %v1768_v27  ;;  %v1833_v6 = vmul.f32 %v1829_v61, %v4149_v17  ;;  %v4937_v27 = vmul.f32 %v1829_v61, %v4145_v16 }
 0x1b2   :  { %1772 = vrot.lane.b32.xlu0 %v1764_v54, %s4015_s20  ;;  %v4911_v62 = vpop.permute.xlu1 %1274  ;;  %1739 = vrot.lane.b32.xlu2 %v1732_v9, %s4015_s20  ;;  %v1793_v54 = vmul.f32 %v1790_v49, %v4257_v28  ;;  %v1808_v13 = vrot.slane %v1794_v55, 3  ;;  %v1812_v49 = vsel %vm1578_vm4, %v1809_v20, %v1811_v45  ;;  %v1831_v55 = vmul.f32 %v1829_v61, %v4151_v18 }
 0x1b3   :  { %6622 = vst [vmem:[#allocation100_spill] sm:$0xff] %v4911_v62  ;;  %v1847_v45 = vrot.slane %v1833_v6, 3 }
 0x1b4   :  { %v4914_v47 = vpop.permute.xlu0 %1272  ;;  %v4916_v26 = vpop.permute.xlu2 %1352  ;;  %v1810_v38 = vsel %vm1578_vm4, %v1808_v13, %v1809_v20  ;;  %v1870_v13 = vstv %s3898_s4  ;;  %s5759_s4 = sld [smem:[#allocation2 + $0x22]] }
 0x1b5   :  { %6623 = vst [vmem:[#allocation101_spill] sm:$0xff] %v4914_v47 }
 0x1b6   :  { %6624 = vst [vmem:[#allocation102_spill] sm:$0xff] %v4916_v26  ;;  %v1806_v26 = vrot.slane %v1793_v54, 3  ;;  %v1830_v54 = vmul.f32 %v1829_v61, %v4141_v10 }
 0x1b8   :  { %1813 = vrot.lane.b32.xlu1 %v1805_v15, %s4016_s22  ;;  %v143_v15 = vstv %s141_s30  ;;  %v1842_v62 = vrot.slane %v1830_v54, 3  ;;  %s5746_s30 = sld [smem:[#allocation2 + $0x1c]] }
 0x1b9   :  { %v147_v39 = vmul.f32 %v143_v15, %v4123_v51  ;;  %v146_v7 = vmul.f32 %v143_v15, %v4103_v33 }
 0x1ba   :  { %1778 = vrot.lane.b32.xlu0 %v1771_v44, %s4015_s20  ;;  %v4927_v9 = vpop.permute.xlu1 %1311  ;;  %1776 = vrot.lane.b32.xlu2 %v1769_v53, %s4015_s20  ;;  %v1832_v44 = vmul.f32 %v1829_v61, %v4318_v29  ;;  %v1807_v53 = vsel %vm1578_vm4, %v1804_v1, %v1806_v26  ;;  %v1843_v26 = vrot.slane %v1831_v55, 3  ;;  %v156_v55 = vmul.f32 %v152_v25, %v4145_v16 }
 0x1bb   :  { %6625 = vst [vmem:[#allocation103_spill] sm:$0xff] %v4927_v9  ;;  %v153_v9 = vmul.f32 %v152_v25, %v4141_v10 }
 0x1bc   :  { %v4930_v47 = vpop.permute.xlu0 %1309  ;;  %v4932_v19 = vpop.permute.xlu2 %1389  ;;  %v1845_v1 = vrot.slane %v1832_v44, 3  ;;  %v1871_v44 = vmul.f32 %v1870_v13, %v4115_v43  ;;  %v160_v59 = vadd.f32 %v156_v55, %v147_v39 }
 0x1bd   :  { %6626 = vst [vmem:[#allocation104_spill] sm:$0xff] %v4930_v47  ;;  %v144_v47 = vmul.f32 %v143_v15, %v4115_v43 }
 0x1be   :  { %6627 = vst [vmem:[#allocation105_spill] sm:$0xff] %v4932_v19  ;;  %v1848_v19 = vrot.slane %v4937_v27, 3  ;;  %v1846_v54 = vsel %vm1578_vm4, %v1843_v26, %v1845_v1  ;;  %v1883_v1 = vrot.slane %v1871_v44, 3 }
 0x1bf   :  { %v157_v21 = vadd.f32 %v153_v9, %v144_v47 }
 0x1c0   :  { %1819 = vrot.lane.b32.xlu1 %v1812_v49, %s4016_s22  ;;  %v145_v49 = vmul.f32 %v143_v15, %v4130_v58 }
 0x1c1   :  { %v184_v42 = vadd.f32 %v4270_v36, %v157_v21 }
 0x1c2   :  { %1817 = vrot.lane.b32.xlu0 %v1810_v38, %s4016_s22  ;;  %v4949_v20 = vpop.permute.xlu1 %1350  ;;  %1815 = vrot.lane.b32.xlu2 %v1807_v53, %s4016_s22  ;;  %v1849_v38 = vsel %vm1578_vm4, %v1847_v45, %v1848_v19  ;;  %v1873_v53 = vmul.f32 %v1870_v13, %v4257_v28  ;;  %v155_v45 = vmul.f32 %v152_v25, %v4149_v17 }
 0x1c3   :  { %6628 = vst [vmem:[#allocation106_spill] sm:$0xff] %v4949_v20  ;;  %v1872_v20 = vmul.f32 %v1870_v13, %v4130_v58  ;;  %v158_v47 = vadd.f32 %v154_v56, %v145_v49  ;;  %v209_v21 = vadd.f32 %v4225_v3, %v184_v42  ;;  %v187_v49 = vadd.f32 %v4291_v60, %v160_v59 }
 0x1c4   :  { %v4955_v6 = vpop.permute.xlu0 %1348  ;;  %v4957_v27 = vpop.permute.xlu2 %1428  ;;  %v1886_v48 = vrot.slane %v1873_v53, 3  ;;  %v159_v25 = vadd.f32 %v155_v45, %v146_v7  ;;  %v1875_v7 = vmul.f32 %v1870_v13, %v4123_v51 }
 0x1c5   :  { %6629 = vst [vmem:[#allocation107_spill] sm:$0xff] %v4955_v6  ;;  %v1835_v6 = vmul.f32 %v1829_v61, %v4312_v23  ;;  %v1884_v9 = vrot.slane %v1872_v20, 3  ;;  %v185_v56 = vadd.f32 %v4298_v2, %v158_v47  ;;  %v1874_v2 = vmul.f32 %v1870_v13, %v4103_v33 }
 0x1c6   :  { %6630 = vst [vmem:[#allocation108_spill] sm:$0xff] %v4957_v27  ;;  %v1844_v27 = vsel %vm1578_vm4, %v1842_v62, %v1843_v26  ;;  %v1909_v62 = vstv %s4952_s5  ;;  %v212_v53 = vadd.f32 %v4315_v24, %v187_v49  ;;  %v236_v42 = vadd.f32 %v4272_v37, %v209_v21  ;;  %s5839_s5 = sld [smem:[#allocation2 + $0x53]] }
 0x1c7   :  { %v1850_v61 = vrot.slane %v1835_v6, 3  ;;  %v1887_v20 = vsel %vm1578_vm4, %v1884_v9, %v1886_v48  ;;  %v1910_v36 = vmul.f32 %v1909_v62, %v4141_v10  ;;  %v4986_v39 = vmul.f32 %v1909_v62, %v4151_v18 }
 0x1c8   :  { %1856 = vrot.lane.b32.xlu1 %v1849_v38, %s4016_s22  ;;  %v1885_v6 = vsel %vm1578_vm4, %v1883_v1, %v1884_v9  ;;  %v186_v48 = vadd.f32 %v4263_v30, %v159_v25  ;;  %v210_v3 = vadd.f32 %v4242_v14, %v185_v56  ;;  %v1889_v14 = vrot.slane %v1875_v7, 3 }
 0x1c9   :  { %v1851_v38 = vsel %vm1578_vm4, %v1848_v19, %v1850_v61  ;;  %v1922_v60 = vrot.slane %v1910_v36, 3  ;;  %v1923_v59 = vrot.slane %v4986_v39, 3  ;;  %v239_v44 = vadd.f32 %v4300_v4, %v212_v53 }
 0x1ca   :  { %1854 = vrot.lane.b32.xlu0 %v1846_v54, %s4016_s22  ;;  %v4974_v22 = vpop.permute.xlu1 %1387  ;;  %1852 = vrot.lane.b32.xlu2 %v1844_v27, %s4016_s22  ;;  %v1876_v27 = vmul.f32 %v1870_v13, %v4296_v0  ;;  %v211_v55 = vadd.f32 %v4320_v31, %v186_v48  ;;  %v237_v30 = vadd.f32 %v4336_v50, %v210_v3  ;;  %v1888_v13 = vrot.slane %v1874_v2, 3 }
 0x1cb   :  { %v261_v31 = vadd.f32 %v4353_v11, %v236_v42  ;;  %v1924_v9 = vsel %vm1578_vm4, %v1922_v60, %v1923_v59  ;;  %v1914_v50 = vmul.f32 %v1909_v62, %v4145_v16  ;;  %v1915_v1 = vmul.f32 %v1909_v62, %v4312_v23 }
 0x1cc   :  { %v4978_v26 = vpop.permute.xlu0 %1354  ;;  %v4980_v15 = vpop.permute.xlu2 %1434  ;;  %v1891_v24 = vrot.slane %v1876_v27, 3  ;;  %v238_v37 = vadd.f32 %v4333_v46, %v211_v55  ;;  %v262_v47 = vadd.f32 %v4350_v5, %v237_v30  ;;  %v264_v4 = vadd.f32 %v4369_v40, %v239_v44  ;;  %v6633_v44 = vld [vmem:[#allocation11_spill] sm:$0xff] }
 0x1cd   :  { %v288_v61 = vadd.f32 %v4366_v34, %v261_v31  ;;  %v1913_v46 = vmul.f32 %v1909_v62, %v4149_v17  ;;  %v1890_v25 = vsel %vm1578_vm4, %v1888_v13, %v1889_v14  ;;  %v1912_v5 = vmul.f32 %v1909_v62, %v4318_v29  ;;  %v6634_v31 = vld [vmem:[#allocation13_spill] sm:$0xff] }
 0x1ce   :  { %v1892_v11 = vsel %vm1578_vm4, %v1889_v14, %v1891_v24  ;;  %v291_v56 = vadd.f32 %v4383_v57, %v264_v4  ;;  %v289_v34 = vadd.f32 %v4338_v52, %v262_v47  ;;  %v1928_v36 = vrot.slane %v1914_v50, 3  ;;  %v6632_v24 = vld [vmem:[#allocation9_spill] sm:$0xff] }
 0x1cf   :  { %v1930_v40 = vrot.slane %v1915_v1, 3  ;;  %v313_v39 = vadd.f32 %v4355_v12, %v288_v61  ;;  %v5036_v21 = vstv %s4999_s6  ;;  %v1950_v57 = vstv %s5008_s7  ;;  %s5879_s6 = sld [smem:[#allocation2 + $0x24]] }
 0x1d0   :  { %1895 = vrot.lane.b32.xlu1 %v1887_v20, %s4017_s26  ;;  %v263_v20 = vadd.f32 %v4322_v32, %v238_v37  ;;  %v5046_v62 = vstv %s5011_s8  ;;  %v1925_v32 = vrot.slane %v1912_v5, 3  ;;  %v316_v7 = vadd.f32 %v4371_v41, %v291_v56  ;;  %s3921_s7 = sld [smem:[#allocation2 + $0x55]] }
 0x1d1   :  { %v314_v12 = vadd.f32 %v4402_v35, %v289_v34  ;;  %v340_v27 = vadd.f32 %v4419_v8, %v313_v39  ;;  %v476_v48 = vmul.f32 %v5036_v21, %v4115_v43  ;;  %v1931_v53 = vsel %vm1578_vm4, %v1928_v36, %v1930_v40  ;;  %v6637_v39 = vld [vmem:[#allocation10_spill] sm:$0xff]  ;;  %s3922_s8 = sld [smem:[#allocation2 + $0x25]] }
 0x1d2   :  { %1893 = vrot.lane.b32.xlu0 %v1885_v6, %s4017_s26  ;;  %v5005_v19 = vpop.permute.xlu1 %1393  ;;  %1858 = vrot.lane.b32.xlu2 %v1851_v38, %s4016_s22  ;;  %v1927_v6 = vrot.slane %v1913_v46, 3  ;;  %v290_v52 = vadd.f32 %v4386_v63, %v263_v20  ;;  %v1954_v3 = vmul.f32 %v1950_v57, %v4103_v33  ;;  %v5061_v60 = vmul.f32 %v1950_v57, %v4123_v51 }
 0x1d3   :  { %v5065_v41 = vmul.f32 %v5036_v21, %v4130_v58  ;;  %v508_v63 = vmul.f32 %v5046_v62, %v4141_v10  ;;  %v5071_v35 = vmul.f32 %v5046_v62, %v4151_v18  ;;  %v1952_v42 = vmul.f32 %v1950_v57, %v4130_v58 }
 0x1d4   :  { %v5016_v54 = vpop.permute.xlu0 %1391  ;;  %v5018_v45 = vpop.permute.xlu2 %1471  ;;  %v1929_v8 = vsel %vm1578_vm4, %v1927_v6, %v1928_v36  ;;  %v1953_v55 = vmul.f32 %v1950_v57, %v4257_v28  ;;  %v1926_v30 = vsel %vm1578_vm4, %v1923_v59, %v1925_v32  ;;  %v1951_v14 = vmul.f32 %v1950_v57, %v4115_v43  ;;  %v6636_v36 = vld [vmem:[#allocation8_spill] sm:$0xff] }
 0x1d5   :  { %v315_v13 = vadd.f32 %v6632_v24, %v290_v52  ;;  %v341_v37 = vadd.f32 %v6633_v44, %v314_v12  ;;  %v365_v47 = vadd.f32 %v6634_v31, %v340_v27  ;;  %v489_v1 = vrot.slane %v476_v48, 1  ;;  %v6638_v32 = vld [vmem:[#allocation16_spill] sm:$0xff]  ;;  %v6642_v31 = vld [vmem:[#allocation15_spill] sm:$0xff] }
 0x1d6   :  { %v1968_v61 = vrot.slane %v1954_v3, 3  ;;  %v1969_v4 = vrot.slane %v5061_v60, 3  ;;  %v6527_v46 = vrot.slane %v5065_v41, 1  ;;  %v520_v59 = vrot.slane %v508_v63, 1  ;;  %v6640_v27 = vld [vmem:[#allocation12_spill] sm:$0xff] }
 0x1d7   :  { %v1989_v5 = vstv %s5043_s10  ;;  %v1964_v56 = vrot.slane %v1952_v42, 3  ;;  %v1966_v20 = vrot.slane %v1953_v55, 3  ;;  %v1963_v34 = vrot.slane %v1951_v14, 3  ;;  %s3923_s10 = sld [smem:[#allocation2 + $0x56]] }
 0x1d8   :  { %1932 = vrot.lane.b32.xlu1 %v1924_v9, %s4017_s26  ;;  %v6635_v9 = vld [vmem:[#allocation14_spill] sm:$0xff]  ;;  %v342_v40 = vadd.f32 %v6636_v36, %v315_v13  ;;  %v366_v6 = vadd.f32 %v6637_v39, %v341_v37  ;;  %v392_v48 = vadd.f32 %v6640_v27, %v365_v47  ;;  %v1991_v3 = vmul.f32 %v1989_v5, %v4151_v18 }
 0x1d9   :  { %v343_v50 = vadd.f32 %v6635_v9, %v316_v7  ;;  %v1992_v63 = vmul.f32 %v1989_v5, %v4318_v29  ;;  %v5110_v55 = vsel %vm488_vm2, %v489_v1, %v6527_v46  ;;  %v1990_v14 = vmul.f32 %v1989_v5, %v4141_v10  ;;  %v6643_v9 = vld [vmem:[#allocation19_spill] sm:$0xff]  ;;  %v6653_v46 = vld [vmem:[#allocation21_spill] sm:$0xff] }
 0x1da   :  { %1899 = vrot.lane.b32.xlu0 %v1892_v11, %s4017_s26  ;;  %v5039_v49 = vpop.permute.xlu1 %1432  ;;  %1897 = vrot.lane.b32.xlu2 %v1890_v25, %s4017_s26  ;;  %v6526_v11 = vrot.slane %v5071_v35, 1  ;;  %v5120_v24 = vmul.f32 %v5036_v21, %v4123_v51  ;;  %v1967_v13 = vsel %vm1578_vm4, %v1964_v56, %v1966_v20  ;;  %v1965_v44 = vsel %vm1578_vm4, %v1963_v34, %v1964_v56  ;;  %v6644_v34 = vld [vmem:[#allocation20_spill] sm:$0xff] }
 0x1db   :  { %v368_v52 = vadd.f32 %v6638_v32, %v343_v50  ;;  %v1956_v37 = vmul.f32 %v1950_v57, %v4296_v0  ;;  %v481_v1 = vmul.f32 %v5036_v21, %v4296_v0  ;;  %v478_v57 = vmul.f32 %v5036_v21, %v4257_v28 }
 0x1dc   :  { %v5052_v38 = vpop.permute.xlu0 %1430  ;;  %v5054_v2 = vpop.permute.xlu2 %1510  ;;  %v2003_v56 = vrot.slane %v1991_v3, 3  ;;  %v2005_v20 = vrot.slane %v1992_v63, 3  ;;  %v393_v36 = vadd.f32 %v6644_v34, %v366_v6  ;;  %v2030_v27 = vstv %s5091_s11  ;;  %v6646_v3 = vld [vmem:[#allocation18_spill] sm:$0xff]  ;;  %s3924_s11 = sld [smem:[#allocation2 + $0x26]] }
 0x1dd   :  { %6631 = vst [vmem:[#allocation109_spill] sm:$0xff] %v5054_v2  ;;  %v395_v47 = vadd.f32 %v6642_v31, %v368_v52  ;;  %v2002_v52 = vrot.slane %v1990_v14, 3  ;;  %v1971_v6 = vrot.slane %v1956_v37, 3  ;;  %v6647_v63 = vld [vmem:[#allocation22_spill] sm:$0xff]  ;;  %v5164_v37 = vmul.f32 %v2030_v27, %v4130_v58  ;;  %v6657_v2 = vld [vmem:[#allocation32_spill] sm:$0xff] }
 0x1de   :  { %v2006_v34 = vsel %vm1578_vm4, %v2003_v56, %v2005_v20  ;;  %v1993_v20 = vmul.f32 %v1989_v5, %v4149_v17 }
 0x1df   :  { %v2044_v60 = vrot.slane %v5164_v37, 3 }
 0x1e0   :  { %1938 = vrot.lane.b32.xlu1 %v1931_v53, %s4017_s26  ;;  %v1970_v53 = vsel %vm1578_vm4, %v1968_v61, %v1969_v4  ;;  %v479_v61 = vmul.f32 %v5036_v21, %v4103_v33  ;;  %v511_v21 = vmul.f32 %v5046_v62, %v4149_v17 }
 0x1e2   :  { %1936 = vrot.lane.b32.xlu0 %v1929_v8, %s4017_s26  ;;  %v5087_v25 = vpop.permute.xlu1 %1469  ;;  %1934 = vrot.lane.b32.xlu2 %v1926_v30, %s4017_s26  ;;  %v6641_v8 = vld [vmem:[#allocation17_spill] sm:$0xff]  ;;  %v5115_v30 = vsel %vm488_vm2, %v520_v59, %v6526_v11  ;;  %v5134_v59 = vmul.f32 %v5046_v62, %v4145_v16  ;;  %v494_v14 = vrot.slane %v479_v61, 1  ;;  %v2004_v61 = vsel %vm1578_vm4, %v2002_v52, %v2003_v56  ;;  %v6656_v56 = vld [vmem:[#allocation31_spill] sm:$0xff] }
 0x1e3   :  { %v367_v42 = vadd.f32 %v6641_v8, %v342_v40  ;;  %v6645_v40 = vld [vmem:[#allocation23_spill] sm:$0xff]  ;;  %v5148_v8 = vmul.f32 %v5046_v62, %v4312_v23  ;;  %v1995_v11 = vmul.f32 %v1989_v5, %v4312_v23 }
 0x1e4   :  { %v5096_v7 = vpop.permute.xlu0 %1467  ;;  %v5098_v12 = vpop.permute.xlu2 %1547  ;;  %v417_v39 = vadd.f32 %v6645_v40, %v392_v48  ;;  %v2031_v40 = vmul.f32 %v2030_v27, %v4115_v43 }
 0x1e5   :  { %6639 = vst [vmem:[#allocation9_spill] sm:$0xff] %v5098_v12  ;;  %v394_v50 = vadd.f32 %v6643_v9, %v367_v42  ;;  %v418_v42 = vadd.f32 %v6647_v63, %v393_v36  ;;  %v6652_v36 = vld [vmem:[#allocation29_spill] sm:$0xff]  ;;  %v6654_v12 = vld [vmem:[#allocation24_spill] sm:$0xff] }
 0x1e7   :  { %v419_v48 = vadd.f32 %v6646_v3, %v394_v50  ;;  %v6651_v50 = vld [vmem:[#allocation26_spill] sm:$0xff] }
 0x1e8   :  { %1977 = vrot.lane.b32.xlu1 %v1970_v53, %s4018_s29  ;;  %v495_v53 = vrot.slane %v5120_v24, 1  ;;  %v510_v24 = vmul.f32 %v5046_v62, %v4318_v29  ;;  %v420_v3 = vadd.f32 %v6651_v50, %v395_v47  ;;  %v1972_v62 = vsel %vm1578_vm4, %v1969_v4, %v1971_v6  ;;  %v6655_v47 = vld [vmem:[#allocation28_spill] sm:$0xff] }
 0x1e9   :  { %v446_v63 = vadd.f32 %v6652_v36, %v419_v48  ;;  %v497_v48 = vrot.slane %v481_v1, 1  ;;  %v2043_v36 = vrot.slane %v2031_v40, 3  ;;  %v525_v6 = vrot.slane %v511_v21, 1 }
 0x1ea   :  { %1975 = vrot.lane.b32.xlu0 %v1967_v13, %s4018_s29  ;;  %v5141_v32 = vpop.permute.xlu1 %1508  ;;  %1973 = vrot.lane.b32.xlu2 %v1965_v44, %s4018_s29  ;;  %v6648_v13 = vld [vmem:[#allocation25_spill] sm:$0xff]  ;;  %v447_v50 = vadd.f32 %v6655_v47, %v420_v3  ;;  %v496_v4 = vsel %vm488_vm2, %v494_v14, %v495_v53  ;;  %v6659_v1 = vrot.slane %v5065_v41, 1 }
 0x1eb   :  { %v444_v31 = vadd.f32 %v6648_v13, %v417_v39  ;;  %v492_v39 = vrot.slane %v478_v57, 1  ;;  %v1994_v13 = vmul.f32 %v1989_v5, %v4145_v16  ;;  %v526_v57 = vrot.slane %v5134_v59, 1 }
 0x1ec   :  { %v5155_v9 = vpop.permute.xlu0 %1473  ;;  %v5157_v44 = vpop.permute.xlu2 %1553  ;;  %v471_v52 = vadd.f32 %v6656_v56, %v446_v63  ;;  %v523_v5 = vrot.slane %v510_v24, 1  ;;  %v498_v14 = vsel %vm488_vm2, %v495_v53, %v497_v48  ;;  %v2045_v41 = vsel %vm1578_vm4, %v2043_v36, %v2044_v60  ;;  %v6663_v36 = vld [vmem:[#allocation35_spill] sm:$0xff] }
 0x1ed   :  { %6649 = vst [vmem:[#allocation11_spill] sm:$0xff] %v5155_v9  ;;  %v469_v9 = vadd.f32 %v6654_v12, %v444_v31  ;;  %v493_v59 = vsel %vm488_vm2, %v6659_v1, %v492_v39  ;;  %v2010_v31 = vrot.slane %v1995_v11, 3  ;;  %v2035_v63 = vmul.f32 %v2030_v27, %v4123_v51  ;;  %v6665_v1 = vld [vmem:[#allocation34_spill] sm:$0xff] }
 0x1ee   :  { %6650 = vst [vmem:[#allocation13_spill] sm:$0xff] %v5157_v44  ;;  %v445_v44 = vadd.f32 %v6653_v46, %v418_v42  ;;  %v2008_v42 = vrot.slane %v1994_v13, 3  ;;  %v505_v3 = vadd.f32 %v496_v4, %v471_v52  ;;  %v2036_v11 = vmul.f32 %v2030_v27, %v4296_v0 }
 0x1ef   :  { %v503_v21 = vadd.f32 %v5110_v55, %v469_v9  ;;  %v527_v39 = vsel %vm488_vm2, %v525_v6, %v526_v57  ;;  %v2034_v53 = vmul.f32 %v2030_v27, %v4103_v33  ;;  %v2049_v56 = vrot.slane %v2035_v63, 3 }
 0x1f0   :  { %2014 = vrot.lane.b32.xlu1 %v2006_v34, %s4018_s29  ;;  %v470_v46 = vadd.f32 %v6657_v2, %v445_v44  ;;  %v2007_v34 = vrot.slane %v1993_v20, 3  ;;  %v528_v2 = vrot.slane %v5148_v8, 1  ;;  %v6660_v44 = vld [vmem:[#allocation27_spill] sm:$0xff]  ;;  %v6662_v8 = vrot.slane %v5071_v35, 1 }
 0x1f1   :  { %v472_v24 = vadd.f32 %v6660_v44, %v447_v50  ;;  %v534_v20 = vadd.f32 %v5115_v30, %v503_v21  ;;  %v536_v48 = vadd.f32 %v527_v39, %v505_v3  ;;  %v2051_v52 = vrot.slane %v2036_v11, 3  ;;  %v6668_v44 = vld [vmem:[#allocation30_spill] sm:$0xff] }
 0x1f2   :  { %2012 = vrot.lane.b32.xlu0 %v2004_v61, %s4018_s29  ;;  %v5185_v12 = vpop.permute.xlu1 %1514  ;;  %1979 = vrot.lane.b32.xlu2 %v1972_v62, %s4018_s29  ;;  %v504_v55 = vadd.f32 %v493_v59, %v470_v46  ;;  %v524_v9 = vsel %vm488_vm2, %v6662_v8, %v523_v5  ;;  %v2011_v61 = vsel %vm1578_vm4, %v2008_v42, %v2010_v31  ;;  %v2048_v5 = vrot.slane %v2034_v53, 3  ;;  %v6666_v59 = vld [vmem:[#allocation37_spill] sm:$0xff]  ;;  %v6669_v3 = vld [vmem:[#allocation38_spill] sm:$0xff] }
 0x1f3   :  { %6658 = vst [vmem:[#allocation14_spill] sm:$0xff] %v5185_v12  ;;  %v2009_v13 = vsel %vm1578_vm4, %v2007_v34, %v2008_v42  ;;  %v2033_v62 = vmul.f32 %v2030_v27, %v4257_v28  ;;  %v506_v47 = vadd.f32 %v498_v14, %v472_v24  ;;  %v529_v50 = vsel %vm488_vm2, %v526_v57, %v528_v2  ;;  %v6670_v8 = vld [vmem:[#allocation33_spill] sm:$0xff] }
 0x1f4   :  { %v5197_v40 = vpop.permute.xlu0 %1512  ;;  %v5199_v37 = vpop.permute.xlu2 %1657  ;;  %v535_v35 = vadd.f32 %v524_v9, %v504_v55  ;;  %v575_v4 = vadd.f32 %v6663_v36, %v534_v20  ;;  %v2069_v27 = vstv %s5188_s12  ;;  %v2052_v21 = vsel %vm1578_vm4, %v2049_v56, %v2051_v52  ;;  %v6674_v52 = vld [vmem:[#allocation44_spill] sm:$0xff]  ;;  %s3925_s12 = sld [smem:[#allocation2 + $0x57]] }
 0x1f5   :  { %6661 = vst [vmem:[#allocation8_spill] sm:$0xff] %v5199_v37  ;;  %v2046_v30 = vrot.slane %v2033_v62, 3  ;;  %v537_v46 = vadd.f32 %v529_v50, %v506_v47  ;;  %v2073_v14 = vmul.f32 %v2069_v27, %v4149_v17  ;;  %v5232_v2 = vmul.f32 %v2069_v27, %v4145_v16  ;;  %v6672_v62 = vld [vmem:[#allocation40_spill] sm:$0xff]  ;;  %v6673_v47 = vld [vmem:[#allocation41_spill] sm:$0xff] }
 0x1f6   :  { %v576_v57 = vadd.f32 %v6665_v1, %v535_v35  ;;  %v614_v42 = vadd.f32 %v6666_v59, %v575_v4  ;;  %v577_v24 = vadd.f32 %v6668_v44, %v536_v48  ;;  %v2050_v63 = vsel %vm1578_vm4, %v2048_v5, %v2049_v56  ;;  %v6680_v44 = vld [vmem:[#allocation49_spill] sm:$0xff] }
 0x1f7   :  { %v2071_v11 = vmul.f32 %v2069_v27, %v4151_v18  ;;  %v2072_v39 = vmul.f32 %v2069_v27, %v4318_v29  ;;  %v2047_v55 = vsel %vm1578_vm4, %v2044_v60, %v2046_v30  ;;  %v2070_v53 = vmul.f32 %v2069_v27, %v4141_v10  ;;  %v6675_v60 = vld [vmem:[#allocation47_spill] sm:$0xff] }
 0x1f8   :  { %2053 = vrot.lane.b32.xlu1 %v2045_v41, %s4019_s9  ;;  %v578_v41 = vadd.f32 %v6669_v3, %v537_v46  ;;  %v615_v9 = vadd.f32 %v6670_v8, %v576_v57  ;;  %v616_v50 = vadd.f32 %v6673_v47, %v577_v24  ;;  %v2087_v48 = vrot.slane %v2073_v14, 3  ;;  %v6677_v30 = vld [vmem:[#allocation43_spill] sm:$0xff]  ;;  %v6679_v14 = vld [vmem:[#allocation46_spill] sm:$0xff]  ;;  %v6685_v47 = vld [vmem:[#allocation45_spill] sm:$0xff] }
 0x1f9   :  { %v2088_v56 = vrot.slane %v5232_v2, 3  ;;  %v2175_v5 = vstv %s5221_s13  ;;  %v2083_v1 = vrot.slane %v2071_v11, 3  ;;  %v2085_v57 = vrot.slane %v2072_v39, 3  ;;  %v6683_v39 = vld [vmem:[#allocation50_spill] sm:$0xff]  ;;  %s3926_s13 = sld [smem:[#allocation2 + $0x27]] }
 0x1fa   :  { %2018 = vrot.lane.b32.xlu0 %v2011_v61, %s4018_s29  ;;  %v5217_v6 = vpop.permute.xlu1 %1551  ;;  %2016 = vrot.lane.b32.xlu2 %v2009_v13, %s4018_s29  ;;  %v6671_v61 = vld [vmem:[#allocation36_spill] sm:$0xff]  ;;  %v617_v20 = vadd.f32 %v6672_v62, %v578_v41  ;;  %v656_v35 = vadd.f32 %v6674_v52, %v615_v9  ;;  %v657_v46 = vadd.f32 %v6677_v30, %v616_v50  ;;  %v2082_v59 = vrot.slane %v2070_v53, 3  ;;  %v6684_v9 = vld [vmem:[#allocation42_spill] sm:$0xff] }
 0x1fb   :  { %6664 = vst [vmem:[#allocation10_spill] sm:$0xff] %v5217_v6  ;;  %v655_v13 = vadd.f32 %v6671_v61, %v614_v42  ;;  %v6678_v42 = vld [vmem:[#allocation39_spill] sm:$0xff]  ;;  %v2178_v11 = vmul.f32 %v2175_v5, %v4257_v28  ;;  %v2176_v8 = vmul.f32 %v2175_v5, %v4115_v43 }
 0x1fc   :  { %v5225_v31 = vpop.permute.xlu0 %1549  ;;  %v5227_v34 = vpop.permute.xlu2 %1694  ;;  %v695_v2 = vadd.f32 %v6679_v14, %v656_v35  ;;  %v696_v61 = vadd.f32 %v6684_v9, %v657_v46  ;;  %v2084_v62 = vsel %vm1578_vm4, %v2082_v59, %v2083_v1  ;;  %v6687_v35 = vld [vmem:[#allocation52_spill] sm:$0xff]  ;;  %v2214_v14 = vstv %s5256_s15  ;;  %v6725_v6 = vld [vmem:[#allocation75_spill] sm:$0xff]  ;;  %s3928_s15 = sld [smem:[#allocation2 + $0x28]] }
 0x1fd   :  { %6667 = vst [vmem:[#allocation16_spill] sm:$0xff] %v5227_v34  ;;  %v694_v36 = vadd.f32 %v6675_v60, %v655_v13  ;;  %v2086_v13 = vsel %vm1578_vm4, %v2083_v1, %v2085_v57  ;;  %v6689_v57 = vld [vmem:[#allocation56_spill] sm:$0xff]  ;;  %v2188_v59 = vrot.slane %v2176_v8, 4 }
 0x1fe   :  { %v736_v50 = vadd.f32 %v6685_v47, %v695_v2  ;;  %v6691_v2 = vld [vmem:[#allocation55_spill] sm:$0xff]  ;;  %v5310_v47 = vmul.f32 %v2214_v14, %v4151_v18 }
 0x1ff   :  { %v735_v24 = vadd.f32 %v6680_v44, %v694_v36  ;;  %v6688_v36 = vld [vmem:[#allocation53_spill] sm:$0xff] }
 0x200   :  { %2059 = vrot.lane.b32.xlu1 %v2052_v21, %s4019_s9  ;;  %v658_v21 = vadd.f32 %v6678_v42, %v617_v20  ;;  %v2075_v20 = vmul.f32 %v2069_v27, %v4312_v23  ;;  %v737_v30 = vadd.f32 %v6688_v36, %v696_v61  ;;  %v5283_v42 = vstv %s5246_s14  ;;  %s3927_s14 = sld [smem:[#allocation2 + $0x58]] }
 0x201   :  { %v775_v1 = vadd.f32 %v6689_v57, %v736_v50  ;;  %v5298_v9 = vmul.f32 %v5283_v42, %v4130_v58  ;;  %v6696_v50 = vld [vmem:[#allocation51_spill] sm:$0xff]  ;;  %v2181_v57 = vmul.f32 %v2175_v5, %v4296_v0  ;;  %v1024_v34 = vmul.f32 %v5283_v42, %v4103_v33 }
 0x202   :  { %2057 = vrot.lane.b32.xlu0 %v2050_v63, %s4019_s9  ;;  %v5252_v4 = vpop.permute.xlu1 %1655  ;;  %2055 = vrot.lane.b32.xlu2 %v2047_v55, %s4019_s9  ;;  %v2089_v63 = vsel %vm1578_vm4, %v2087_v48, %v2088_v56  ;;  %v2177_v55 = vmul.f32 %v2175_v5, %v4130_v58  ;;  %v697_v53 = vadd.f32 %v6683_v39, %v658_v21  ;;  %v6686_v48 = vld [vmem:[#allocation48_spill] sm:$0xff]  ;;  %v2191_v21 = vrot.slane %v2178_v11, 4 }
 0x203   :  { %6676 = vst [vmem:[#allocation12_spill] sm:$0xff] %v5252_v4  ;;  %v774_v52 = vadd.f32 %v6686_v48, %v735_v24  ;;  %v776_v44 = vadd.f32 %v6691_v2, %v737_v30  ;;  %v2090_v24 = vrot.slane %v2075_v20, 3  ;;  %v1021_v11 = vmul.f32 %v5283_v42, %v4115_v43 }
 0x204   :  { %v5262_v3 = vpop.permute.xlu0 %1653  ;;  %v5264_v41 = vpop.permute.xlu2 %1733  ;;  %v738_v60 = vadd.f32 %v6687_v35, %v697_v53  ;;  %v2189_v46 = vrot.slane %v2177_v55, 4  ;;  %v6693_v53 = vld [vmem:[#allocation59_spill] sm:$0xff]  ;;  %v2215_v20 = vmul.f32 %v2214_v14, %v4141_v10  ;;  %v2180_v30 = vmul.f32 %v2175_v5, %v4123_v51 }
 0x205   :  { %6681 = vst [vmem:[#allocation17_spill] sm:$0xff] %v5262_v3  ;;  %v815_v55 = vadd.f32 %v6693_v53, %v774_v52  ;;  %v6697_v52 = vld [vmem:[#allocation61_spill] sm:$0xff]  ;;  %v2179_v2 = vmul.f32 %v2175_v5, %v4103_v33  ;;  %v6724_v3 = vld [vmem:[#allocation72_spill] sm:$0xff] }
 0x206   :  { %6682 = vst [vmem:[#allocation15_spill] sm:$0xff] %v5264_v41  ;;  %v777_v48 = vadd.f32 %v6696_v50, %v738_v60  ;;  %v2190_v36 = vsel %vm2123_vm5, %v2188_v59, %v2189_v46 }
 0x207   :  { %v854_v35 = vadd.f32 %v6697_v52, %v815_v55  ;;  %v6699_v55 = vld [vmem:[#allocation57_spill] sm:$0xff]  ;;  %v5335_v52 = vmul.f32 %v5283_v42, %v4123_v51 }
 0x208   :  { %2096 = vrot.lane.b32.xlu1 %v2089_v63, %s4019_s9  ;;  %v6692_v63 = vld [vmem:[#allocation58_spill] sm:$0xff] }
 0x209   :  { %v816_v39 = vadd.f32 %v6692_v63, %v775_v1  ;;  %v2091_v1 = vsel %vm1578_vm4, %v2088_v56, %v2090_v24  ;;  %v2227_v56 = vrot.slane %v2215_v20, 4  ;;  %v6700_v24 = vld [vmem:[#allocation62_spill] sm:$0xff]  ;;  %v1026_v63 = vmul.f32 %v5283_v42, %v4296_v0 }
 0x20a   :  { %2094 = vrot.lane.b32.xlu0 %v2086_v13, %s4019_s9  ;;  %v5287_v27 = vpop.permute.xlu1 %1692  ;;  %2092 = vrot.lane.b32.xlu2 %v2084_v62, %s4019_s9  ;;  %v5305_v13 = vstv %s5266_s16  ;;  %v2192_v62 = vsel %vm2123_vm5, %v2189_v46, %v2191_v21  ;;  %v1034_v21 = vrot.slane %v1021_v11, 2  ;;  %v6698_v46 = vld [vmem:[#allocation54_spill] sm:$0xff]  ;;  %v818_v11 = vadd.f32 %v6700_v24, %v777_v48  ;;  %s3929_s16 = sld [smem:[#allocation2 + $0x59]] }
 0x20b   :  { %6690 = vst [vmem:[#allocation19_spill] sm:$0xff] %v5287_v27  ;;  %v5322_v53 = vmul.f32 %v5305_v13, %v4141_v10  ;;  %v5326_v60 = vmul.f32 %v5305_v13, %v4151_v18  ;;  %v817_v59 = vadd.f32 %v6698_v46, %v776_v44  ;;  %v855_v50 = vadd.f32 %v6699_v55, %v816_v39  ;;  %v6702_v44 = vld [vmem:[#allocation60_spill] sm:$0xff] }
 0x20c   :  { %v5300_v61 = vpop.permute.xlu0 %1659  ;;  %v5302_v8 = vpop.permute.xlu2 %1739  ;;  %v895_v39 = vadd.f32 %v6702_v44, %v854_v35  ;;  %v2196_v20 = vrot.slane %v2181_v57, 4  ;;  %v2193_v48 = vrot.slane %v2179_v2, 4  ;;  %v6703_v46 = vld [vmem:[#allocation64_spill] sm:$0xff]  ;;  %v6704_v24 = vrot.slane %v5298_v9, 2 }
 0x20d   :  { %6694 = vst [vmem:[#allocation20_spill] sm:$0xff] %v5300_v61  ;;  %v857_v55 = vadd.f32 %v6703_v46, %v818_v11  ;;  %v6707_v61 = vld [vmem:[#allocation65_spill] sm:$0xff]  ;;  %v2219_v2 = vmul.f32 %v2214_v14, %v4145_v16  ;;  %v2220_v11 = vmul.f32 %v2214_v14, %v4312_v23  ;;  %v1042_v44 = vrot.slane %v1026_v63, 2 }
 0x20e   :  { %6695 = vst [vmem:[#allocation23_spill] sm:$0xff] %v5302_v8  ;;  %v5350_v5 = vsel %vm1033_vm3, %v1034_v21, %v6704_v24  ;;  %v856_v35 = vadd.f32 %v6707_v61, %v817_v59  ;;  %v1040_v21 = vrot.slane %v5335_v52, 2  ;;  %v5367_v46 = vmul.f32 %v5305_v13, %v4145_v16 }
 0x20f   :  { %v2218_v24 = vmul.f32 %v2214_v14, %v4149_v17  ;;  %v5378_v63 = vmul.f32 %v5305_v13, %v4312_v23  ;;  %v2255_v27 = vstv %s5343_s17  ;;  %s3918_s17 = sld [smem:[#allocation2 + $0x23]] }
 0x210   :  { %2200 = vrot.lane.b32.xlu1 %v2192_v62, %s4014_s18  ;;  %v2194_v62 = vrot.slane %v2180_v30, 4  ;;  %v6708_v30 = vrot.slane %v5310_v47, 4 }
 0x211   :  { %v2232_v37 = vrot.slane %v2218_v24, 4  ;;  %v1055_v24 = vmul.f32 %v5305_v13, %v4318_v29 }
 0x212   :  { %2198 = vrot.lane.b32.xlu0 %v2190_v36, %s4014_s18  ;;  %v5340_v8 = vpop.permute.xlu1 %1698  ;;  %2098 = vrot.lane.b32.xlu2 %v2091_v1, %s4019_s9  ;;  %v2229_v57 = vsel %vm2123_vm5, %v2227_v56, %v6708_v30  ;;  %v6709_v36 = vld [vmem:[#allocation68_spill] sm:$0xff]  ;;  %v2197_v61 = vsel %vm2123_vm5, %v2194_v62, %v2196_v20  ;;  %v2195_v59 = vsel %vm2123_vm5, %v2193_v48, %v2194_v62  ;;  %v6710_v30 = vld [vmem:[#allocation63_spill] sm:$0xff]  ;;  %v2235_v48 = vrot.slane %v2220_v11, 4  ;;  %v6717_v11 = vld [vmem:[#allocation73_spill] sm:$0xff] }
 0x213   :  { %6701 = vst [vmem:[#allocation18_spill] sm:$0xff] %v5340_v8  ;;  %v896_v8 = vadd.f32 %v6709_v36, %v855_v50  ;;  %v2217_v56 = vmul.f32 %v2214_v14, %v4318_v29  ;;  %v6712_v50 = vld [vmem:[#allocation70_spill] sm:$0xff]  ;;  %v1023_v62 = vmul.f32 %v5283_v42, %v4257_v28  ;;  %v2233_v14 = vrot.slane %v2219_v2, 4  ;;  %v6713_v36 = vld [vmem:[#allocation71_spill] sm:$0xff] }
 0x214   :  { %v5354_v41 = vpop.permute.xlu0 %1696  ;;  %v5356_v1 = vpop.permute.xlu2 %1776  ;;  %v1071_v42 = vrot.slane %v5367_v46, 2  ;;  %v6716_v2 = vld [vmem:[#allocation66_spill] sm:$0xff] }
 0x215   :  { %6705 = vst [vmem:[#allocation22_spill] sm:$0xff] %v5354_v41  ;;  %v6711_v41 = vld [vmem:[#allocation67_spill] sm:$0xff]  ;;  %v935_v20 = vadd.f32 %v6712_v50, %v896_v8  ;;  %v1043_v8 = vsel %vm1033_vm3, %v1040_v21, %v1042_v44  ;;  %v6718_v50 = vld [vmem:[#allocation76_spill] sm:$0xff]  ;;  %v1037_v44 = vrot.slane %v1023_v62, 2  ;;  %v2236_v46 = vsel %vm2123_vm5, %v2233_v14, %v2235_v48 }
 0x216   :  { %6706 = vst [vmem:[#allocation25_spill] sm:$0xff] %v5356_v1  ;;  %v898_v1 = vadd.f32 %v6710_v30, %v857_v55  ;;  %v897_v52 = vadd.f32 %v6711_v41, %v856_v35  ;;  %v934_v55 = vadd.f32 %v6713_v36, %v895_v39  ;;  %v6714_v30 = vld [vmem:[#allocation74_spill] sm:$0xff]  ;;  %v2230_v39 = vrot.slane %v2217_v56, 4 }
 0x217   :  { %v5411_v56 = vmul.f32 %v2255_v27, %v4123_v51  ;;  %v6723_v62 = vrot.slane %v5310_v47, 4 }
 0x218   :  { %2237 = vrot.lane.b32.xlu1 %v2229_v57, %s4014_s18  ;;  %v937_v41 = vadd.f32 %v6714_v30, %v898_v1  ;;  %v1056_v57 = vmul.f32 %v5305_v13, %v4149_v17  ;;  %v936_v1 = vadd.f32 %v6716_v2, %v897_v52  ;;  %v6721_v52 = vld [vmem:[#allocation69_spill] sm:$0xff]  ;;  %v2257_v13 = vmul.f32 %v2255_v27, %v4130_v58 }
 0x219   :  { %v976_v2 = vadd.f32 %v6721_v52, %v935_v20  ;;  %v2231_v48 = vsel %vm2123_vm5, %v6723_v62, %v2230_v39  ;;  %v1068_v52 = vrot.slane %v1055_v24, 2  ;;  %v2274_v39 = vrot.slane %v5411_v56, 4 }
 0x21a   :  { %2204 = vrot.lane.b32.xlu0 %v2197_v61, %s4014_s18  ;;  %v5389_v35 = vpop.permute.xlu1 %1737  ;;  %2202 = vrot.lane.b32.xlu2 %v2195_v59, %s4014_s18  ;;  %v975_v61 = vadd.f32 %v6717_v11, %v934_v55  ;;  %v978_v36 = vadd.f32 %v6718_v50, %v937_v41  ;;  %v6722_v55 = vld [vmem:[#allocation77_spill] sm:$0xff]  ;;  %v1039_v41 = vrot.slane %v1024_v34, 2  ;;  %v2234_v50 = vsel %vm2123_vm5, %v2232_v37, %v2233_v14  ;;  %v6727_v37 = vld [vmem:[#allocation79_spill] sm:$0xff] }
 0x21b   :  { %6715 = vst [vmem:[#allocation26_spill] sm:$0xff] %v5389_v35  ;;  %v2259_v35 = vmul.f32 %v2255_v27, %v4103_v33  ;;  %v977_v11 = vadd.f32 %v6722_v55, %v936_v1  ;;  %v6726_v1 = vld [vmem:[#allocation80_spill] sm:$0xff]  ;;  %v6728_v55 = vrot.slane %v5298_v9, 2  ;;  %v1073_v62 = vrot.slane %v5378_v63, 2 }
 0x21c   :  { %v5404_v59 = vpop.permute.xlu0 %1735  ;;  %v5406_v30 = vpop.permute.xlu2 %1815  ;;  %v1014_v4 = vadd.f32 %v6724_v3, %v975_v61  ;;  %v1017_v20 = vadd.f32 %v6725_v6, %v978_v36  ;;  %v1015_v34 = vadd.f32 %v6726_v1, %v976_v2  ;;  %v1041_v3 = vsel %vm1033_vm3, %v1039_v41, %v1040_v21 }
 0x21d   :  { %6719 = vst [vmem:[#allocation29_spill] sm:$0xff] %v5404_v59  ;;  %v2258_v59 = vmul.f32 %v2255_v27, %v4257_v28  ;;  %v1016_v14 = vadd.f32 %v6727_v37, %v977_v11  ;;  %v1038_v47 = vsel %vm1033_vm3, %v6728_v55, %v1037_v44  ;;  %v2273_v12 = vrot.slane %v2259_v35, 4  ;;  %v6732_v55 = vld [vmem:[#allocation82_spill] sm:$0xff] }
 0x21e   :  { %6720 = vst [vmem:[#allocation21_spill] sm:$0xff] %v5406_v30  ;;  %v2256_v30 = vmul.f32 %v2255_v27, %v4115_v43  ;;  %v1070_v61 = vrot.slane %v1056_v57, 2  ;;  %v2294_v36 = vstv %s5393_s1  ;;  %v6729_v9 = vrot.slane %v5326_v60, 2  ;;  %s3930_s1 = sld [smem:[#allocation2 + $0x29]] }
 0x21f   :  { %v6730_v35 = vrot.slane %v5322_v53, 2  ;;  %v2269_v44 = vrot.slane %v2257_v13, 4  ;;  %v2271_v63 = vrot.slane %v2258_v59, 4  ;;  %v1048_v21 = vadd.f32 %v5350_v5, %v1014_v4 }
 0x220   :  { %2243 = vrot.lane.b32.xlu1 %v2236_v46, %s4014_s18  ;;  %v2268_v46 = vrot.slane %v2256_v30, 4  ;;  %v1051_v57 = vadd.f32 %v1043_v8, %v1017_v20  ;;  %v6731_v56 = vmov %v6729_v9  ;;  %v1049_v11 = vadd.f32 %v1038_v47, %v1015_v34 }
 0x221   :  { %v1067_v24 = vsel %vm1033_vm3, %v6730_v35, %v6729_v9  ;;  %v1069_v2 = vsel %vm1033_vm3, %v6731_v56, %v1068_v52  ;;  %v2275_v53 = vsel %vm2123_vm5, %v2273_v12, %v2274_v39  ;;  %v2296_v1 = vmul.f32 %v2294_v36, %v4151_v18  ;;  %v6734_v9 = vld [vmem:[#allocation86_spill] sm:$0xff] }
 0x222   :  { %2241 = vrot.lane.b32.xlu0 %v2234_v50, %s4014_s18  ;;  %v5434_v6 = vpop.permute.xlu1 %1774  ;;  %2239 = vrot.lane.b32.xlu2 %v2231_v48, %s4014_s18  ;;  %v1050_v48 = vadd.f32 %v1041_v3, %v1016_v14  ;;  %v2297_v59 = vmul.f32 %v2294_v36, %v4318_v29  ;;  %v1074_v30 = vsel %vm1033_vm3, %v1071_v42, %v1073_v62 }
 0x223   :  { %v1072_v4 = vsel %vm1033_vm3, %v1070_v61, %v1071_v42  ;;  %v2295_v60 = vmul.f32 %v2294_v36, %v4141_v10  ;;  %v2272_v5 = vsel %vm2123_vm5, %v2269_v44, %v2271_v63  ;;  %v2270_v8 = vsel %vm2123_vm5, %v2268_v46, %v2269_v44  ;;  %v6733_v42 = vld [vmem:[#allocation83_spill] sm:$0xff]  ;;  %v6735_v44 = vld [vmem:[#allocation85_spill] sm:$0xff] }
 0x224   :  { %v5449_v41 = vpop.permute.xlu0 %1772  ;;  %v5451_v50 = vpop.permute.xlu2 %1852  ;;  %v2261_v13 = vmul.f32 %v2255_v27, %v4296_v0  ;;  %v1079_v20 = vadd.f32 %v1067_v24, %v1048_v21  ;;  %v1080_v52 = vadd.f32 %v1069_v2, %v1049_v11  ;;  %v1082_v12 = vadd.f32 %v1074_v30, %v1051_v57  ;;  %v6736_v57 = vld [vmem:[#allocation88_spill] sm:$0xff] }
 0x225   :  { %v1081_v34 = vadd.f32 %v1072_v4, %v1050_v48  ;;  %v2308_v37 = vrot.slane %v2296_v1, 4  ;;  %v2310_v14 = vrot.slane %v2297_v59, 4  ;;  %v2307_v61 = vrot.slane %v2295_v60, 4  ;;  %v6738_v59 = vld [vmem:[#allocation81_spill] sm:$0xff] }
 0x226   :  { %v1121_v47 = vadd.f32 %v6732_v55, %v1080_v52  ;;  %v1120_v62 = vadd.f32 %v6733_v42, %v1079_v20  ;;  %v2335_v27 = vstv %s5438_s19  ;;  %v1123_v35 = vadd.f32 %v6734_v9, %v1082_v12  ;;  %v6739_v20 = vld [vmem:[#allocation84_spill] sm:$0xff]  ;;  %v6740_v12 = vld [vmem:[#allocation89_spill] sm:$0xff]  ;;  %v6744_v9 = vld [vmem:[#allocation94_spill] sm:$0xff]  ;;  %s3919_s19 = sld [smem:[#allocation2 + $0x54]] }
 0x227   :  { %v2276_v24 = vrot.slane %v2261_v13, 4  ;;  %v2311_v2 = vsel %vm2123_vm5, %v2308_v37, %v2310_v14  ;;  %v2336_v11 = vmul.f32 %v2335_v27, %v4115_v43  ;;  %v5482_v48 = vmul.f32 %v2335_v27, %v4130_v58  ;;  %v6741_v55 = vld [vmem:[#allocation92_spill] sm:$0xff] }
 0x228   :  { %2282 = vrot.lane.b32.xlu1 %v2275_v53, %s4015_s20  ;;  %v1159_v63 = vadd.f32 %v6735_v44, %v1120_v62  ;;  %v1162_v56 = vadd.f32 %v6736_v57, %v1123_v35  ;;  %v6737_v53 = vld [vmem:[#allocation78_spill] sm:$0xff]  ;;  %v1160_v30 = vadd.f32 %v6738_v59, %v1121_v47  ;;  %v2309_v4 = vsel %vm2123_vm5, %v2307_v61, %v2308_v37  ;;  %v6743_v61 = vld [vmem:[#allocation91_spill] sm:$0xff] }
 0x229   :  { %v1122_v1 = vadd.f32 %v6737_v53, %v1081_v34  ;;  %v2299_v60 = vmul.f32 %v2294_v36, %v4145_v16  ;;  %v2298_v13 = vmul.f32 %v2294_v36, %v4149_v17  ;;  %v6742_v34 = vld [vmem:[#allocation87_spill] sm:$0xff]  ;;  %v2348_v37 = vrot.slane %v2336_v11, 4 }
 0x22a   :  { %2280 = vrot.lane.b32.xlu0 %v2272_v5, %s4015_s20  ;;  %v5466_v3 = vpop.permute.xlu1 %1813  ;;  %2278 = vrot.lane.b32.xlu2 %v2270_v8, %s4015_s20  ;;  %v2300_v5 = vmul.f32 %v2294_v36, %v4312_v23  ;;  %v2277_v8 = vsel %vm2123_vm5, %v2274_v39, %v2276_v24  ;;  %v1200_v52 = vadd.f32 %v6739_v20, %v1159_v63  ;;  %v2349_v62 = vrot.slane %v5482_v48, 4  ;;  %v6745_v35 = vld [vmem:[#allocation95_spill] sm:$0xff]  ;;  %v6747_v48 = vld [vmem:[#allocation98_spill] sm:$0xff] }
 0x22b   :  { %v1161_v14 = vadd.f32 %v6740_v12, %v1122_v1  ;;  %v1201_v42 = vadd.f32 %v6741_v55, %v1160_v30  ;;  %v1203_v47 = vadd.f32 %v6742_v34, %v1162_v56  ;;  %v2313_v63 = vrot.slane %v2299_v60, 4 }
 0x22c   :  { %v5472_v46 = vpop.permute.xlu0 %1778  ;;  %v5474_v21 = vpop.permute.xlu2 %1858  ;;  %v1239_v24 = vadd.f32 %v6745_v35, %v1200_v52  ;;  %v2315_v57 = vrot.slane %v2300_v5, 4  ;;  %v2312_v56 = vrot.slane %v2298_v13, 4  ;;  %v5515_v30 = vstv %s5477_s21  ;;  %v6749_v52 = vld [vmem:[#allocation90_spill] sm:$0xff]  ;;  %v6750_v5 = vld [vmem:[#allocation93_spill] sm:$0xff]  ;;  %s6142_s21 = sld [smem:[#allocation2 + $0x5a]] }
 0x22d   :  { %v1202_v39 = vadd.f32 %v6743_v61, %v1161_v14  ;;  %v1240_v36 = vadd.f32 %v6744_v9, %v1201_v42  ;;  %v1242_v53 = vadd.f32 %v6747_v48, %v1203_v47  ;;  %v2340_v20 = vmul.f32 %v2335_v27, %v4123_v51  ;;  %v6751_v14 = vld [vmem:[#allocation100_spill] sm:$0xff] }
 0x22e   :  { %v2339_v12 = vmul.f32 %v2335_v27, %v4103_v33  ;;  %v2316_v42 = vsel %vm2123_vm5, %v2313_v63, %v2315_v57  ;;  %v2314_v34 = vsel %vm2123_vm5, %v2312_v56, %v2313_v63  ;;  %v2338_v47 = vmul.f32 %v2335_v27, %v4257_v28  ;;  %v6755_v56 = vld [vmem:[#allocation107_spill] sm:$0xff] }
 0x22f   :  { %v1241_v60 = vadd.f32 %v6749_v52, %v1202_v39  ;;  %v1281_v13 = vadd.f32 %v6750_v5, %v1240_v36  ;;  %v1283_v55 = vadd.f32 %v6751_v14, %v1242_v53  ;;  %v1566_v9 = vmul.f32 %v5515_v30, %v4115_v43  ;;  %v6753_v36 = vld [vmem:[#allocation101_spill] sm:$0xff]  ;;  %v6757_v5 = vld [vmem:[#allocation103_spill] sm:$0xff] }
 0x230   :  { %2319 = vrot.lane.b32.xlu1 %v2311_v2, %s4015_s20  ;;  %v6746_v2 = vld [vmem:[#allocation97_spill] sm:$0xff]  ;;  %v5532_v39 = vmul.f32 %v5515_v30, %v4130_v58  ;;  %v2353_v53 = vrot.slane %v2339_v12, 4  ;;  %v2374_v52 = vstv %s5506_s24  ;;  %s3935_s24 = sld [smem:[#allocation2 + $0x5c]] }
 0x231   :  { %v1280_v11 = vadd.f32 %v6746_v2, %v1239_v24  ;;  %v1282_v35 = vadd.f32 %v6753_v36, %v1241_v60  ;;  %v6754_v24 = vld [vmem:[#allocation104_spill] sm:$0xff]  ;;  %v2354_v2 = vrot.slane %v2340_v20, 4  ;;  %v2351_v20 = vrot.slane %v2338_v47, 4 }
 0x232   :  { %2317 = vrot.lane.b32.xlu0 %v2309_v4, %s4015_s20  ;;  %v5503_v44 = vpop.permute.xlu1 %1819  ;;  %2284 = vrot.lane.b32.xlu2 %v2277_v8, %s4015_s20  ;;  %v2350_v4 = vsel %vm2123_vm5, %v2348_v37, %v2349_v62  ;;  %v2341_v8 = vmul.f32 %v2335_v27, %v4296_v0  ;;  %v6752_v37 = vld [vmem:[#allocation96_spill] sm:$0xff]  ;;  %v1320_v57 = vadd.f32 %v6754_v24, %v1281_v13  ;;  %v5539_v27 = vstv %s5496_s23  ;;  %s6187_s23 = sld [smem:[#allocation2 + $0x2b]] }
 0x233   :  { %v1319_v61 = vadd.f32 %v6752_v37, %v1280_v11  ;;  %v1321_v13 = vadd.f32 %v6757_v5, %v1282_v35  ;;  %v2378_v35 = vmul.f32 %v2374_v52, %v4149_v17  ;;  %v5564_v47 = vmul.f32 %v2374_v52, %v4145_v16 }
 0x234   :  { %v5510_v1 = vpop.permute.xlu0 %1817  ;;  %v5512_v59 = vpop.permute.xlu2 %1897  ;;  %v2356_v63 = vrot.slane %v2341_v8, 4  ;;  %v6758_v8 = vld [vmem:[#allocation106_spill] sm:$0xff]  ;;  %v2355_v24 = vsel %vm2123_vm5, %v2353_v53, %v2354_v2 }
 0x235   :  { %6748 = vst [vmem:[#allocation24_spill] sm:$0xff] %v5512_v59  ;;  %v1360_v48 = vadd.f32 %v6755_v56, %v1319_v61  ;;  %v1361_v14 = vadd.f32 %v6758_v8, %v1320_v57  ;;  %v1579_v61 = vrot.slane %v1566_v9, 3  ;;  %v5569_v9 = vmul.f32 %v5539_v27, %v4151_v18  ;;  %v6761_v8 = vld [vmem:[#allocation105_spill] sm:$0xff] }
 0x236   :  { %v2376_v57 = vmul.f32 %v2374_v52, %v4151_v18  ;;  %v2377_v56 = vmul.f32 %v2374_v52, %v4318_v29  ;;  %v6528_v59 = vrot.slane %v5564_v47, 4 }
 0x237   :  { %v1399_v37 = vadd.f32 %v4974_v22, %v1360_v48  ;;  %v2352_v48 = vsel %vm2123_vm5, %v2349_v62, %v2351_v20  ;;  %v2392_v20 = vrot.slane %v2378_v35, 4 }
 0x238   :  { %2358 = vrot.lane.b32.xlu1 %v2350_v4, %s4016_s22  ;;  %v6756_v4 = vld [vmem:[#allocation99_spill] sm:$0xff]  ;;  %v2388_v35 = vrot.slane %v2376_v57, 4 }
 0x239   :  { %v1322_v60 = vadd.f32 %v6756_v4, %v1283_v55  ;;  %v2357_v55 = vsel %vm2123_vm5, %v2354_v2, %v2356_v63  ;;  %v2375_v63 = vmul.f32 %v2374_v52, %v4141_v10  ;;  %v6760_v4 = vld [vmem:[#allocation102_spill] sm:$0xff]  ;;  %v6763_v2 = vrot.slane %v5532_v39, 3 }
 0x23a   :  { %2323 = vrot.lane.b32.xlu0 %v2316_v42, %s4015_s20  ;;  %v5542_v11 = vpop.permute.xlu1 %1856  ;;  %2321 = vrot.lane.b32.xlu2 %v2314_v34, %s4015_s20  ;;  %v5559_v34 = vmul.f32 %v5539_v27, %v4141_v10  ;;  %v1362_v5 = vadd.f32 %v6760_v4, %v1321_v13  ;;  %v1400_v42 = vadd.f32 %v6761_v8, %v1361_v14 }
 0x23b   :  { %v1363_v22 = vadd.f32 %v4978_v26, %v1322_v60  ;;  %v6762_v26 = vld [vmem:[#allocation108_spill] sm:$0xff]  ;;  %v5584_v53 = vsel %vm1578_vm4, %v1579_v61, %v6763_v2  ;;  %v5591_v14 = vmul.f32 %v5515_v30, %v4123_v51  ;;  %v2415_v61 = vstv %s5546_s0  ;;  %s3936_s0 = sld [smem:[#allocation2 + $0x2c]] }
 0x23c   :  { %v5553_v36 = vpop.permute.xlu0 %1854  ;;  %v5555_v12 = vpop.permute.xlu2 %1934  ;;  %v1440_v60 = vadd.f32 %v6762_v26, %v1399_v37  ;;  %v2387_v4 = vrot.slane %v2375_v63, 4  ;;  %v1441_v26 = vadd.f32 %v5052_v38, %v1400_v42  ;;  %v5609_v2 = vmul.f32 %v5539_v27, %v4145_v16 }
 0x23d   :  { %6759 = vst [vmem:[#allocation28_spill] sm:$0xff] %v5555_v12  ;;  %v1402_v12 = vadd.f32 %v5005_v19, %v1363_v22  ;;  %v5595_v19 = vmul.f32 %v5515_v30, %v4296_v0  ;;  %v2390_v22 = vrot.slane %v2377_v56, 4  ;;  %v2417_v38 = vmul.f32 %v2415_v61, %v4130_v58 }
 0x23e   :  { %v2418_v42 = vmul.f32 %v2415_v61, %v4257_v28  ;;  %v1480_v57 = vadd.f32 %v5087_v25, %v1441_v26  ;;  %v1479_v56 = vadd.f32 %v5096_v7, %v1440_v60  ;;  %v2416_v63 = vmul.f32 %v2415_v61, %v4115_v43 }
 0x23f   :  { %v1443_v8 = vadd.f32 %v4980_v15, %v1402_v12  ;;  %v2394_v15 = vsel %vm2123_vm5, %v2392_v20, %v6528_v59  ;;  %v2389_v13 = vsel %vm2123_vm5, %v2387_v4, %v2388_v35  ;;  %v2380_v20 = vmul.f32 %v2374_v52, %v4312_v23  ;;  %v6765_v4 = vld [vmem:[#allocation109_spill] sm:$0xff] }
 0x240   :  { %2364 = vrot.lane.b32.xlu1 %v2357_v55, %s4016_s22  ;;  %v1401_v55 = vadd.f32 %v5016_v54, %v1362_v5  ;;  %v1569_v54 = vmul.f32 %v5515_v30, %v4103_v33  ;;  %v1600_v5 = vmul.f32 %v5539_v27, %v4318_v29  ;;  %v1520_v59 = vadd.f32 %v5141_v32, %v1479_v56  ;;  %v6766_v56 = vld [vmem:[#allocation11_spill] sm:$0xff] }
 0x241   :  { %v5637_v25 = vmul.f32 %v5539_v27, %v4312_v23  ;;  %v1521_v26 = vadd.f32 %v6765_v4, %v1480_v57  ;;  %v6769_v4 = vld [vmem:[#allocation14_spill] sm:$0xff] }
 0x242   :  { %2362 = vrot.lane.b32.xlu0 %v2355_v24, %s4016_s22  ;;  %v5598_v37 = vpop.permute.xlu1 %1895  ;;  %2360 = vrot.lane.b32.xlu2 %v2352_v48, %s4016_s22  ;;  %v1568_v24 = vmul.f32 %v5515_v30, %v4257_v28  ;;  %v1442_v12 = vadd.f32 %v5039_v49, %v1401_v55  ;;  %v2391_v30 = vsel %vm2123_vm5, %v2388_v35, %v2390_v22  ;;  %v1585_v49 = vrot.slane %v5591_v14, 3 }
 0x243   :  { %v1584_v60 = vrot.slane %v1569_v54, 3  ;;  %v1601_v55 = vmul.f32 %v5539_v27, %v4149_v17  ;;  %v2429_v22 = vrot.slane %v2417_v38, 4  ;;  %v2431_v35 = vrot.slane %v2418_v42, 4  ;;  %v6767_v38 = vld [vmem:[#allocation9_spill] sm:$0xff] }
 0x244   :  { %v5613_v48 = vpop.permute.xlu0 %1893  ;;  %v5615_v62 = vpop.permute.xlu2 %1973  ;;  %v1582_v7 = vrot.slane %v1568_v24, 3  ;;  %v1481_v52 = vadd.f32 %v5018_v45, %v1442_v12  ;;  %v2428_v14 = vrot.slane %v2416_v63, 4  ;;  %v2454_v24 = vstv %s5602_s25  ;;  %s3937_s25 = sld [smem:[#allocation2 + $0x5d]] }
 0x245   :  { %6764 = vst [vmem:[#allocation31_spill] sm:$0xff] %v5615_v62  ;;  %v1587_v54 = vrot.slane %v5595_v19, 3  ;;  %v1613_v62 = vrot.slane %v1600_v5, 3  ;;  %v2395_v27 = vrot.slane %v2380_v20, 4  ;;  %v1559_v42 = vadd.f32 %v6767_v38, %v1520_v59  ;;  %v6770_v20 = vld [vmem:[#allocation10_spill] sm:$0xff] }
 0x246   :  { %v1522_v45 = vadd.f32 %v5197_v40, %v1481_v52  ;;  %v6768_v12 = vrot.slane %v5532_v39, 3  ;;  %v2432_v19 = vsel %vm2123_vm5, %v2429_v22, %v2431_v35  ;;  %v2455_v5 = vmul.f32 %v2454_v24, %v4141_v10 }
 0x247   :  { %v5665_v59 = vmul.f32 %v2454_v24, %v4151_v18  ;;  %v1586_v40 = vsel %vm1578_vm4, %v1584_v60, %v1585_v49  ;;  %v1615_v39 = vrot.slane %v1601_v55, 3  ;;  %v2420_v52 = vmul.f32 %v2415_v61, %v4123_v51 }
 0x248   :  { %2401 = vrot.lane.b32.xlu1 %v2394_v15, %s4016_s22  ;;  %v1482_v15 = vadd.f32 %v6766_v56, %v1443_v8  ;;  %v1583_v57 = vsel %vm1578_vm4, %v6768_v12, %v1582_v7  ;;  %v1561_v7 = vadd.f32 %v6770_v20, %v1522_v45  ;;  %v6771_v56 = vrot.slane %v5564_v47, 4  ;;  %v6774_v45 = vld [vmem:[#allocation13_spill] sm:$0xff] }
 0x249   :  { %v6772_v38 = vrot.slane %v5569_v9, 3  ;;  %v6773_v12 = vrot.slane %v5559_v34, 3  ;;  %v1593_v55 = vadd.f32 %v5584_v53, %v1559_v42  ;;  %v2468_v20 = vrot.slane %v5665_v59, 4 }
 0x24a   :  { %2399 = vrot.lane.b32.xlu0 %v2391_v30, %s4016_s22  ;;  %v5645_v32 = vpop.permute.xlu1 %1932  ;;  %2397 = vrot.lane.b32.xlu2 %v2389_v13, %s4016_s22  ;;  %v1560_v30 = vadd.f32 %v5225_v31, %v1521_v26  ;;  %v1523_v8 = vadd.f32 %v6769_v4, %v1482_v15  ;;  %v2430_v31 = vsel %vm2123_vm5, %v2428_v14, %v2429_v22  ;;  %v1616_v22 = vrot.slane %v5609_v2, 3 }
 0x24b   :  { %v2421_v26 = vmul.f32 %v2415_v61, %v4296_v0  ;;  %v2396_v35 = vsel %vm2123_vm5, %v6771_v56, %v2395_v27  ;;  %v2419_v15 = vmul.f32 %v2415_v61, %v4103_v33  ;;  %v1612_v60 = vsel %vm1578_vm4, %v6773_v12, %v6772_v38 }
 0x24c   :  { %v5657_v63 = vpop.permute.xlu0 %1899  ;;  %v5659_v13 = vpop.permute.xlu2 %1979  ;;  %v1594_v14 = vadd.f32 %v1583_v57, %v1560_v30  ;;  %v1562_v4 = vadd.f32 %v6774_v45, %v1523_v8  ;;  %v6775_v47 = vmov %v6772_v38  ;;  %v2467_v61 = vrot.slane %v2455_v5, 4 }
 0x24d   :  { %v1614_v27 = vsel %vm1578_vm4, %v6775_v47, %v1613_v62  ;;  %v1588_v34 = vsel %vm1578_vm4, %v1585_v49, %v1587_v54  ;;  %v1618_v56 = vrot.slane %v5637_v25, 3  ;;  %v1595_v38 = vadd.f32 %v1586_v40, %v1561_v7 }
 0x24e   :  { %v1617_v9 = vsel %vm1578_vm4, %v1615_v39, %v1616_v22  ;;  %v2434_v2 = vrot.slane %v2420_v52, 4  ;;  %v2436_v62 = vrot.slane %v2421_v26, 4  ;;  %v2433_v42 = vrot.slane %v2419_v15, 4  ;;  %v6776_v39 = vld [vmem:[#allocation12_spill] sm:$0xff]  ;;  %v6777_v52 = vld [vmem:[#allocation17_spill] sm:$0xff] }
 0x24f   :  { %v1624_v57 = vadd.f32 %v1612_v60, %v1593_v55  ;;  %v1625_v30 = vadd.f32 %v1614_v27, %v1594_v14  ;;  %v1596_v25 = vadd.f32 %v1588_v34, %v1562_v4  ;;  %v2469_v54 = vsel %vm2123_vm5, %v2467_v61, %v2468_v20  ;;  %v6778_v55 = vld [vmem:[#allocation19_spill] sm:$0xff]  ;;  %v6779_v4 = vld [vmem:[#allocation8_spill] sm:$0xff] }
 0x250   :  { %2440 = vrot.lane.b32.xlu1 %v2432_v19, %s4017_s26  ;;  %v2459_v19 = vmul.f32 %v2454_v24, %v4145_v16  ;;  %v2460_v5 = vmul.f32 %v2454_v24, %v4312_v23  ;;  %v1619_v59 = vsel %vm1578_vm4, %v1616_v22, %v1618_v56  ;;  %v1626_v40 = vadd.f32 %v1617_v9, %v1595_v38  ;;  %v6780_v27 = vld [vmem:[#allocation16_spill] sm:$0xff] }
 0x251   :  { %v1666_v7 = vadd.f32 %v6776_v39, %v1625_v30  ;;  %v1665_v26 = vadd.f32 %v6777_v52, %v1624_v57  ;;  %v2435_v15 = vsel %vm2123_vm5, %v2433_v42, %v2434_v2  ;;  %v2457_v12 = vmul.f32 %v2454_v24, %v4318_v29  ;;  %v6781_v9 = vld [vmem:[#allocation20_spill] sm:$0xff]  ;;  %v6783_v57 = vld [vmem:[#allocation29_spill] sm:$0xff]  ;;  %v6786_v52 = vld [vmem:[#allocation26_spill] sm:$0xff] }
 0x252   :  { %2438 = vrot.lane.b32.xlu0 %v2430_v31, %s4017_s26  ;;  %v5692_v53 = vpop.permute.xlu1 %1938  ;;  %2403 = vrot.lane.b32.xlu2 %v2396_v35, %s4016_s22  ;;  %v2458_v31 = vmul.f32 %v2454_v24, %v4149_v17  ;;  %v2437_v35 = vsel %vm2123_vm5, %v2434_v2, %v2436_v62  ;;  %v1627_v60 = vadd.f32 %v1619_v59, %v1596_v25  ;;  %v2473_v22 = vrot.slane %v2459_v19, 4  ;;  %v6782_v62 = vld [vmem:[#allocation22_spill] sm:$0xff]  ;;  %v6784_v19 = vld [vmem:[#allocation15_spill] sm:$0xff] }
 0x253   :  { %v1704_v14 = vadd.f32 %v6778_v55, %v1665_v26  ;;  %v2475_v45 = vrot.slane %v2460_v5, 4  ;;  %v1667_v47 = vadd.f32 %v6779_v4, %v1626_v40  ;;  %v1705_v61 = vadd.f32 %v6780_v27, %v1666_v7  ;;  %v6785_v7 = vld [vmem:[#allocation18_spill] sm:$0xff] }
 0x254   :  { %v5698_v8 = vpop.permute.xlu0 %1936  ;;  %v5700_v49 = vpop.permute.xlu2 %2016  ;;  %v2472_v56 = vrot.slane %v2458_v31, 4  ;;  %v2495_v24 = vstv %s5695_s27  ;;  %v2470_v38 = vrot.slane %v2457_v12, 4  ;;  %v1668_v2 = vadd.f32 %v6781_v9, %v1627_v60  ;;  %s3938_s27 = sld [smem:[#allocation2 + $0x2d]] }
 0x255   :  { %v1706_v42 = vadd.f32 %v6782_v62, %v1667_v47  ;;  %v1746_v30 = vadd.f32 %v6783_v57, %v1705_v61  ;;  %v1745_v5 = vadd.f32 %v6784_v19, %v1704_v14  ;;  %v2476_v59 = vsel %vm2123_vm5, %v2473_v22, %v2475_v45  ;;  %v6788_v61 = vld [vmem:[#allocation25_spill] sm:$0xff] }
 0x256   :  { %v2499_v40 = vmul.f32 %v2495_v24, %v4103_v33  ;;  %v5734_v39 = vmul.f32 %v2495_v24, %v4123_v51  ;;  %v1707_v31 = vadd.f32 %v6785_v7, %v1668_v2  ;;  %v2497_v12 = vmul.f32 %v2495_v24, %v4130_v58 }
 0x257   :  { %v1747_v26 = vadd.f32 %v6786_v52, %v1706_v42  ;;  %v2498_v60 = vmul.f32 %v2495_v24, %v4257_v28  ;;  %v2471_v55 = vsel %vm2123_vm5, %v2468_v20, %v2470_v38  ;;  %v2496_v14 = vmul.f32 %v2495_v24, %v4115_v43 }
 0x258   :  { %2477 = vrot.lane.b32.xlu1 %v2469_v54, %s4017_s26  ;;  %v1784_v45 = vadd.f32 %v5449_v41, %v1745_v5  ;;  %v2513_v4 = vrot.slane %v2499_v40, 4  ;;  %v2514_v47 = vrot.slane %v5734_v39, 4  ;;  %v6789_v41 = vld [vmem:[#allocation21_spill] sm:$0xff]  ;;  %v2509_v2 = vrot.slane %v2497_v12, 4 }
 0x259   :  { %v2511_v62 = vrot.slane %v2498_v60, 4  ;;  %v2508_v42 = vrot.slane %v2496_v14, 4 }
 0x25a   :  { %2444 = vrot.lane.b32.xlu0 %v2437_v35, %s4017_s26  ;;  %v5719_v34 = vpop.permute.xlu1 %1977  ;;  %2442 = vrot.lane.b32.xlu2 %v2435_v15, %s4017_s26  ;;  %v1785_v35 = vadd.f32 %v5434_v6, %v1746_v30  ;;  %v2474_v15 = vsel %vm2123_vm5, %v2472_v56, %v2473_v22  ;;  %v2534_v6 = vstv %s5714_s28  ;;  %v6787_v22 = vld [vmem:[#allocation23_spill] sm:$0xff]  ;;  %v1786_v56 = vadd.f32 %v6788_v61, %v1747_v26  ;;  %s3940_s28 = sld [smem:[#allocation2 + $0x2e]] }
 0x25b   :  { %v1748_v27 = vadd.f32 %v6787_v22, %v1707_v31  ;;  %v1825_v20 = vadd.f32 %v5466_v3, %v1784_v45  ;;  %v2536_v5 = vmul.f32 %v2534_v6, %v4151_v18  ;;  %v2515_v40 = vsel %vm2123_vm5, %v2513_v4, %v2514_v47  ;;  %v6790_v22 = vld [vmem:[#allocation24_spill] sm:$0xff] }
 0x25c   :  { %v5726_v25 = vpop.permute.xlu0 %1975  ;;  %v5728_v54 = vpop.permute.xlu2 %2055  ;;  %v1826_v9 = vadd.f32 %v6789_v41, %v1785_v35  ;;  %v1827_v30 = vadd.f32 %v5510_v1, %v1786_v56  ;;  %v2512_v31 = vsel %vm2123_vm5, %v2509_v2, %v2511_v62  ;;  %v2535_v52 = vmul.f32 %v2534_v6, %v4141_v10  ;;  %v6791_v62 = vld [vmem:[#allocation28_spill] sm:$0xff] }
 0x25d   :  { %v1787_v57 = vadd.f32 %v5472_v46, %v1748_v27  ;;  %v1864_v39 = vadd.f32 %v5451_v50, %v1825_v20  ;;  %v2510_v26 = vsel %vm2123_vm5, %v2508_v42, %v2509_v2  ;;  %v2501_v35 = vmul.f32 %v2495_v24, %v4296_v0 }
 0x25e   :  { %v1866_v46 = vadd.f32 %v5542_v11, %v1827_v30  ;;  %v1865_v1 = vadd.f32 %v5553_v36, %v1826_v9  ;;  %v5782_v50 = vstv %s5746_s30  ;;  %v5785_v11 = vstv %s5749_s3  ;;  %v6792_v30 = vld [vmem:[#allocation31_spill] sm:$0xff]  ;;  %s3942_s30 = sld [smem:[#allocation2 + $0x2f]] }
 0x25f   :  { %v1828_v7 = vadd.f32 %v5503_v44, %v1787_v57  ;;  %v2548_v44 = vrot.slane %v2536_v5, 4  ;;  %v2575_v24 = vstv %s5759_s4  ;;  %v5797_v14 = vmul.f32 %v5782_v50, %v4115_v43  ;;  %s3932_s3 = sld [smem:[#allocation2 + $0x2a]] }
 0x260   :  { %2483 = vrot.lane.b32.xlu1 %v2476_v59, %s4017_s26  ;;  %v2537_v59 = vmul.f32 %v2534_v6, %v4318_v29  ;;  %v1906_v36 = vadd.f32 %v5598_v37, %v1865_v1  ;;  %v2547_v45 = vrot.slane %v2535_v52, 4  ;;  %v2516_v4 = vrot.slane %v2501_v35, 4  ;;  %s3944_s4 = sld [smem:[#allocation2 + $0x30]] }
 0x261   :  { %v1907_v27 = vadd.f32 %v6790_v22, %v1866_v46  ;;  %v5808_v61 = vmul.f32 %v5785_v11, %v4141_v10  ;;  %v2576_v20 = vmul.f32 %v2575_v24, %v4115_v43  ;;  %v5815_v41 = vmul.f32 %v2575_v24, %v4130_v58 }
 0x262   :  { %2481 = vrot.lane.b32.xlu0 %v2474_v15, %s4017_s26  ;;  %v5756_v38 = vpop.permute.xlu1 %2014  ;;  %2479 = vrot.lane.b32.xlu2 %v2471_v55, %s4017_s26  ;;  %v1905_v15 = vadd.f32 %v5613_v48, %v1864_v39  ;;  %v2550_v12 = vrot.slane %v2537_v59, 4  ;;  %v1867_v48 = vadd.f32 %v5474_v21, %v1828_v7  ;;  %v2539_v9 = vmul.f32 %v2534_v6, %v4145_v16 }
 0x263   :  { %v2540_v2 = vmul.f32 %v2534_v6, %v4312_v23  ;;  %v1945_v42 = vadd.f32 %v6791_v62, %v1906_v36  ;;  %v5824_v59 = vmul.f32 %v5785_v11, %v4151_v18  ;;  %v2549_v39 = vsel %vm2123_vm5, %v2547_v45, %v2548_v44 }
 0x264   :  { %v5764_v19 = vpop.permute.xlu0 %2012  ;;  %v5766_v3 = vpop.permute.xlu2 %2092  ;;  %v1944_v60 = vadd.f32 %v5645_v32, %v1905_v15  ;;  %v5804_v32 = vmul.f32 %v5782_v50, %v4130_v58  ;;  %v2551_v21 = vsel %vm2123_vm5, %v2548_v44, %v2550_v12  ;;  %v1908_v57 = vadd.f32 %v5657_v63, %v1867_v48 }
 0x265   :  { %v2517_v7 = vsel %vm2123_vm5, %v2514_v47, %v2516_v4  ;;  %v2538_v46 = vmul.f32 %v2534_v6, %v4149_v17  ;;  %v1946_v1 = vadd.f32 %v5698_v8, %v1907_v27  ;;  %v5836_v52 = vmul.f32 %v5782_v50, %v4123_v51 }
 0x266   :  { %v1985_v5 = vadd.f32 %v6792_v30, %v1944_v60  ;;  %v6529_v35 = vrot.slane %v5815_v41, 4  ;;  %v2553_v15 = vrot.slane %v2539_v9, 4  ;;  %v2555_v44 = vrot.slane %v2540_v2, 4 }
 0x267   :  { %v1987_v47 = vadd.f32 %v5719_v34, %v1946_v1  ;;  %v2114_v12 = vmul.f32 %v5782_v50, %v4103_v33  ;;  %v2146_v36 = vmul.f32 %v5785_v11, %v4149_v17  ;;  %v1947_v60 = vadd.f32 %v5692_v53, %v1908_v57 }
 0x268   :  { %2522 = vrot.lane.b32.xlu1 %v2515_v40, %s4018_s29  ;;  %v2113_v48 = vmul.f32 %v5782_v50, %v4257_v28  ;;  %v2145_v34 = vmul.f32 %v5785_v11, %v4318_v29  ;;  %v2552_v45 = vrot.slane %v2538_v46, 4  ;;  %v5856_v22 = vmul.f32 %v5785_v11, %v4145_v16 }
 0x269   :  { %v2579_v9 = vmul.f32 %v2575_v24, %v4103_v33  ;;  %v1986_v53 = vadd.f32 %v5726_v25, %v1945_v42  ;;  %v2130_v2 = vrot.slane %v5836_v52, 4  ;;  %v2556_v57 = vsel %vm2123_vm5, %v2553_v15, %v2555_v44 }
 0x26a   :  { %2520 = vrot.lane.b32.xlu0 %v2512_v31, %s4018_s29  ;;  %v5790_v55 = vpop.permute.xlu1 %2053  ;;  %2518 = vrot.lane.b32.xlu2 %v2510_v26, %s4018_s29  ;;  %v2125_v31 = vrot.slane %v5804_v32, 4  ;;  %v2588_v26 = vrot.slane %v2576_v20, 4  ;;  %v2581_v20 = vmul.f32 %v2575_v24, %v4296_v0  ;;  %v2026_v30 = vadd.f32 %v5700_v49, %v1987_v47 }
 0x26b   :  { %v2578_v46 = vmul.f32 %v2575_v24, %v4257_v28  ;;  %v2025_v1 = vadd.f32 %v5756_v38, %v1986_v53  ;;  %v2127_v63 = vrot.slane %v2113_v48, 4  ;;  %v2158_v40 = vrot.slane %v2145_v34, 4 }
 0x26c   :  { %v5800_v37 = vpop.permute.xlu0 %2018  ;;  %v5811_v56 = vpop.permute.xlu2 %2098  ;;  %v2590_v62 = vsel %vm2123_vm5, %v2588_v26, %v6529_v35  ;;  %v2554_v25 = vsel %vm2123_vm5, %v2552_v45, %v2553_v15  ;;  %v2024_v42 = vadd.f32 %v5764_v19, %v1985_v5  ;;  %v2596_v35 = vrot.slane %v2581_v20, 4 }
 0x26d   :  { %v2593_v44 = vrot.slane %v2579_v9, 4  ;;  %v2116_v49 = vmul.f32 %v5782_v50, %v4296_v0  ;;  %v2161_v47 = vrot.slane %v5856_v22, 4  ;;  %v1988_v38 = vadd.f32 %v5659_v13, %v1947_v60 }
 0x26e   :  { %v2065_v15 = vadd.f32 %v5790_v55, %v2024_v42  ;;  %v2591_v50 = vrot.slane %v2578_v46, 4  ;;  %v2128_v13 = vsel %vm2123_vm5, %v2125_v31, %v2127_v63  ;;  %v6793_v55 = vrot.slane %v5824_v59, 4 }
 0x26f   :  { %v2027_v20 = vadd.f32 %v5800_v37, %v1988_v38  ;;  %v6797_v32 = vrot.slane %v5808_v61, 4 }
 0x270   :  { %2559 = vrot.lane.b32.xlu1 %v2551_v21, %s4018_s29  ;;  %v2580_v21 = vmul.f32 %v2575_v24, %v4123_v51  ;;  %v5877_v24 = vstv %s5839_s5  ;;  %v2159_v60 = vsel %vm2123_vm5, %v6793_v55, %v2158_v40  ;;  %v2104_v53 = vadd.f32 %v5766_v3, %v2065_v15  ;;  %s3933_s5 = sld [smem:[#allocation2 + $0x5b]] }
 0x271   :  { %v5905_v63 = vmul.f32 %v5877_v24, %v4145_v16  ;;  %v2616_v40 = vmul.f32 %v5877_v24, %v4151_v18  ;;  %v6795_v3 = vrot.slane %v5797_v14, 4  ;;  %v6796_v38 = vmov %v6793_v55 }
 0x272   :  { %2557 = vrot.lane.b32.xlu0 %v2549_v39, %s4018_s29  ;;  %v2060_v6 = vpop.permute.xlu1 %2059  ;;  %2524 = vrot.lane.b32.xlu2 %v2517_v7, %s4018_s29  ;;  %v2129_v39 = vrot.slane %v2114_v12, 4  ;;  %v2160_v7 = vrot.slane %v2146_v36, 4  ;;  %v2594_v26 = vrot.slane %v2580_v21, 4  ;;  %v2066_v12 = vadd.f32 %v5728_v54, %v2025_v1 }
 0x273   :  { %v2618_v54 = vmul.f32 %v5877_v24, %v4149_v17  ;;  %v2068_v37 = vadd.f32 %v2060_v6, %v2027_v20  ;;  %v2126_v46 = vsel %vm2123_vm5, %v6795_v3, %v2125_v31  ;;  %v2132_v1 = vrot.slane %v2116_v49, 4 }
 0x274   :  { %v2058_v4 = vpop.permute.xlu0 %2057  ;;  %v2203_v27 = vpop.permute.xlu2 %2202  ;;  %v2131_v19 = vsel %vm2123_vm5, %v2129_v39, %v2130_v2  ;;  %v2162_v36 = vsel %vm2123_vm5, %v2160_v7, %v2161_v47  ;;  %v2597_v45 = vsel %vm2123_vm5, %v2594_v26, %v2596_v35  ;;  %v2617_v35 = vmul.f32 %v5877_v24, %v4318_v29 }
 0x275   :  { %v2067_v8 = vadd.f32 %v2058_v4, %v2026_v30  ;;  %v2595_v4 = vsel %vm2123_vm5, %v2593_v44, %v2594_v26  ;;  %v2615_v7 = vmul.f32 %v5877_v24, %v4141_v10  ;;  %v2633_v26 = vrot.slane %v5905_v63, 4 }
 0x276   :  { %v2720_v44 = vstv %s5879_s6  ;;  %v2157_v14 = vsel %vm2123_vm5, %v6797_v32, %v6796_v38  ;;  %v2628_v49 = vrot.slane %v2616_v40, 4  ;;  %v2138_v15 = vadd.f32 %v2126_v46, %v2104_v53 }
 0x277   :  { %v2133_v59 = vsel %vm2123_vm5, %v2130_v2, %v2132_v1  ;;  %v2620_v2 = vmul.f32 %v5877_v24, %v4312_v23  ;;  %v2759_v63 = vstv %s3921_s7  ;;  %v2726_v3 = vmul.f32 %v2720_v44, %v4296_v0 }
 0x278   :  { %2598 = vrot.lane.b32.xlu1 %v2590_v62, %s4019_s9  ;;  %v6794_v62 = vrot.slane %v5815_v41, 4  ;;  %v2632_v41 = vrot.slane %v2618_v54, 4  ;;  %v2724_v1 = vmul.f32 %v2720_v44, %v4103_v33 }
 0x279   :  { %v2635_v24 = vrot.slane %v2620_v2, 4 }
 0x27a   :  { %2563 = vrot.lane.b32.xlu0 %v2556_v57, %s4018_s29  ;;  %v2097_v5 = vpop.permute.xlu1 %2096  ;;  %2561 = vrot.lane.b32.xlu2 %v2554_v25, %s4018_s29  ;;  %v2592_v57 = vsel %vm2123_vm5, %v6794_v62, %v2591_v50  ;;  %v2148_v25 = vmul.f32 %v5785_v11, %v4312_v23  ;;  %v2630_v11 = vrot.slane %v2617_v35, 4  ;;  %v2634_v55 = vsel %vm2123_vm5, %v2632_v41, %v2633_v26 }
 0x27b   :  { %v2106_v48 = vadd.f32 %v2097_v5, %v2067_v8  ;;  %v2627_v5 = vrot.slane %v2615_v7, 4  ;;  %v2725_v7 = vmul.f32 %v2720_v44, %v4123_v51  ;;  %v2636_v46 = vsel %vm2123_vm5, %v2633_v26, %v2635_v24 }
 0x27c   :  { %v2095_v34 = vpop.permute.xlu0 %2094  ;;  %v2240_v21 = vpop.permute.xlu2 %2239  ;;  %v2163_v61 = vrot.slane %v2148_v25, 4  ;;  %v2764_v26 = vmul.f32 %v2759_v63, %v4145_v16  ;;  %v2839_v24 = vstv %s3923_s10  ;;  %s3836_s10 = sshll.u32 %s6525_s2, 4  ;;  %s3837_s10 = int_to_ptr.hbm [resolvable:$true] %s3836_s10 }
 0x27d   :  { %v2140_v8 = vadd.f32 %v2131_v19, %v2106_v48  ;;  %v2105_v9 = vadd.f32 %v2095_v34, %v2066_v12  ;;  %v2723_v48 = vmul.f32 %v2720_v44, %v4257_v28  ;;  %v2169_v34 = vadd.f32 %v2157_v14, %v2138_v15 }
 0x27e   :  { %v2629_v52 = vsel %vm2123_vm5, %v2627_v5, %v2628_v49  ;;  %v2739_v32 = vrot.slane %v2725_v7, 5  ;;  %v2741_v14 = vrot.slane %v2726_v3, 5  ;;  %v2763_v5 = vmul.f32 %v2759_v63, %v4149_v17 }
 0x27f   :  { %v2171_v30 = vadd.f32 %v2162_v36, %v2140_v8  ;;  %v2139_v39 = vadd.f32 %v2128_v13, %v2105_v9  ;;  %v2722_v36 = vmul.f32 %v2720_v44, %v4130_v58  ;;  %v2736_v54 = vrot.slane %v2723_v48, 5 }
 0x280   :  { %2604 = vrot.lane.b32.xlu1 %v2597_v45, %s4019_s9  ;;  %v2777_v48 = vrot.slane %v2763_v5, 5  ;;  %v2841_v7 = vmul.f32 %v2839_v24, %v4151_v18  ;;  %v2842_v3 = vmul.f32 %v2839_v24, %v4318_v29 }
 0x281   :  { %v2170_v42 = vadd.f32 %v2159_v60, %v2139_v39  ;;  %v5925_v6 = vadd.f32 %v2203_v27, %v2171_v30  ;;  %v2107_v27 = vadd.f32 %v5811_v56, %v2068_v37  ;;  %v2631_v60 = vsel %vm2123_vm5, %v2628_v49, %v2630_v11 }
 0x282   :  { %2602 = vrot.lane.b32.xlu0 %v2595_v4, %s4019_s9  ;;  %v2201_v31 = vpop.permute.xlu1 %2200  ;;  %2600 = vrot.lane.b32.xlu2 %v2592_v57, %s4019_s9  ;;  %v2721_v56 = vmul.f32 %v2720_v44, %v4115_v43  ;;  %v2164_v4 = vsel %vm2123_vm5, %v2161_v47, %v2163_v61  ;;  %v2760_v37 = vmul.f32 %v2759_v63, %v4141_v10 }
 0x283   :  { %v2211_v19 = vadd.f32 %v2201_v31, %v2170_v42  ;;  %v2141_v45 = vadd.f32 %v2133_v59, %v2107_v27  ;;  %v2761_v30 = vmul.f32 %v2759_v63, %v4151_v18  ;;  %v2738_v31 = vrot.slane %v2724_v1, 5 }
 0x284   :  { %v2199_v50 = vpop.permute.xlu0 %2198  ;;  %v2279_v12 = vpop.permute.xlu2 %2278  ;;  %v2733_v9 = vrot.slane %v2721_v56, 5  ;;  %v2772_v25 = vrot.slane %v2760_v37, 5  ;;  %v2765_v44 = vmul.f32 %v2759_v63, %v4312_v23  ;;  %v2742_v59 = vsel %vm2668_vm6, %v2739_v32, %v2741_v14 }
 0x285   :  { %v5942_v13 = vadd.f32 %v2240_v21, %v2211_v19  ;;  %v2734_v21 = vrot.slane %v2722_v36, 5  ;;  %v2210_v20 = vadd.f32 %v2199_v50, %v2169_v34  ;;  %v2172_v53 = vadd.f32 %v2164_v4, %v2141_v45 }
 0x286   :  { %v2773_v41 = vrot.slane %v2761_v30, 5  ;;  %v2740_v61 = vsel %vm2668_vm6, %v2738_v31, %v2739_v32  ;;  %v2762_v50 = vmul.f32 %v2759_v63, %v4318_v29  ;;  %v2780_v36 = vrot.slane %v2765_v44, 5 }
 0x287   :  { %v2737_v22 = vsel %vm2668_vm6, %v2734_v21, %v2736_v54  ;;  %v2735_v39 = vsel %vm2668_vm6, %v2733_v9, %v2734_v21  ;;  %v2853_v14 = vrot.slane %v2841_v7, 5  ;;  %v2855_v31 = vrot.slane %v2842_v3, 5 }
 0x288   :  { %2641 = vrot.lane.b32.xlu1 %v2634_v55, %s4019_s9  ;;  %v2774_v19 = vsel %vm2668_vm6, %v2772_v25, %v2773_v41  ;;  %v2800_v55 = vstv %s3922_s8  ;;  %v2775_v56 = vrot.slane %v2762_v50, 5 }
 0x289   :  { %v2804_v21 = vmul.f32 %v2800_v55, %v4103_v33  ;;  %v2805_v54 = vmul.f32 %v2800_v55, %v4123_v51  ;;  %v2803_v9 = vmul.f32 %v2800_v55, %v4257_v28  ;;  %v2806_v32 = vmul.f32 %v2800_v55, %v4296_v0 }
 0x28a   :  { %2639 = vrot.lane.b32.xlu0 %v2631_v60, %s4019_s9  ;;  %v2238_v8 = vpop.permute.xlu1 %2237  ;;  %2637 = vrot.lane.b32.xlu2 %v2629_v52, %s4019_s9  ;;  %v2776_v63 = vsel %vm2668_vm6, %v2773_v41, %v2775_v56  ;;  %v2840_v41 = vmul.f32 %v2839_v24, %v4141_v10 }
 0x28b   :  { %v2249_v40 = vadd.f32 %v2238_v8, %v2210_v20  ;;  %v2802_v8 = vmul.f32 %v2800_v55, %v4130_v58  ;;  %v2821_v44 = vrot.slane %v2806_v32, 5 }
 0x28c   :  { %v2205_v35 = vpop.permute.xlu0 %2204  ;;  %v2285_v47 = vpop.permute.xlu2 %2284 }
 0x28d   :  { %v2213_v62 = vadd.f32 %v2205_v35, %v2172_v53  ;;  %v5957_v57 = vadd.f32 %v2279_v12, %v2249_v40  ;;  %v2778_v12 = vrot.slane %v2764_v26, 5  ;;  %v2801_v53 = vmul.f32 %v2800_v55, %v4115_v43 }
 0x28e   :  { %v2818_v40 = vrot.slane %v2804_v21, 5 }
 0x28f   :  { %v2781_v45 = vsel %vm2668_vm6, %v2778_v12, %v2780_v36  ;;  %v2779_v20 = vsel %vm2668_vm6, %v2777_v48, %v2778_v12  ;;  %v2813_v37 = vrot.slane %v2801_v53, 5  ;;  %v2845_v48 = vmul.f32 %v2839_v24, %v4312_v23 }
 0x290   :  { %2745 = vrot.lane.b32.xlu1 %v2737_v22, %s4014_s18 }
 0x292   :  { %2743 = vrot.lane.b32.xlu0 %v2735_v39, %s4014_s18  ;;  %v2244_v42 = vpop.permute.xlu1 %2243  ;;  %2643 = vrot.lane.b32.xlu2 %v2636_v46, %s4019_s9 }
 0x293   :  { %v2252_v38 = vadd.f32 %v2244_v42, %v2213_v62  ;;  %v2816_v62 = vrot.slane %v2803_v9, 5 }
 0x294   :  { %v2242_v49 = vpop.permute.xlu0 %2241  ;;  %v2322_v11 = vpop.permute.xlu2 %2321 }
 0x295   :  { %v2251_v15 = vadd.f32 %v2242_v49, %v5925_v6  ;;  %v5972_v27 = vadd.f32 %v2285_v47, %v2252_v38  ;;  %v2814_v47 = vrot.slane %v2802_v8, 5 }
 0x297   :  { %v2817_v42 = vsel %vm2668_vm6, %v2814_v47, %v2816_v62  ;;  %v2815_v38 = vsel %vm2668_vm6, %v2813_v37, %v2814_v47 }
 0x298   :  { %2782 = vrot.lane.b32.xlu1 %v2774_v19, %s4014_s18  ;;  %v2856_v19 = vsel %vm2668_vm6, %v2853_v14, %v2855_v31 }
 0x29a   :  { %2749 = vrot.lane.b32.xlu0 %v2742_v59, %s4014_s18  ;;  %v2283_v6 = vpop.permute.xlu1 %2282  ;;  %2747 = vrot.lane.b32.xlu2 %v2740_v61, %s4014_s18 }
 0x29b   :  { %v2292_v60 = vadd.f32 %v2283_v6, %v2251_v15  ;;  %v2844_v6 = vmul.f32 %v2839_v24, %v4145_v16 }
 0x29c   :  { %v2281_v34 = vpop.permute.xlu0 %2280  ;;  %v2361_v52 = vpop.permute.xlu2 %2360 }
 0x29d   :  { %v2291_v2 = vadd.f32 %v2281_v34, %v5942_v13  ;;  %v5984_v4 = vadd.f32 %v2322_v11, %v2292_v60  ;;  %v2819_v13 = vrot.slane %v2805_v54, 5  ;;  %v2880_v11 = vstv %s3924_s11  ;;  %s4021_s11 = smov 128  }
 0x29e   :  { %v2881_v50 = vmul.f32 %v2880_v11, %v4115_v43  ;;  %v2882_v12 = vmul.f32 %v2880_v11, %v4130_v58  ;;  %v2843_v60 = vmul.f32 %v2839_v24, %v4149_v17  ;;  %v2885_v8 = vmul.f32 %v2880_v11, %v4123_v51 }
 0x29f   :  { %v2820_v25 = vsel %vm2668_vm6, %v2818_v40, %v2819_v13  ;;  %v2822_v55 = vsel %vm2668_vm6, %v2819_v13, %v2821_v44  ;;  %v2886_v9 = vmul.f32 %v2880_v11, %v4296_v0  ;;  %v2884_v13 = vmul.f32 %v2880_v11, %v4103_v33 }
 0x2a0   :  { %2788 = vrot.lane.b32.xlu1 %v2781_v45, %s4014_s18  ;;  %v2893_v56 = vrot.slane %v2881_v50, 5  ;;  %v2857_v21 = vrot.slane %v2843_v60, 5  ;;  %v2899_v47 = vrot.slane %v2885_v8, 5  ;;  %v2960_v44 = vstv %s3926_s13 }
 0x2a1   :  { %v2901_v62 = vrot.slane %v2886_v9, 5  ;;  %v2898_v37 = vrot.slane %v2884_v13, 5 }
 0x2a2   :  { %2786 = vrot.lane.b32.xlu0 %v2779_v20, %s4014_s18  ;;  %v2320_v35 = vpop.permute.xlu1 %2319  ;;  %2784 = vrot.lane.b32.xlu2 %v2776_v63, %s4014_s18 }
 0x2a3   :  { %v2330_v22 = vadd.f32 %v2320_v35, %v2291_v2  ;;  %v2860_v2 = vrot.slane %v2845_v48, 5  ;;  %v2963_v48 = vmul.f32 %v2960_v44, %v4257_v28 }
 0x2a4   :  { %v2318_v30 = vpop.permute.xlu0 %2317  ;;  %v2398_v39 = vpop.permute.xlu2 %2397 }
 0x2a5   :  { %v2329_v46 = vadd.f32 %v2318_v30, %v5957_v57  ;;  %v5999_v1 = vadd.f32 %v2361_v52, %v2330_v22  ;;  %v2852_v57 = vrot.slane %v2840_v41, 5  ;;  %v2858_v52 = vrot.slane %v2844_v6, 5 }
 0x2a6   :  { %v2883_v22 = vmul.f32 %v2880_v11, %v4257_v28  ;;  %v2919_v30 = vstv %s3925_s12  ;;  %v2962_v6 = vmul.f32 %v2960_v44, %v4130_v58  ;;  %s4022_s12 = smov 8  }
 0x2a7   :  { %v2854_v36 = vsel %vm2668_vm6, %v2852_v57, %v2853_v14  ;;  %v2861_v24 = vsel %vm2668_vm6, %v2858_v52, %v2860_v2  ;;  %v2859_v35 = vsel %vm2668_vm6, %v2857_v21, %v2858_v52  ;;  %v2924_v32 = vmul.f32 %v2919_v30, %v4145_v16 }
 0x2a8   :  { %2827 = vrot.lane.b32.xlu1 %v2820_v25, %s4015_s20  ;;  %v2896_v7 = vrot.slane %v2883_v22, 5  ;;  %v2900_v14 = vsel %vm2668_vm6, %v2898_v37, %v2899_v47  ;;  %v2921_v31 = vmul.f32 %v2919_v30, %v4151_v18  ;;  %v2920_v11 = vmul.f32 %v2919_v30, %v4141_v10 }
 0x2a9   :  { %v2925_v52 = vmul.f32 %v2919_v30, %v4312_v23  ;;  %v2974_v2 = vrot.slane %v2962_v6, 5  ;;  %v2976_v21 = vrot.slane %v2963_v48, 5  ;;  %v2966_v37 = vmul.f32 %v2960_v44, %v4296_v0 }
 0x2aa   :  { %2825 = vrot.lane.b32.xlu0 %v2817_v42, %s4015_s20  ;;  %v2359_v49 = vpop.permute.xlu1 %2358  ;;  %2823 = vrot.lane.b32.xlu2 %v2815_v38, %s4015_s20  ;;  %v2923_v38 = vmul.f32 %v2919_v30, %v4149_v17  ;;  %v2932_v50 = vrot.slane %v2920_v11, 5 }
 0x2ab   :  { %v2370_v26 = vadd.f32 %v2359_v49, %v2329_v46  ;;  %v2902_v46 = vsel %vm2668_vm6, %v2899_v47, %v2901_v62  ;;  %v2922_v49 = vmul.f32 %v2919_v30, %v4318_v29  ;;  %v2940_v9 = vrot.slane %v2925_v52, 5 }
 0x2ac   :  { %v2324_v15 = vpop.permute.xlu0 %2323  ;;  %v2404_v5 = vpop.permute.xlu2 %2403 }
 0x2ad   :  { %v2332_v59 = vadd.f32 %v2324_v15, %v5972_v27  ;;  %v6011_v61 = vadd.f32 %v2398_v39, %v2370_v26  ;;  %v2894_v27 = vrot.slane %v2882_v12, 5  ;;  %v2937_v26 = vrot.slane %v2923_v38, 5 }
 0x2af   :  { %v2895_v40 = vsel %vm2668_vm6, %v2893_v56, %v2894_v27  ;;  %v2897_v57 = vsel %vm2668_vm6, %v2894_v27, %v2896_v7  ;;  %v2961_v27 = vmul.f32 %v2960_v44, %v4115_v43 }
 0x2b0   :  { %2864 = vrot.lane.b32.xlu1 %v2856_v19, %s4015_s20 }
 0x2b2   :  { %2862 = vrot.lane.b32.xlu0 %v2854_v36, %s4015_s20  ;;  %v2365_v34 = vpop.permute.xlu1 %2364  ;;  %2829 = vrot.lane.b32.xlu2 %v2822_v55, %s4015_s20 }
 0x2b3   :  { %v2373_v45 = vadd.f32 %v2365_v34, %v2332_v59  ;;  %v2935_v59 = vrot.slane %v2922_v49, 5 }
 0x2b4   :  { %v2363_v54 = vpop.permute.xlu0 %2362  ;;  %v2443_v20 = vpop.permute.xlu2 %2442 }
 0x2b5   :  { %v2372_v63 = vadd.f32 %v2363_v54, %v5984_v4  ;;  %v6026_v53 = vadd.f32 %v2404_v5, %v2373_v45  ;;  %v2933_v5 = vrot.slane %v2921_v31, 5 }
 0x2b7   :  { %v2936_v34 = vsel %vm2668_vm6, %v2933_v5, %v2935_v59  ;;  %v2934_v45 = vsel %vm2668_vm6, %v2932_v50, %v2933_v5 }
 0x2b8   :  { %2903 = vrot.lane.b32.xlu1 %v2895_v40, %s4016_s22  ;;  %v2977_v40 = vsel %vm2668_vm6, %v2974_v2, %v2976_v21 }
 0x2ba   :  { %2868 = vrot.lane.b32.xlu0 %v2861_v24, %s4015_s20  ;;  %v2402_v4 = vpop.permute.xlu1 %2401  ;;  %2866 = vrot.lane.b32.xlu2 %v2859_v35, %s4015_s20 }
 0x2bb   :  { %v2411_v39 = vadd.f32 %v2402_v4, %v2372_v63  ;;  %v2965_v4 = vmul.f32 %v2960_v44, %v4123_v51 }
 0x2bc   :  { %v2400_v3 = vpop.permute.xlu0 %2399  ;;  %v2480_v25 = vpop.permute.xlu2 %2479 }
 0x2bd   :  { %v2410_v41 = vadd.f32 %v2400_v3, %v5999_v1  ;;  %v6038_v42 = vadd.f32 %v2443_v20, %v2411_v39  ;;  %v2938_v1 = vrot.slane %v2924_v32, 5  ;;  %v2999_v20 = vstv %s3927_s14 }
 0x2be   :  { %v3000_v22 = vmul.f32 %v2999_v20, %v4141_v10  ;;  %v3001_v47 = vmul.f32 %v2999_v20, %v4151_v18  ;;  %v2964_v39 = vmul.f32 %v2960_v44, %v4103_v33  ;;  %v3004_v31 = vmul.f32 %v2999_v20, %v4145_v16 }
 0x2bf   :  { %v2939_v56 = vsel %vm2668_vm6, %v2937_v26, %v2938_v1  ;;  %v2941_v30 = vsel %vm2668_vm6, %v2938_v1, %v2940_v9  ;;  %v3005_v49 = vmul.f32 %v2999_v20, %v4312_v23  ;;  %v3003_v1 = vmul.f32 %v2999_v20, %v4149_v17 }
 0x2c0   :  { %2909 = vrot.lane.b32.xlu1 %v2902_v46, %s4016_s22  ;;  %v3012_v7 = vrot.slane %v3000_v22, 5  ;;  %v2978_v38 = vrot.slane %v2964_v39, 5  ;;  %v3018_v5 = vrot.slane %v3004_v31, 5  ;;  %v3079_v9 = vstv %s3929_s16 }
 0x2c1   :  { %v3020_v59 = vrot.slane %v3005_v49, 5  ;;  %v3017_v50 = vrot.slane %v3003_v1, 5  ;;  %v3120_v31 = vstv %s3930_s1 }
 0x2c2   :  { %2907 = vrot.lane.b32.xlu0 %v2900_v14, %s4016_s22  ;;  %v2441_v15 = vpop.permute.xlu1 %2440  ;;  %2905 = vrot.lane.b32.xlu2 %v2897_v57, %s4016_s22 }
 0x2c3   :  { %v2451_v19 = vadd.f32 %v2441_v15, %v2410_v41  ;;  %v2981_v41 = vrot.slane %v2966_v37, 5  ;;  %v3082_v37 = vmul.f32 %v3079_v9, %v4318_v29 }
 0x2c4   :  { %v2439_v12 = vpop.permute.xlu0 %2438  ;;  %v2519_v36 = vpop.permute.xlu2 %2518 }
 0x2c5   :  { %v2450_v55 = vadd.f32 %v2439_v12, %v6011_v61  ;;  %v6053_v60 = vadd.f32 %v2480_v25, %v2451_v19  ;;  %v2973_v61 = vrot.slane %v2961_v27, 5  ;;  %v2979_v25 = vrot.slane %v2965_v4, 5 }
 0x2c6   :  { %v3002_v19 = vmul.f32 %v2999_v20, %v4318_v29  ;;  %v3040_v12 = vstv %s3928_s15  ;;  %v3081_v4 = vmul.f32 %v3079_v9, %v4151_v18 }
 0x2c7   :  { %v2975_v62 = vsel %vm2668_vm6, %v2973_v61, %v2974_v2  ;;  %v2982_v44 = vsel %vm2668_vm6, %v2979_v25, %v2981_v41  ;;  %v2980_v15 = vsel %vm2668_vm6, %v2978_v38, %v2979_v25  ;;  %v3045_v52 = vmul.f32 %v3040_v12, %v4123_v51 }
 0x2c8   :  { %2946 = vrot.lane.b32.xlu1 %v2939_v56, %s4016_s22  ;;  %v3015_v6 = vrot.slane %v3002_v19, 5  ;;  %v3019_v2 = vsel %vm2668_vm6, %v3017_v50, %v3018_v5  ;;  %v3042_v21 = vmul.f32 %v3040_v12, %v4130_v58  ;;  %v3041_v20 = vmul.f32 %v3040_v12, %v4115_v43 }
 0x2c9   :  { %v3046_v25 = vmul.f32 %v3040_v12, %v4296_v0  ;;  %v3093_v41 = vrot.slane %v3081_v4, 5  ;;  %v3095_v38 = vrot.slane %v3082_v37, 5 }
 0x2ca   :  { %2944 = vrot.lane.b32.xlu0 %v2936_v34, %s4016_s22  ;;  %v2478_v54 = vpop.permute.xlu1 %2477  ;;  %2942 = vrot.lane.b32.xlu2 %v2934_v45, %s4016_s22  ;;  %v3044_v45 = vmul.f32 %v3040_v12, %v4103_v33  ;;  %v3053_v22 = vrot.slane %v3041_v20, 5 }
 0x2cb   :  { %v2489_v8 = vadd.f32 %v2478_v54, %v2450_v55  ;;  %v3021_v55 = vsel %vm2668_vm6, %v3018_v5, %v3020_v59  ;;  %v3043_v54 = vmul.f32 %v3040_v12, %v4257_v28  ;;  %v3121_v59 = vmul.f32 %v3120_v31, %v4115_v43 }
 0x2cc   :  { %v2445_v63 = vpop.permute.xlu0 %2444  ;;  %v2525_v13 = vpop.permute.xlu2 %2524 }
 0x2cd   :  { %v2453_v24 = vadd.f32 %v2445_v63, %v6026_v53  ;;  %v6065_v35 = vadd.f32 %v2519_v36, %v2489_v8  ;;  %v3013_v53 = vrot.slane %v3001_v47, 5  ;;  %v3058_v8 = vrot.slane %v3044_v45, 5 }
 0x2cf   :  { %v3014_v26 = vsel %vm2668_vm6, %v3012_v7, %v3013_v53  ;;  %v3016_v61 = vsel %vm2668_vm6, %v3013_v53, %v3015_v6  ;;  %v3080_v53 = vmul.f32 %v3079_v9, %v4141_v10  ;;  %v3084_v6 = vmul.f32 %v3079_v9, %v4145_v16 }
 0x2d0   :  { %2985 = vrot.lane.b32.xlu1 %v2977_v40, %s4017_s26 }
 0x2d2   :  { %2983 = vrot.lane.b32.xlu0 %v2975_v62, %s4017_s26  ;;  %v2484_v3 = vpop.permute.xlu1 %2483  ;;  %2948 = vrot.lane.b32.xlu2 %v2941_v30, %s4016_s22 }
 0x2d3   :  { %v2492_v46 = vadd.f32 %v2484_v3, %v2453_v24  ;;  %v3056_v24 = vrot.slane %v3043_v54, 5 }
 0x2d4   :  { %v2482_v32 = vpop.permute.xlu0 %2481  ;;  %v2562_v14 = vpop.permute.xlu2 %2561 }
 0x2d5   :  { %v2491_v57 = vadd.f32 %v2482_v32, %v6038_v42  ;;  %v6080_v11 = vadd.f32 %v2525_v13, %v2492_v46  ;;  %v3054_v13 = vrot.slane %v3042_v21, 5  ;;  %v6115_v32 = vstv %s3918_s17 }
 0x2d6   :  { %v2656_v1 = vmul.f32 %v6115_v32, %v4115_v43  ;;  %v6131_v50 = vmul.f32 %v6115_v32, %v4130_v58  ;;  %v6148_v21 = vmul.f32 %v6115_v32, %v4123_v51  ;;  %v2659_v54 = vmul.f32 %v6115_v32, %v4103_v33 }
 0x2d7   :  { %v3057_v3 = vsel %vm2668_vm6, %v3054_v13, %v3056_v24  ;;  %v3055_v46 = vsel %vm2668_vm6, %v3053_v22, %v3054_v13  ;;  %v3125_v22 = vmul.f32 %v3120_v31, %v4123_v51 }
 0x2d8   :  { %3022 = vrot.lane.b32.xlu1 %v3014_v26, %s4017_s26 }
 0x2da   :  { %2989 = vrot.lane.b32.xlu0 %v2982_v44, %s4017_s26  ;;  %v2523_v42 = vpop.permute.xlu1 %2522  ;;  %2987 = vrot.lane.b32.xlu2 %v2980_v15, %s4017_s26  ;;  %v3096_v44 = vsel %vm2668_vm6, %v3093_v41, %v3095_v38 }
 0x2db   :  { %v2532_v36 = vadd.f32 %v2523_v42, %v2491_v57  ;;  %v3061_v57 = vrot.slane %v3046_v25, 5  ;;  %v6127_v42 = vmul.f32 %v3120_v31, %v4130_v58 }
 0x2dc   :  { %v2521_v48 = vpop.permute.xlu0 %2520  ;;  %v2601_v56 = vpop.permute.xlu2 %2600 }
 0x2dd   :  { %v2531_v27 = vadd.f32 %v2521_v48, %v6053_v60  ;;  %v6092_v34 = vadd.f32 %v2562_v14, %v2532_v36  ;;  %v3059_v60 = vrot.slane %v3045_v52, 5  ;;  %v3092_v14 = vrot.slane %v3080_v53, 5 }
 0x2de   :  { %v6134_v36 = vstv %s3919_s19  ;;  %v3085_v48 = vmul.f32 %v3079_v9, %v4312_v23  ;;  %v3134_v45 = vrot.slane %v6127_v42, 5  ;;  %v2670_v52 = vrot.slane %v6131_v50, 5 }
 0x2df   :  { %v3060_v7 = vsel %vm2668_vm6, %v3058_v8, %v3059_v60  ;;  %v3094_v12 = vsel %vm2668_vm6, %v3092_v14, %v3093_v41  ;;  %v3098_v8 = vrot.slane %v3084_v6, 5  ;;  %v2691_v13 = vmul.f32 %v6134_v36, %v4149_v17 }
 0x2e0   :  { %3028 = vrot.lane.b32.xlu1 %v3021_v55, %s4017_s26  ;;  %v3083_v55 = vmul.f32 %v3079_v9, %v4149_v17  ;;  %v6173_v53 = vmul.f32 %v6134_v36, %v4145_v16  ;;  %v2688_v38 = vmul.f32 %v6134_v36, %v4141_v10 }
 0x2e1   :  { %v2705_v14 = vrot.slane %v2691_v13, 5 }
 0x2e2   :  { %3026 = vrot.lane.b32.xlu0 %v3019_v2, %s4017_s26  ;;  %v2560_v63 = vpop.permute.xlu1 %2559  ;;  %3024 = vrot.lane.b32.xlu2 %v3016_v61, %s4017_s26  ;;  %v6155_v61 = vmul.f32 %v6134_v36, %v4151_v18  ;;  %v3097_v9 = vrot.slane %v3083_v55, 5 }
 0x2e3   :  { %v2570_v40 = vadd.f32 %v2560_v63, %v2531_v27  ;;  %v3133_v27 = vrot.slane %v3121_v59, 5 }
 0x2e4   :  { %v2558_v47 = vpop.permute.xlu0 %2557  ;;  %v2638_v62 = vpop.permute.xlu2 %2637  ;;  %v3099_v41 = vsel %vm2668_vm6, %v3097_v9, %v3098_v8 }
 0x2e5   :  { %v2569_v30 = vadd.f32 %v2558_v47, %v6065_v35  ;;  %v6107_v39 = vadd.f32 %v2601_v56, %v2570_v40  ;;  %v2669_v56 = vrot.slane %v2656_v1, 5  ;;  %v2658_v40 = vmul.f32 %v6115_v32, %v4257_v28 }
 0x2e6   :  { %v3126_v47 = vmul.f32 %v3120_v31, %v4296_v0  ;;  %v3135_v37 = vsel %vm2668_vm6, %v3133_v27, %v3134_v45 }
 0x2e8   :  { %3067 = vrot.lane.b32.xlu1 %v3060_v7, %s4018_s29  ;;  %v2674_v7 = vrot.slane %v2659_v54, 5 }
 0x2ea   :  { %3065 = vrot.lane.b32.xlu0 %v3057_v3, %s4018_s29  ;;  %v2599_v35 = vpop.permute.xlu1 %2598  ;;  %3063 = vrot.lane.b32.xlu2 %v3055_v46, %s4018_s29  ;;  %v3124_v3 = vmul.f32 %v3120_v31, %v4103_v33  ;;  %v3123_v46 = vmul.f32 %v3120_v31, %v4257_v28 }
 0x2eb   :  { %v2610_v49 = vadd.f32 %v2599_v35, %v2569_v30  ;;  %v2690_v30 = vmul.f32 %v6134_v36, %v4318_v29  ;;  %v2672_v35 = vrot.slane %v2658_v40, 5 }
 0x2ec   :  { %v2564_v26 = vpop.permute.xlu0 %2563  ;;  %v2644_v15 = vpop.permute.xlu2 %2643  ;;  %v3138_v59 = vrot.slane %v3124_v3, 5  ;;  %v3136_v50 = vrot.slane %v3123_v46, 5 }
 0x2ed   :  { %v2572_v19 = vadd.f32 %v2564_v26, %v6080_v11  ;;  %v6123_v5 = vadd.f32 %v2638_v62, %v2610_v49  ;;  %v3062_v11 = vsel %vm2668_vm6, %v3059_v60, %v3061_v57  ;;  %v3100_v60 = vrot.slane %v3085_v48, 5 }
 0x2ee   :  { %v3139_v49 = vrot.slane %v3125_v22, 5  ;;  %v3141_v57 = vrot.slane %v3126_v47, 5  ;;  %v2671_v26 = vsel %vm2668_vm6, %v2669_v56, %v2670_v52  ;;  %v2703_v1 = vrot.slane %v2690_v30, 5 }
 0x2ef   :  { %v3101_v25 = vsel %vm2668_vm6, %v3098_v8, %v3100_v60  ;;  %v2701_v48 = vrot.slane %v6155_v61, 5  ;;  %v2673_v55 = vsel %vm2668_vm6, %v2670_v52, %v2672_v35  ;;  %v2693_v30 = vmul.f32 %v6134_v36, %v4312_v23 }
 0x2f0   :  { %3104 = vrot.lane.b32.xlu1 %v3096_v44, %s4018_s29  ;;  %v6185_v44 = vstv %s6142_s21  ;;  %v3140_v52 = vsel %vm2668_vm6, %v3138_v59, %v3139_v49 }
 0x2f1   :  { %v3163_v54 = vmul.f32 %v6185_v44, %v4149_v17  ;;  %v6205_v61 = vmul.f32 %v6185_v44, %v4145_v16  ;;  %v3161_v60 = vmul.f32 %v6185_v44, %v4151_v18  ;;  %v3162_v9 = vmul.f32 %v6185_v44, %v4318_v29 }
 0x2f2   :  { %3102 = vrot.lane.b32.xlu0 %v3094_v12, %s4018_s29  ;;  %v2605_v2 = vpop.permute.xlu1 %2604  ;;  %3069 = vrot.lane.b32.xlu2 %v3062_v11, %s4018_s29  ;;  %v2661_v12 = vmul.f32 %v6115_v32, %v4296_v0  ;;  %v2700_v11 = vrot.slane %v2688_v38, 5  ;;  %v2704_v32 = vsel %vm2668_vm6, %v2701_v48, %v2703_v1  ;;  %v3160_v22 = vmul.f32 %v6185_v44, %v4141_v10 }
 0x2f3   :  { %v2613_v20 = vadd.f32 %v2605_v2, %v2572_v19  ;;  %v2706_v19 = vrot.slane %v6173_v53, 5  ;;  %v3142_v2 = vsel %vm2668_vm6, %v3139_v49, %v3141_v57  ;;  %v3173_v3 = vrot.slane %v3161_v60, 5 }
 0x2f4   :  { %v2603_v63 = vpop.permute.xlu0 %2602  ;;  %v2748_v24 = vpop.permute.xlu2 %2747  ;;  %v2677_v47 = vrot.slane %v2661_v12, 5  ;;  %v3172_v38 = vrot.slane %v3160_v22, 5  ;;  %v3165_v12 = vmul.f32 %v6185_v44, %v4312_v23 }
 0x2f5   :  { %v2612_v62 = vadd.f32 %v2603_v63, %v6092_v34  ;;  %v6164_v4 = vadd.f32 %v2644_v15, %v2613_v20  ;;  %v2675_v34 = vrot.slane %v6148_v21, 5  ;;  %v2707_v27 = vsel %vm2668_vm6, %v2705_v14, %v2706_v19 }
 0x2f6   :  { %v3137_v63 = vsel %vm2668_vm6, %v3134_v45, %v3136_v50  ;;  %v3178_v45 = vrot.slane %v6205_v61, 5 }
 0x2f7   :  { %v2676_v31 = vsel %vm2668_vm6, %v2674_v7, %v2675_v34  ;;  %v2678_v35 = vsel %vm2668_vm6, %v2675_v34, %v2677_v47  ;;  %v3174_v34 = vsel %vm2668_vm6, %v3172_v38, %v3173_v3 }
 0x2f8   :  { %3143 = vrot.lane.b32.xlu1 %v3135_v37, %s4019_s9  ;;  %v3177_v37 = vrot.slane %v3163_v54, 5  ;;  %v2686_v59 = vadd.f32 %v2678_v35, %v6164_v4  ;;  %v3304_v4 = vstv %s3935_s24 }
 0x2f9   :  { %v3306_v61 = vmul.f32 %v3304_v4, %v4151_v18 }
 0x2fa   :  { %3108 = vrot.lane.b32.xlu0 %v3101_v25, %s4018_s29  ;;  %v2642_v15 = vpop.permute.xlu1 %2641  ;;  %3106 = vrot.lane.b32.xlu2 %v3099_v41, %s4018_s29  ;;  %v3175_v41 = vrot.slane %v3162_v9, 5 }
 0x2fb   :  { %v2651_v6 = vadd.f32 %v2642_v15, %v2612_v62  ;;  %v2702_v62 = vsel %vm2668_vm6, %v2700_v11, %v2701_v48 }
 0x2fc   :  { %v2640_v56 = vpop.permute.xlu0 %2639  ;;  %v2785_v21 = vpop.permute.xlu2 %2784  ;;  %v3176_v50 = vsel %vm2668_vm6, %v3173_v3, %v3175_v41  ;;  %v3308_v41 = vmul.f32 %v3304_v4, %v4149_v17 }
 0x2fd   :  { %v2685_v20 = vadd.f32 %v2676_v31, %v2651_v6  ;;  %v2650_v8 = vadd.f32 %v2640_v56, %v6107_v39  ;;  %v2683_v39 = vadd.f32 %v2671_v26, %v6123_v5  ;;  %v3265_v5 = vstv %s6187_s23 }
 0x2fe   :  { %v3267_v49 = vmul.f32 %v3265_v5, %v4130_v58  ;;  %v3268_v57 = vmul.f32 %v3265_v5, %v4257_v28  ;;  %v3179_v31 = vsel %vm2668_vm6, %v3177_v37, %v3178_v45  ;;  %v3266_v15 = vmul.f32 %v3265_v5, %v4115_v43 }
 0x2ff   :  { %v2684_v40 = vadd.f32 %v2673_v55, %v2650_v8  ;;  %v2716_v13 = vadd.f32 %v2707_v27, %v2685_v20  ;;  %v2714_v25 = vadd.f32 %v2702_v62, %v2683_v39  ;;  %v3270_v60 = vmul.f32 %v3265_v5, %v4123_v51 }
 0x300   :  { %3149 = vrot.lane.b32.xlu1 %v3142_v2, %s4019_s9  ;;  %v3279_v48 = vrot.slane %v3267_v49, 6  ;;  %v3281_v11 = vrot.slane %v3268_v57, 6  ;;  %v3278_v56 = vrot.slane %v3266_v15, 6  ;;  %v3271_v9 = vmul.f32 %v3265_v5, %v4296_v0 }
 0x301   :  { %v6222_v7 = vadd.f32 %v2748_v24, %v2716_v13  ;;  %v2715_v42 = vadd.f32 %v2704_v32, %v2684_v40  ;;  %v2708_v24 = vrot.slane %v2693_v30, 5  ;;  %v3269_v39 = vmul.f32 %v3265_v5, %v4103_v33 }
 0x302   :  { %3147 = vrot.lane.b32.xlu0 %v3140_v52, %s4019_s9  ;;  %v2746_v53 = vpop.permute.xlu1 %2745  ;;  %3145 = vrot.lane.b32.xlu2 %v3137_v63, %s4019_s9  ;;  %v3282_v44 = vsel %vm3213_vm7, %v3279_v48, %v3281_v11  ;;  %v3280_v52 = vsel %vm3213_vm7, %v3278_v56, %v3279_v48  ;;  %v3318_v13 = vrot.slane %v3306_v61, 6  ;;  %v3284_v62 = vrot.slane %v3270_v60, 6 }
 0x303   :  { %v2756_v46 = vadd.f32 %v2746_v53, %v2715_v42  ;;  %v2709_v6 = vsel %vm2668_vm6, %v2706_v19, %v2708_v24  ;;  %v3305_v19 = vmul.f32 %v3304_v4, %v4141_v10  ;;  %v3286_v37 = vrot.slane %v3271_v9, 6 }
 0x304   :  { %v2744_v36 = vpop.permute.xlu0 %2743  ;;  %v2824_v14 = vpop.permute.xlu2 %2823  ;;  %v2717_v2 = vadd.f32 %v2709_v6, %v2686_v59  ;;  %v3283_v30 = vrot.slane %v3269_v39, 6  ;;  %v3310_v5 = vmul.f32 %v3304_v4, %v4312_v23  ;;  %v3322_v49 = vrot.slane %v3308_v41, 6 }
 0x305   :  { %v2755_v26 = vadd.f32 %v2744_v36, %v2714_v25  ;;  %v6231_v1 = vadd.f32 %v2785_v21, %v2756_v46  ;;  %v3180_v21 = vrot.slane %v3165_v12, 5  ;;  %v3317_v40 = vrot.slane %v3305_v19, 6 }
 0x306   :  { %v3287_v38 = vsel %vm3213_vm7, %v3284_v62, %v3286_v37  ;;  %v3285_v35 = vsel %vm3213_vm7, %v3283_v30, %v3284_v62  ;;  %v3307_v36 = vmul.f32 %v3304_v4, %v4318_v29  ;;  %v3345_v57 = vstv %s3936_s0 }
 0x307   :  { %v3181_v63 = vsel %vm2668_vm6, %v3178_v45, %v3180_v21  ;;  %v3309_v45 = vmul.f32 %v3304_v4, %v4145_v16  ;;  %v3319_v25 = vsel %vm3213_vm7, %v3317_v40, %v3318_v13  ;;  %v3349_v6 = vmul.f32 %v3345_v57, %v4103_v33 }
 0x308   :  { %3186 = vrot.lane.b32.xlu1 %v3179_v31, %s4019_s9  ;;  %v3320_v31 = vrot.slane %v3307_v36, 6  ;;  %v3350_v48 = vmul.f32 %v3345_v57, %v4123_v51  ;;  %v3348_v56 = vmul.f32 %v3345_v57, %v4257_v28  ;;  %v3384_v21 = vstv %s3937_s25 }
 0x309   :  { %v3323_v24 = vrot.slane %v3309_v45, 6  ;;  %v3386_v60 = vmul.f32 %v3384_v21, %v4151_v18  ;;  %v3387_v9 = vmul.f32 %v3384_v21, %v4318_v29  ;;  %v3351_v62 = vmul.f32 %v3345_v57, %v4296_v0 }
 0x30a   :  { %3184 = vrot.lane.b32.xlu0 %v3176_v50, %s4019_s9  ;;  %v2783_v55 = vpop.permute.xlu1 %2782  ;;  %3182 = vrot.lane.b32.xlu2 %v3174_v34, %s4019_s9  ;;  %v3321_v4 = vsel %vm3213_vm7, %v3318_v13, %v3320_v31  ;;  %v3385_v13 = vmul.f32 %v3384_v21, %v4141_v10 }
 0x30b   :  { %v2794_v27 = vadd.f32 %v2783_v55, %v2755_v26  ;;  %v3324_v11 = vsel %vm3213_vm7, %v3322_v49, %v3323_v24  ;;  %v3347_v55 = vmul.f32 %v3345_v57, %v4130_v58  ;;  %v3398_v37 = vrot.slane %v3386_v60, 6 }
 0x30c   :  { %v2750_v54 = vpop.permute.xlu0 %2749  ;;  %v2830_v20 = vpop.permute.xlu2 %2829  ;;  %v3400_v30 = vrot.slane %v3387_v9, 6  ;;  %v3390_v49 = vmul.f32 %v3384_v21, %v4312_v23 }
 0x30d   :  { %v2758_v8 = vadd.f32 %v2750_v54, %v2717_v2  ;;  %v6245_v32 = vadd.f32 %v2824_v14, %v2794_v27  ;;  %v3325_v14 = vrot.slane %v3310_v5, 6  ;;  %v3346_v27 = vmul.f32 %v3345_v57, %v4115_v43 }
 0x30e   :  { %v3363_v2 = vrot.slane %v3349_v6, 6  ;;  %v3366_v5 = vrot.slane %v3351_v62, 6 }
 0x30f   :  { %v3326_v59 = vsel %vm3213_vm7, %v3323_v24, %v3325_v14  ;;  %v3358_v19 = vrot.slane %v3346_v27, 6 }
 0x310   :  { %3290 = vrot.lane.b32.xlu1 %v3282_v44, %s4014_s18 }
 0x312   :  { %3288 = vrot.lane.b32.xlu0 %v3280_v52, %s4014_s18  ;;  %v2789_v22 = vpop.permute.xlu1 %2788  ;;  %3188 = vrot.lane.b32.xlu2 %v3181_v63, %s4019_s9 }
 0x313   :  { %v2797_v47 = vadd.f32 %v2789_v22, %v2758_v8  ;;  %v3361_v8 = vrot.slane %v3348_v56, 6 }
 0x314   :  { %v2787_v42 = vpop.permute.xlu0 %2786  ;;  %v2867_v53 = vpop.permute.xlu2 %2866 }
 0x315   :  { %v2796_v3 = vadd.f32 %v2787_v42, %v6222_v7  ;;  %v6260_v46 = vadd.f32 %v2830_v20, %v2797_v47  ;;  %v3359_v20 = vrot.slane %v3347_v55, 6 }
 0x317   :  { %v3362_v22 = vsel %vm3213_vm7, %v3359_v20, %v3361_v8  ;;  %v3360_v47 = vsel %vm3213_vm7, %v3358_v19, %v3359_v20 }
 0x318   :  { %3327 = vrot.lane.b32.xlu1 %v3319_v25, %s4014_s18  ;;  %v3401_v25 = vsel %vm3213_vm7, %v3398_v37, %v3400_v30 }
 0x31a   :  { %3294 = vrot.lane.b32.xlu0 %v3287_v38, %s4014_s18  ;;  %v2828_v7 = vpop.permute.xlu1 %2827  ;;  %3292 = vrot.lane.b32.xlu2 %v3285_v35, %s4014_s18 }
 0x31b   :  { %v2837_v26 = vadd.f32 %v2828_v7, %v2796_v3  ;;  %v3389_v7 = vmul.f32 %v3384_v21, %v4145_v16 }
 0x31c   :  { %v2826_v15 = vpop.permute.xlu0 %2825  ;;  %v2906_v50 = vpop.permute.xlu2 %2905 }
 0x31d   :  { %v2836_v34 = vadd.f32 %v2826_v15, %v6231_v1  ;;  %v6272_v12 = vadd.f32 %v2867_v53, %v2837_v26  ;;  %v3364_v1 = vrot.slane %v3350_v48, 6  ;;  %v3425_v53 = vstv %s3938_s27 }
 0x31e   :  { %v3426_v36 = vmul.f32 %v3425_v53, %v4115_v43  ;;  %v3427_v24 = vmul.f32 %v3425_v53, %v4130_v58  ;;  %v3388_v26 = vmul.f32 %v3384_v21, %v4149_v17  ;;  %v3430_v55 = vmul.f32 %v3425_v53, %v4123_v51 }
 0x31f   :  { %v3365_v40 = vsel %vm3213_vm7, %v3363_v2, %v3364_v1  ;;  %v3367_v57 = vsel %vm3213_vm7, %v3364_v1, %v3366_v5  ;;  %v3431_v56 = vmul.f32 %v3425_v53, %v4296_v0  ;;  %v3429_v1 = vmul.f32 %v3425_v53, %v4103_v33 }
 0x320   :  { %3333 = vrot.lane.b32.xlu1 %v3326_v59, %s4014_s18  ;;  %v3438_v31 = vrot.slane %v3426_v36, 6  ;;  %v3402_v6 = vrot.slane %v3388_v26, 6  ;;  %v3444_v20 = vrot.slane %v3430_v55, 6  ;;  %v3505_v5 = vstv %s3940_s28 }
 0x321   :  { %v3446_v8 = vrot.slane %v3431_v56, 6  ;;  %v3443_v19 = vrot.slane %v3429_v1, 6 }
 0x322   :  { %3331 = vrot.lane.b32.xlu0 %v3324_v11, %s4014_s18  ;;  %v2865_v54 = vpop.permute.xlu1 %2864  ;;  %3329 = vrot.lane.b32.xlu2 %v3321_v4, %s4014_s18  ;;  %s3939_s18 = sld [smem:[#allocation2 + $0x5e]] }
 0x323   :  { %v2875_v44 = vadd.f32 %v2865_v54, %v2836_v34  ;;  %v3405_v34 = vrot.slane %v3390_v49, 6  ;;  %v3508_v49 = vmul.f32 %v3505_v5, %v4257_v28 }
 0x324   :  { %v2863_v61 = vpop.permute.xlu0 %2862  ;;  %v2943_v52 = vpop.permute.xlu2 %2942 }
 0x325   :  { %v2874_v63 = vadd.f32 %v2863_v61, %v6245_v32  ;;  %v6287_v39 = vadd.f32 %v2906_v50, %v2875_v44  ;;  %v3397_v32 = vrot.slane %v3385_v13, 6  ;;  %v3403_v50 = vrot.slane %v3389_v7, 6 }
 0x326   :  { %v3428_v44 = vmul.f32 %v3425_v53, %v4257_v28  ;;  %v3507_v7 = vmul.f32 %v3505_v5, %v4130_v58 }
 0x327   :  { %v3399_v14 = vsel %vm3213_vm7, %v3397_v32, %v3398_v37  ;;  %v3406_v21 = vsel %vm3213_vm7, %v3403_v50, %v3405_v34  ;;  %v3404_v54 = vsel %vm3213_vm7, %v3402_v6, %v3403_v50  ;;  %v3445_v37 = vsel %vm3213_vm7, %v3443_v19, %v3444_v20 }
 0x328   :  { %3372 = vrot.lane.b32.xlu1 %v3365_v40, %s4015_s20  ;;  %v3464_v61 = vstv %s3939_s18  ;;  %v3441_v60 = vrot.slane %v3428_v44, 6  ;;  %v3519_v34 = vrot.slane %v3507_v7, 6  ;;  %v3521_v6 = vrot.slane %v3508_v49, 6 }
 0x329   :  { %v3469_v62 = vmul.f32 %v3464_v61, %v4145_v16  ;;  %v3466_v30 = vmul.f32 %v3464_v61, %v4151_v18  ;;  %v3465_v53 = vmul.f32 %v3464_v61, %v4141_v10  ;;  %v3470_v50 = vmul.f32 %v3464_v61, %v4312_v23 }
 0x32a   :  { %3370 = vrot.lane.b32.xlu0 %v3362_v22, %s4015_s20  ;;  %v2904_v42 = vpop.permute.xlu1 %2903  ;;  %3368 = vrot.lane.b32.xlu2 %v3360_v47, %s4015_s20  ;;  %v3468_v47 = vmul.f32 %v3464_v61, %v4149_v17  ;;  %v3511_v19 = vmul.f32 %v3505_v5, %v4296_v0 }
 0x32b   :  { %v2915_v45 = vadd.f32 %v2904_v42, %v2874_v63  ;;  %v3447_v63 = vsel %vm3213_vm7, %v3444_v20, %v3446_v8  ;;  %v3467_v42 = vmul.f32 %v3464_v61, %v4318_v29  ;;  %v3477_v36 = vrot.slane %v3465_v53, 6 }
 0x32c   :  { %v2869_v3 = vpop.permute.xlu0 %2868  ;;  %v2949_v41 = vpop.permute.xlu2 %2948  ;;  %v3485_v56 = vrot.slane %v3470_v50, 6 }
 0x32d   :  { %v2877_v38 = vadd.f32 %v2869_v3, %v6260_v46  ;;  %v6299_v35 = vadd.f32 %v2943_v52, %v2915_v45  ;;  %v3439_v46 = vrot.slane %v3427_v24, 6  ;;  %v3482_v45 = vrot.slane %v3468_v47, 6 }
 0x32f   :  { %v3440_v2 = vsel %vm3213_vm7, %v3438_v31, %v3439_v46  ;;  %v3442_v32 = vsel %vm3213_vm7, %v3439_v46, %v3441_v60  ;;  %v3506_v46 = vmul.f32 %v3505_v5, %v4115_v43 }
 0x330   :  { %3409 = vrot.lane.b32.xlu1 %v3401_v25, %s4015_s20 }
 0x332   :  { %3407 = vrot.lane.b32.xlu0 %v3399_v14, %s4015_s20  ;;  %v2910_v15 = vpop.permute.xlu1 %2909  ;;  %3374 = vrot.lane.b32.xlu2 %v3367_v57, %s4015_s20 }
 0x333   :  { %v2918_v59 = vadd.f32 %v2910_v15, %v2877_v38  ;;  %v3480_v38 = vrot.slane %v3467_v42, 6 }
 0x334   :  { %v2908_v48 = vpop.permute.xlu0 %2907  ;;  %v2988_v11 = vpop.permute.xlu2 %2987 }
 0x335   :  { %v2917_v4 = vadd.f32 %v2908_v48, %v6272_v12  ;;  %v6314_v27 = vadd.f32 %v2949_v41, %v2918_v59  ;;  %v3478_v41 = vrot.slane %v3466_v30, 6 }
 0x337   :  { %v3481_v15 = vsel %vm3213_vm7, %v3478_v41, %v3480_v38  ;;  %v3479_v59 = vsel %vm3213_vm7, %v3477_v36, %v3478_v41 }
 0x338   :  { %3448 = vrot.lane.b32.xlu1 %v3440_v2, %s4016_s22  ;;  %v3522_v2 = vsel %vm3213_vm7, %v3519_v34, %v3521_v6 }
 0x33a   :  { %3413 = vrot.lane.b32.xlu0 %v3406_v21, %s4015_s20  ;;  %v2947_v12 = vpop.permute.xlu1 %2946  ;;  %3411 = vrot.lane.b32.xlu2 %v3404_v54, %s4015_s20  ;;  %s3941_s20 = sld [smem:[#allocation2 + $0x5f]] }
 0x33b   :  { %v2956_v52 = vadd.f32 %v2947_v12, %v2917_v4  ;;  %v3510_v12 = vmul.f32 %v3505_v5, %v4123_v51 }
 0x33c   :  { %v2945_v9 = vpop.permute.xlu0 %2944  ;;  %v3025_v40 = vpop.permute.xlu2 %3024 }
 0x33d   :  { %v2955_v13 = vadd.f32 %v2945_v9, %v6287_v39  ;;  %v6326_v22 = vadd.f32 %v2988_v11, %v2956_v52  ;;  %v3483_v39 = vrot.slane %v3469_v62, 6  ;;  %v3509_v52 = vmul.f32 %v3505_v5, %v4103_v33 }
 0x33f   :  { %v3484_v31 = vsel %vm3213_vm7, %v3482_v45, %v3483_v39  ;;  %v3486_v61 = vsel %vm3213_vm7, %v3483_v39, %v3485_v56  ;;  %v3523_v47 = vrot.slane %v3509_v52, 6 }
 0x340   :  { %3454 = vrot.lane.b32.xlu1 %v3447_v63, %s4016_s22  ;;  %v3544_v11 = vstv %s3941_s20 }
 0x341   :  { %v3545_v44 = vmul.f32 %v3544_v11, %v4141_v10  ;;  %v3546_v20 = vmul.f32 %v3544_v11, %v4151_v18  ;;  %v3549_v30 = vmul.f32 %v3544_v11, %v4145_v16  ;;  %v3550_v42 = vmul.f32 %v3544_v11, %v4312_v23 }
 0x342   :  { %3452 = vrot.lane.b32.xlu0 %v3445_v37, %s4016_s22  ;;  %v2986_v3 = vpop.permute.xlu1 %2985  ;;  %3450 = vrot.lane.b32.xlu2 %v3442_v32, %s4016_s22  ;;  %v3548_v39 = vmul.f32 %v3544_v11, %v4149_v17 }
 0x343   :  { %v2996_v25 = vadd.f32 %v2986_v3, %v2955_v13  ;;  %v3557_v60 = vrot.slane %v3545_v44, 6  ;;  %v3526_v13 = vrot.slane %v3511_v19, 6  ;;  %v3563_v41 = vrot.slane %v3549_v30, 6 }
 0x344   :  { %v2984_v24 = vpop.permute.xlu0 %2983  ;;  %v3064_v14 = vpop.permute.xlu2 %3063  ;;  %v3565_v38 = vrot.slane %v3550_v42, 6  ;;  %v3562_v36 = vrot.slane %v3548_v39, 6 }
 0x345   :  { %v2995_v57 = vadd.f32 %v2984_v24, %v6299_v35  ;;  %v6341_v26 = vadd.f32 %v3025_v40, %v2996_v25  ;;  %v3518_v35 = vrot.slane %v3506_v46, 6  ;;  %v3524_v40 = vrot.slane %v3510_v12, 6 }
 0x346   :  { %v3547_v25 = vmul.f32 %v3544_v11, %v4318_v29  ;;  %v3585_v24 = vstv %s3942_s30 }
 0x347   :  { %v3520_v8 = vsel %vm3213_vm7, %v3518_v35, %v3519_v34  ;;  %v3527_v5 = vsel %vm3213_vm7, %v3524_v40, %v3526_v13  ;;  %v3525_v3 = vsel %vm3213_vm7, %v3523_v47, %v3524_v40  ;;  %v3590_v50 = vmul.f32 %v3585_v24, %v4123_v51 }
 0x348   :  { %3491 = vrot.lane.b32.xlu1 %v3484_v31, %s4016_s22  ;;  %v3560_v7 = vrot.slane %v3547_v25, 6  ;;  %v3564_v34 = vsel %vm3213_vm7, %v3562_v36, %v3563_v41  ;;  %v3587_v6 = vmul.f32 %v3585_v24, %v4130_v58  ;;  %v3586_v11 = vmul.f32 %v3585_v24, %v4115_v43 }
 0x349   :  { %v3591_v40 = vmul.f32 %v3585_v24, %v4296_v0 }
 0x34a   :  { %3489 = vrot.lane.b32.xlu0 %v3481_v15, %s4016_s22  ;;  %v3023_v48 = vpop.permute.xlu1 %3022  ;;  %3487 = vrot.lane.b32.xlu2 %v3479_v59, %s4016_s22  ;;  %v3589_v59 = vmul.f32 %v3585_v24, %v4103_v33  ;;  %v3598_v44 = vrot.slane %v3586_v11, 6 }
 0x34b   :  { %v3034_v55 = vadd.f32 %v3023_v48, %v2995_v57  ;;  %v3566_v57 = vsel %vm3213_vm7, %v3563_v41, %v3565_v38  ;;  %v3588_v48 = vmul.f32 %v3585_v24, %v4257_v28 }
 0x34c   :  { %v2990_v4 = vpop.permute.xlu0 %2989  ;;  %v3070_v1 = vpop.permute.xlu2 %3069 }
 0x34d   :  { %v2998_v21 = vadd.f32 %v2990_v4, %v6314_v27  ;;  %v6353_v54 = vadd.f32 %v3064_v14, %v3034_v55  ;;  %v3558_v27 = vrot.slane %v3546_v20, 6  ;;  %v3603_v55 = vrot.slane %v3589_v59, 6 }
 0x34f   :  { %v3559_v45 = vsel %vm3213_vm7, %v3557_v60, %v3558_v27  ;;  %v3561_v35 = vsel %vm3213_vm7, %v3558_v27, %v3560_v7 }
 0x350   :  { %3530 = vrot.lane.b32.xlu1 %v3522_v2, %s4017_s26 }
 0x352   :  { %3528 = vrot.lane.b32.xlu0 %v3520_v8, %s4017_s26  ;;  %v3029_v9 = vpop.permute.xlu1 %3028  ;;  %3493 = vrot.lane.b32.xlu2 %v3486_v61, %s4016_s22  ;;  %s3943_s22 = sld [smem:[#allocation2 + $0x60]] }
 0x353   :  { %v3037_v63 = vadd.f32 %v3029_v9, %v2998_v21  ;;  %v3601_v21 = vrot.slane %v3588_v48, 6 }
 0x354   :  { %v3027_v62 = vpop.permute.xlu0 %3026  ;;  %v3107_v37 = vpop.permute.xlu2 %3106 }
 0x355   :  { %v3036_v32 = vadd.f32 %v3027_v62, %v6326_v22  ;;  %v6368_v53 = vadd.f32 %v3070_v1, %v3037_v63  ;;  %v3599_v1 = vrot.slane %v3587_v6, 6  ;;  %v6403_v62 = vstv %s3932_s3 }
 0x356   :  { %v6409_v39 = vmul.f32 %v6403_v62, %v4115_v43  ;;  %v3204_v6 = vmul.f32 %v6403_v62, %v4103_v33 }
 0x357   :  { %v3602_v27 = vsel %vm3213_vm7, %v3599_v1, %v3601_v21  ;;  %v3600_v63 = vsel %vm3213_vm7, %v3598_v44, %v3599_v1 }
 0x358   :  { %3567 = vrot.lane.b32.xlu1 %v3559_v45, %s4017_s26  ;;  %v3624_v56 = vstv %s3943_s22 }
 0x359   :  { %v3626_v12 = vmul.f32 %v3624_v56, %v4151_v18  ;;  %v3627_v19 = vmul.f32 %v3624_v56, %v4318_v29  ;;  %v3625_v9 = vmul.f32 %v3624_v56, %v4141_v10  ;;  %v3629_v24 = vmul.f32 %v3624_v56, %v4145_v16 }
 0x35a   :  { %3534 = vrot.lane.b32.xlu0 %v3527_v5, %s4017_s26  ;;  %v3068_v22 = vpop.permute.xlu1 %3067  ;;  %3532 = vrot.lane.b32.xlu2 %v3525_v3, %s4017_s26  ;;  %v6413_v5 = vmul.f32 %v6403_v62, %v4130_v58 }
 0x35b   :  { %v3077_v14 = vadd.f32 %v3068_v22, %v3036_v32  ;;  %v3638_v13 = vrot.slane %v3626_v12, 6  ;;  %v3640_v47 = vrot.slane %v3627_v19, 6  ;;  %v3637_v42 = vrot.slane %v3625_v9, 6 }
 0x35c   :  { %v3066_v49 = vpop.permute.xlu0 %3065  ;;  %v3146_v31 = vpop.permute.xlu2 %3145  ;;  %v3606_v32 = vrot.slane %v3591_v40, 6 }
 0x35d   :  { %v3076_v46 = vadd.f32 %v3066_v49, %v6341_v26  ;;  %v6380_v15 = vadd.f32 %v3107_v37, %v3077_v14  ;;  %v3604_v26 = vrot.slane %v3590_v50, 6  ;;  %v3665_v37 = vstv %s3944_s4 }
 0x35e   :  { %v3641_v3 = vsel %vm3213_vm7, %v3638_v13, %v3640_v47  ;;  %v3666_v22 = vmul.f32 %v3665_v37, %v4115_v43  ;;  %v6421_v36 = vmul.f32 %v3665_v37, %v4130_v58  ;;  %v6424_v14 = vstv %s3933_s5 }
 0x35f   :  { %v3605_v60 = vsel %vm3213_vm7, %v3603_v55, %v3604_v26  ;;  %v3639_v7 = vsel %vm3213_vm7, %v3637_v42, %v3638_v13  ;;  %v3630_v49 = vmul.f32 %v3624_v56, %v4312_v23  ;;  %v3215_v43 = vrot.slane %v6413_v5, 6 }
 0x360   :  { %3573 = vrot.lane.b32.xlu1 %v3566_v57, %s4017_s26  ;;  %v3607_v57 = vsel %vm3213_vm7, %v3604_v26, %v3606_v32  ;;  %v3678_v58 = vrot.slane %v3666_v22, 6  ;;  %v6437_v50 = vmul.f32 %v6403_v62, %v4123_v51  ;;  %v6444_v48 = vmul.f32 %v6424_v14, %v4151_v18 }
 0x361   :  { %v3645_v11 = vrot.slane %v3630_v49, 6  ;;  %v3203_v55 = vmul.f32 %v6403_v62, %v4257_v28  ;;  %v3670_v1 = vmul.f32 %v3665_v37, %v4123_v51  ;;  %v3671_v21 = vmul.f32 %v3665_v37, %v4296_v0 }
 0x362   :  { %3571 = vrot.lane.b32.xlu0 %v3564_v34, %s4017_s26  ;;  %v3105_v4 = vpop.permute.xlu1 %3104  ;;  %3569 = vrot.lane.b32.xlu2 %v3561_v35, %s4017_s26  ;;  %v3643_v34 = vrot.slane %v3629_v24, 6  ;;  %s6446_s26 = sld [smem:[#allocation2 + $0x61]]  ;;  %v3235_v44 = vmul.f32 %v6424_v14, %v4318_v29  ;;  %v6464_v19 = vmul.f32 %v6424_v14, %v4145_v16  ;;  %v3669_v51 = vmul.f32 %v3665_v37, %v4103_v33 }
 0x363   :  { %v3115_v2 = vadd.f32 %v3105_v4, %v3076_v46  ;;  %v3679_v46 = vrot.slane %v6421_v36, 6  ;;  %v3236_v4 = vmul.f32 %v6424_v14, %v4149_v17  ;;  %v3684_v47 = vrot.slane %v3670_v1, 6 }
 0x364   :  { %v3103_v20 = vpop.permute.xlu0 %3102  ;;  %v3183_v8 = vpop.permute.xlu2 %3182  ;;  %v3646_v9 = vsel %vm3213_vm7, %v3643_v34, %v3645_v11  ;;  %v3251_v33 = vrot.slane %v6464_v19, 6  ;;  %v3246_v42 = vrot.slane %v6444_v48, 6  ;;  %v3683_v32 = vrot.slane %v3669_v51, 6 }
 0x365   :  { %v3114_v61 = vadd.f32 %v3103_v20, %v6353_v54  ;;  %v6395_v52 = vadd.f32 %v3146_v31, %v3115_v2  ;;  %v3628_v31 = vmul.f32 %v3624_v56, %v4149_v17  ;;  %v3680_v12 = vsel %vm3213_vm7, %v3678_v58, %v3679_v46 }
 0x366   :  { %v3250_v13 = vrot.slane %v3236_v4, 6 }
 0x367   :  { %v3642_v26 = vrot.slane %v3628_v31, 6 }
 0x368   :  { %3612 = vrot.lane.b32.xlu1 %v3605_v60, %s4018_s29  ;;  %v3233_v60 = vmul.f32 %v6424_v14, %v4141_v10 }
 0x369   :  { %v3644_v40 = vsel %vm3213_vm7, %v3642_v26, %v3643_v34 }
 0x36a   :  { %3610 = vrot.lane.b32.xlu0 %v3602_v27, %s4018_s29  ;;  %v3144_v54 = vpop.permute.xlu1 %3143  ;;  %3608 = vrot.lane.b32.xlu2 %v3600_v63, %s4018_s29  ;;  %v3668_v27 = vmul.f32 %v3665_v37, %v4257_v28  ;;  %v3217_v63 = vrot.slane %v3203_v55, 6 }
 0x36b   :  { %v3155_v30 = vadd.f32 %v3144_v54, %v3114_v61  ;;  %v3219_v61 = vrot.slane %v3204_v6, 6  ;;  %v3686_v54 = vrot.slane %v3671_v21, 6 }
 0x36c   :  { %v3109_v45 = vpop.permute.xlu0 %3108  ;;  %v3189_v25 = vpop.permute.xlu2 %3188  ;;  %v3218_v22 = vsel %vm3213_vm7, %v3215_v43, %v3217_v63 }
 0x36d   :  { %v3117_v41 = vadd.f32 %v3109_v45, %v6368_v53  ;;  %v6417_v38 = vadd.f32 %v3183_v8, %v3155_v30  ;;  %v3214_v53 = vrot.slane %v6409_v39, 6  ;;  %v3248_v30 = vrot.slane %v3235_v44, 6 }
 0x36e   :  { %v3704_v45 = vstv %s6446_s26  ;;  %v3681_v39 = vrot.slane %v3668_v27, 6  ;;  %v3687_v49 = vsel %vm3213_vm7, %v3684_v47, %v3686_v54 }
 0x36f   :  { %v3216_v5 = vsel %vm3213_vm7, %v3214_v53, %v3215_v43  ;;  %v3708_v53 = vmul.f32 %v3704_v45, %v4149_v17  ;;  %v3707_v43 = vmul.f32 %v3704_v45, %v4318_v29  ;;  %v3238_v17 = vmul.f32 %v6424_v14, %v4312_v23 }
 0x370   :  { %3649 = vrot.lane.b32.xlu1 %v3641_v3, %s4018_s29  ;;  %v3206_v3 = vmul.f32 %v6403_v62, %v4296_v0  ;;  %v3685_v0 = vsel %vm3213_vm7, %v3683_v32, %v3684_v47  ;;  %v3706_v62 = vmul.f32 %v3704_v45, %v4151_v18  ;;  %v3682_v34 = vsel %vm3213_vm7, %v3679_v46, %v3681_v39 }
 0x371   :  { %v3228_v6 = vadd.f32 %v3216_v5, %v6417_v38  ;;  %v3722_v55 = vrot.slane %v3708_v53, 6  ;;  %v3253_v44 = vrot.slane %v3238_v17, 6 }
 0x372   :  { %3647 = vrot.lane.b32.xlu0 %v3639_v7, %s4018_s29  ;;  %v3150_v59 = vpop.permute.xlu1 %3149  ;;  %3614 = vrot.lane.b32.xlu2 %v3607_v57, %s4018_s29  ;;  %v3252_v7 = vsel %vm3213_vm7, %v3250_v13, %v3251_v33  ;;  %v3249_v57 = vsel %vm3213_vm7, %v3246_v42, %v3248_v30  ;;  %v3222_v11 = vrot.slane %v3206_v3, 6  ;;  %v3718_v38 = vrot.slane %v3706_v62, 6 }
 0x373   :  { %v3158_v35 = vadd.f32 %v3150_v59, %v3117_v41  ;;  %v3245_v41 = vrot.slane %v3233_v60, 6  ;;  %v3710_v60 = vmul.f32 %v3704_v45, %v4312_v23  ;;  %v3254_v27 = vsel %vm3213_vm7, %v3251_v33, %v3253_v44 }
 0x374   :  { %v3148_v56 = vpop.permute.xlu0 %3147  ;;  %v3293_v2 = vpop.permute.xlu2 %3292 }
 0x375   :  { %v3157_v20 = vadd.f32 %v3148_v56, %v6380_v15  ;;  %v6457_v8 = vadd.f32 %v3189_v25, %v3158_v35  ;;  %v3220_v15 = vrot.slane %v6437_v50, 6  ;;  %v3709_v50 = vmul.f32 %v3704_v45, %v4145_v16 }
 0x376   :  { %v3247_v16 = vsel %vm3213_vm7, %v3245_v41, %v3246_v42  ;;  %v3720_v56 = vrot.slane %v3707_v43, 6 }
 0x377   :  { %v3221_v28 = vsel %vm3213_vm7, %v3219_v61, %v3220_v15  ;;  %v3723_v36 = vrot.slane %v3709_v50, 6  ;;  %v3223_v1 = vsel %vm3213_vm7, %v3220_v15, %v3222_v11 }
 0x378   :  { %3688 = vrot.lane.b32.xlu1 %v3680_v12, %s4019_s9  ;;  %v3231_v19 = vadd.f32 %v3223_v1, %v6457_v8  ;;  %v3721_v61 = vsel %vm3213_vm7, %v3718_v38, %v3720_v56 }
 0x379   :  { %v3724_v12 = vsel %vm3213_vm7, %v3722_v55, %v3723_v36 }
 0x37a   :  { %3653 = vrot.lane.b32.xlu0 %v3646_v9, %s4018_s29  ;;  %v3187_v37 = vpop.permute.xlu1 %3186  ;;  %3651 = vrot.lane.b32.xlu2 %v3644_v40, %s4018_s29  ;;  %v3262_v63 = vadd.f32 %v3254_v27, %v3231_v19  ;;  %v3725_v40 = vrot.slane %v3710_v60, 6  ;;  %s3946_s29 = sld [smem:[#allocation2 + $0x62]] }
 0x37b   :  { %v3196_v25 = vadd.f32 %v3187_v37, %v3157_v20 }
 0x37c   :  { %v3185_v24 = vpop.permute.xlu0 %3184  ;;  %v3330_v31 = vpop.permute.xlu2 %3329  ;;  %v3726_v30 = vsel %vm3213_vm7, %v3723_v36, %v3725_v40 }
 0x37d   :  { %v3230_v58 = vadd.f32 %v3221_v28, %v3196_v25  ;;  %v3195_v59 = vadd.f32 %v3185_v24, %v6395_v52  ;;  %v3705_v52 = vmul.f32 %v3704_v45, %v4141_v10  ;;  %v3259_v10 = vadd.f32 %v3247_v16, %v3228_v6 }
 0x37f   :  { %v3229_v48 = vadd.f32 %v3218_v22, %v3195_v59  ;;  %v3261_v35 = vadd.f32 %v3252_v7, %v3230_v58  ;;  %v3717_v4 = vrot.slane %v3705_v52, 6 }
 0x380   :  { %3694 = vrot.lane.b32.xlu1 %v3687_v49, %s4019_s9  ;;  %v3744_v40 = vstv %s3946_s29 }
 0x381   :  { %v3302_v18 = vadd.f32 %v3293_v2, %v3261_v35  ;;  %v3260_v29 = vadd.f32 %v3249_v57, %v3229_v48  ;;  %v3719_v51 = vsel %vm3213_vm7, %v3717_v4, %v3718_v38 }
 0x382   :  { %3692 = vrot.lane.b32.xlu0 %v3685_v0, %s4019_s9  ;;  %v3291_v46 = vpop.permute.xlu1 %3290  ;;  %3690 = vrot.lane.b32.xlu2 %v3682_v34, %s4019_s9 }
 0x383   :  { %v3301_v26 = vadd.f32 %v3291_v46, %v3260_v29 }
 0x384   :  { %v3289_v21 = vpop.permute.xlu0 %3288  ;;  %v3369_v20 = vpop.permute.xlu2 %3368 }
 0x385   :  { %v3300_v14 = vadd.f32 %v3289_v21, %v3259_v10  ;;  %v3340_v2 = vadd.f32 %v3330_v31, %v3301_v26 }
 0x388   :  { %3731 = vrot.lane.b32.xlu1 %v3724_v12, %s4019_s9 }
 0x38a   :  { %3729 = vrot.lane.b32.xlu0 %v3721_v61, %s4019_s9  ;;  %v3328_v15 = vpop.permute.xlu1 %3327  ;;  %3727 = vrot.lane.b32.xlu2 %v3719_v51, %s4019_s9 }
 0x38b   :  { %v3339_v9 = vadd.f32 %v3328_v15, %v3300_v14 }
 0x38c   :  { %v3295_v13 = vpop.permute.xlu0 %3294  ;;  %v3375_v8 = vpop.permute.xlu2 %3374 }
 0x38d   :  { %v3303_v47 = vadd.f32 %v3295_v13, %v3262_v63  ;;  %v3380_v54 = vadd.f32 %v3369_v20, %v3339_v9 }
 0x392   :  { %v3334_v42 = vpop.permute.xlu1 %3333  ;;  %3733 = vrot.lane.b32.xlu2 %v3726_v30, %s4019_s9  ;;  %s4020_s9 = smov [#allocation5]  }
 0x393   :  { %v3342_v23 = vadd.f32 %v3334_v42, %v3303_v47  ;;  %s3834_s6 = sshll.u32 %s4020_s9, 4  ;;  %s3835_s6 = int_to_ptr.vmem [resolvable:$true] %s3834_s6 }
 0x394   :  { %v3332_v28 = vpop.permute.xlu0 %3331  ;;  %v3412_v33 = vpop.permute.xlu2 %3411 }
 0x395   :  { %v3341_v37 = vadd.f32 %v3332_v28, %v3302_v18  ;;  %v3383_v32 = vadd.f32 %v3375_v8, %v3342_v23 }
 0x39a   :  { %v3373_v45 = vpop.permute.xlu1 %3372 }
 0x39b   :  { %v3382_v39 = vadd.f32 %v3373_v45, %v3341_v37 }
 0x39c   :  { %v3371_v5 = vpop.permute.xlu0 %3370  ;;  %v3451_v3 = vpop.permute.xlu2 %3450 }
 0x39d   :  { %v3381_v25 = vadd.f32 %v3371_v5, %v3340_v2  ;;  %v3421_v41 = vadd.f32 %v3412_v33, %v3382_v39 }
 0x3a2   :  { %v3410_v22 = vpop.permute.xlu1 %3409 }
 0x3a3   :  { %v3420_v24 = vadd.f32 %v3410_v22, %v3381_v25 }
 0x3a4   :  { %v3408_v7 = vpop.permute.xlu0 %3407  ;;  %v3488_v49 = vpop.permute.xlu2 %3487 }
 0x3a5   :  { %v3461_v57 = vadd.f32 %v3451_v3, %v3420_v24  ;;  %v3419_v55 = vadd.f32 %v3408_v7, %v3380_v54 }
 0x3aa   :  { %v3449_v31 = vpop.permute.xlu1 %3448 }
 0x3ab   :  { %v3460_v46 = vadd.f32 %v3449_v31, %v3419_v55 }
 0x3ac   :  { %v3414_v58 = vpop.permute.xlu0 %3413  ;;  %v3494_v59 = vpop.permute.xlu2 %3493 }
 0x3ad   :  { %v3499_v10 = vadd.f32 %v3488_v49, %v3460_v46  ;;  %v3422_v56 = vadd.f32 %v3414_v58, %v3383_v32 }
 0x3b2   :  { %v3455_v53 = vpop.permute.xlu1 %3454 }
 0x3b3   :  { %v3463_v21 = vadd.f32 %v3455_v53, %v3422_v56 }
 0x3b4   :  { %v3453_v50 = vpop.permute.xlu0 %3452  ;;  %v3533_v0 = vpop.permute.xlu2 %3532 }
 0x3b5   :  { %v3502_v14 = vadd.f32 %v3494_v59, %v3463_v21  ;;  %v3462_v19 = vadd.f32 %v3453_v50, %v3421_v41 }
 0x3ba   :  { %v3492_v62 = vpop.permute.xlu1 %3491 }
 0x3bb   :  { %v3501_v27 = vadd.f32 %v3492_v62, %v3462_v19 }
 0x3bc   :  { %v3490_v43 = vpop.permute.xlu0 %3489  ;;  %v3570_v34 = vpop.permute.xlu2 %3569 }
 0x3bd   :  { %v3500_v13 = vadd.f32 %v3490_v43, %v3461_v57  ;;  %v3542_v47 = vadd.f32 %v3533_v0, %v3501_v27 }
 0x3c2   :  { %v3531_v6 = vpop.permute.xlu1 %3530 }
 0x3c3   :  { %v3541_v54 = vadd.f32 %v3531_v6, %v3500_v13 }
 0x3c4   :  { %v3529_v48 = vpop.permute.xlu0 %3528  ;;  %v3609_v35 = vpop.permute.xlu2 %3608 }
 0x3c5   :  { %v3540_v4 = vadd.f32 %v3529_v48, %v3499_v10  ;;  %v3580_v45 = vadd.f32 %v3570_v34, %v3541_v54 }
 0x3ca   :  { %v3568_v52 = vpop.permute.xlu1 %3567 }
 0x3cb   :  { %v3579_v44 = vadd.f32 %v3568_v52, %v3540_v4 }
 0x3cc   :  { %v3535_v11 = vpop.permute.xlu0 %3534  ;;  %v3615_v16 = vpop.permute.xlu2 %3614 }
 0x3cd   :  { %v3620_v2 = vadd.f32 %v3609_v35, %v3579_v44  ;;  %v3543_v61 = vadd.f32 %v3535_v11, %v3502_v14 }
 0x3d2   :  { %v3574_v17 = vpop.permute.xlu1 %3573 }
 0x3d3   :  { %v3582_v15 = vadd.f32 %v3574_v17, %v3543_v61 }
 0x3d4   :  { %v3572_v18 = vpop.permute.xlu0 %3571  ;;  %v3652_v29 = vpop.permute.xlu2 %3651 }
 0x3d5   :  { %v3623_v30 = vadd.f32 %v3615_v16, %v3582_v15  ;;  %v3581_v23 = vadd.f32 %v3572_v18, %v3542_v47 }
 0x3da   :  { %v3613_v36 = vpop.permute.xlu1 %3612 }
 0x3db   :  { %v3622_v39 = vadd.f32 %v3613_v36, %v3581_v23 }
 0x3dc   :  { %v3611_v38 = vpop.permute.xlu0 %3610  ;;  %v3691_v26 = vpop.permute.xlu2 %3690 }
 0x3dd   :  { %v3621_v41 = vadd.f32 %v3611_v38, %v3580_v45  ;;  %v3661_v24 = vadd.f32 %v3652_v29, %v3622_v39 }
 0x3e2   :  { %v3650_v1 = vpop.permute.xlu1 %3649 }
 0x3e3   :  { %v3660_v7 = vadd.f32 %v3650_v1, %v3621_v41 }
 0x3e4   :  { %v3648_v20 = vpop.permute.xlu0 %3647  ;;  %v3728_v12 = vpop.permute.xlu2 %3727 }
 0x3e5   :  { %v3659_v51 = vadd.f32 %v3648_v20, %v3620_v2  ;;  %v3701_v53 = vadd.f32 %v3691_v26, %v3660_v7 }
 0x3ea   :  { %v3689_v60 = vpop.permute.xlu1 %3688 }
 0x3eb   :  { %v3700_v9 = vadd.f32 %v3689_v60, %v3659_v51 }
 0x3ec   :  { %v3654_v63 = vpop.permute.xlu0 %3653  ;;  %v3734_v32 = vpop.permute.xlu2 %3733 }
 0x3ed   :  { %v3739_v8 = vadd.f32 %v3728_v12, %v3700_v9  ;;  %v3662_v28 = vadd.f32 %v3654_v63, %v3623_v30 }
 0x3ef   :  { %v3745_v42 = vadd.f32 %v3744_v40, %v3739_v8 }
 0x3f1   :  { %v3749_v33 = vsub.f32 0.0, %v3745_v42 }
 0x3f2   :  { %v3695_v37 = vpop.permute.xlu1 %3694 }
 0x3f3   :  { %v3753_v5 = vmul.f32 1.442695, %v3749_v33  ;;  %v3703_v3 = vadd.f32 %v3695_v37, %v3662_v28 }
 0x3f4   :  { %v3693_v25 = vpop.permute.xlu0 %3692 }
 0x3f5   :  { %3957 = vpow2.f32 %v3753_v5  ;;  %v3742_v22 = vadd.f32 %v3734_v32, %v3703_v3  ;;  %v3702_v57 = vadd.f32 %v3693_v25, %v3661_v24 }
 0x3f7   :  { %v3748_v49 = vadd.f32 %v3744_v40, %v3742_v22 }
 0x3f9   :  { %v3752_v31 = vsub.f32 0.0, %v3748_v49 }
 0x3fa   :  { %v3732_v58 = vpop.permute.xlu1 %3731 }
 0x3fb   :  { %v3958_v59 = vpop.eup %3957  ;;  %v3759_v50 = vmul.f32 1.442695, %v3752_v31  ;;  %v3741_v0 = vadd.f32 %v3732_v58, %v3702_v57 }
 0x3fc   :  { %v3761_v62 = vadd.f32 1.0, %v3958_v59  ;;  %v3730_v43 = vpop.permute.xlu0 %3729 }
 0x3fd   :  { %3959 = vpow2.f32 %v3759_v50  ;;  %v3747_v34 = vadd.f32 %v3744_v40, %v3741_v0  ;;  %v3740_v6 = vadd.f32 %v3730_v43, %v3701_v53 }
 0x3fe   :  { %3961 = vrcp.f32 %v3761_v62  ;;  %v3776_v46 = vand.u32 2147483648, %v3761_v62  ;;  %v3774_v10 = vand.u32 2147483647, %v3761_v62  ;;  %vm3770_vm9 = vweird.f32 %v3761_v62 }
 0x3ff   :  { %v3751_v48 = vsub.f32 0.0, %v3747_v34  ;;  %v3746_v35 = vadd.f32 %v3744_v40, %v3740_v6 }
 0x400   :  { %v3777_v44 = vor.u32 1.1754944e-38, %v3776_v46  ;;  %vm3775_vm12 = vcmp.eq.f32.partialorder %v3774_v10, 8.507059e+37 }
 0x401   :  { %v3757_v52 = vmul.f32 1.442695, %v3751_v48  ;;  %v3750_v11 = vsub.f32 0.0, %v3746_v35 }
 0x403   :  { %v3960_v16 = vpop.eup %3959  ;;  %3963 = vpow2.f32 %v3757_v52  ;;  %v3755_v17 = vmul.f32 1.442695, %v3750_v11 }
 0x404   :  { %v3962_v18 = vpop.eup %3961  ;;  %v3764_v29 = vadd.f32 1.0, %v3960_v16 }
 0x405   :  { %v3766_v55 = vmul.f32 %v3962_v18, %v3761_v62  ;;  %3965 = vpow2.f32 %v3755_v17  ;;  %vm3771_vm8 = vweird.f32 %v3962_v18 }
 0x406   :  { %3967 = vrcp.f32 %v3764_v29  ;;  %vm3772_vm10 = vmor %vm3770_vm9, %vm3771_vm8  ;;  %v3821_v61 = vand.u32 2147483648, %v3764_v29  ;;  %v3819_v60 = vand.u32 2147483647, %v3764_v29  ;;  %vm3815_vm14 = vweird.f32 %v3764_v29 }
 0x407   :  { %v3767_v36 = vsub.f32 1.0, %v3766_v55 }
 0x408   :  { %v3822_v63 = vor.u32 1.1754944e-38, %v3821_v61  ;;  %vm3820_vm0 = vcmp.eq.f32.partialorder %v3819_v60, 8.507059e+37 }
 0x409   :  { %v3964_v38 = vpop.eup %3963  ;;  %v3768_v26 = vmul.f32 %v3962_v18, %v3767_v36 }
 0x40a   :  { %v3763_v56 = vadd.f32 1.0, %v3964_v38 }
 0x40b   :  { %v3966_v4 = vpop.eup %3965  ;;  %v3769_v1 = vadd.f32 %v3962_v18, %v3768_v26 }
 0x40c   :  { %v3968_v21 = vpop.eup %3967  ;;  %3969 = vrcp.f32 %v3763_v56  ;;  %v3762_v14 = vadd.f32 1.0, %v3966_v4  ;;  %v3806_v47 = vand.u32 2147483648, %v3763_v56  ;;  %v3804_v23 = vand.u32 2147483647, %v3763_v56 }
 0x40d   :  { %v3811_v20 = vmul.f32 %v3968_v21, %v3764_v29  ;;  %v3773_v2 = vsel %vm3772_vm10, %v3962_v18, %v3769_v1  ;;  %vm3816_vm13 = vweird.f32 %v3968_v21  ;;  %vm3800_vm2 = vweird.f32 %v3763_v56 }
 0x40e   :  { %v3778_v12 = vsel %vm3775_vm12, %v3777_v44, %v3773_v2  ;;  %3971 = vrcp.f32 %v3762_v14  ;;  %vm3817_vm15 = vmor %vm3815_vm14, %vm3816_vm13  ;;  %v3791_v37 = vand.u32 2147483648, %v3762_v14  ;;  %v3807_v32 = vor.u32 1.1754944e-38, %v3806_v47 }
 0x40f   :  { %v3812_v19 = vsub.f32 1.0, %v3811_v20  ;;  %3826 = vst.msk [vmem:[#allocation5] sm:$0xff] %vm3825_vm11, %v3778_v12  ;;  %v3789_v39 = vand.u32 2147483647, %v3762_v14  ;;  %vm3805_vm5 = vcmp.eq.f32.partialorder %v3804_v23, 8.507059e+37  ;;  %vm3785_vm6 = vweird.f32 %v3762_v14 }
 0x410   :  { %v3792_v41 = vor.u32 1.1754944e-38, %v3791_v37 }
 0x411   :  { %v3813_v51 = vmul.f32 %v3968_v21, %v3812_v19  ;;  %vm3790_vm8 = vcmp.eq.f32.partialorder %v3789_v39, 8.507059e+37 }
 0x412   :  { %v3970_v27 = vpop.eup %3969 }
 0x413   :  { %v3814_v15 = vadd.f32 %v3968_v21, %v3813_v51  ;;  %v3796_v9 = vmul.f32 %v3970_v27, %v3763_v56  ;;  %vm3801_vm1 = vweird.f32 %v3970_v27 }
 0x414   :  { %v3972_v40 = vpop.eup %3971  ;;  %vm3802_vm3 = vmor %vm3800_vm2, %vm3801_vm1 }
 0x415   :  { %v3797_v13 = vsub.f32 1.0, %v3796_v9  ;;  %v3818_v8 = vsel %vm3817_vm15, %v3968_v21, %v3814_v15  ;;  %v3781_v54 = vmul.f32 %v3972_v40, %v3762_v14  ;;  %vm3786_vm4 = vweird.f32 %v3972_v40 }
 0x416   :  { %v3823_v30 = vsel %vm3820_vm0, %v3822_v63, %v3818_v8  ;;  %vm3787_vm7 = vmor %vm3785_vm6, %vm3786_vm4 }
 0x417   :  { %v3798_v42 = vmul.f32 %v3970_v27, %v3797_v13  ;;  %3829 = vst.msk [vmem:[#allocation5 + $0x18] sm:$0xff] %vm3825_vm11, %v3823_v30  ;;  %v3782_v28 = vsub.f32 1.0, %v3781_v54 }
 0x419   :  { %v3799_v33 = vadd.f32 %v3970_v27, %v3798_v42  ;;  %v3783_v45 = vmul.f32 %v3972_v40, %v3782_v28 }
 0x41b   :  { %v3803_v5 = vsel %vm3802_vm3, %v3970_v27, %v3799_v33  ;;  %v3784_v3 = vadd.f32 %v3972_v40, %v3783_v45 }
 0x41c   :  { %v3808_v25 = vsel %vm3805_vm5, %v3807_v32, %v3803_v5 }
 0x41d   :  { %3828 = vst.msk [vmem:[#allocation5 + $0x10] sm:$0xff] %vm3825_vm11, %v3808_v25  ;;  %v3788_v22 = vsel %vm3787_vm7, %v3972_v40, %v3784_v3 }
 0x41e   :  { %v3793_v24 = vsel %vm3790_vm8, %v3792_v41, %v3788_v22 }
 0x41f   :  { %3827 = vst.msk [vmem:[#allocation5 + $0x8] sm:$0xff] %vm3825_vm11, %v3793_v24 }
 0x420   :  { %3842 = dma.vmem_to_hbm [thread:$0]  %s3835_s6, 512, %s3837_s10, [#allocation3], %s4021_s11, %s4021_s11, %s4022_s12  }
 0x421   :  { %4011 = dma.done.wait [#allocation3], 512  }
 0x422   :  { %4012 = vsyncadd [#allocation3], 4294966784 }
 0x423   :  { %3847 = vsyncpa [#allocation3], 1 }
 0x424   :  { %3848 = vsyncpa [#allocation4], 1 }

</bundles_post_ra>
